<compile_context>
chip_gen: v7x
topology: tpu7x:2x2x1
jax: 0.10.0
libtpu: 0.0.40
codegen_flags: <defaults>
</compile_context>

<pallas_src>
import functools

import jax
import jax.numpy as jnp
import numpy as np
from jax import lax
from jax.experimental import pallas as pl
from jax.experimental.pallas import tpu as pltpu


def _sigmoid(x):
    # Exact identity sigmoid(x) = 0.5*tanh(x/2) + 0.5 -> one EUP op, no divide,
    # no exp overflow on the serial recurrent chain.
    return 0.5 * jnp.tanh(0.5 * x) + 0.5


def _softmax(x):
    m = jnp.max(x, axis=-1, keepdims=True)
    e = jnp.exp(x - m)
    return e / jnp.sum(e, axis=-1, keepdims=True)


# ----------------------------------------------------------------------------
# Fused kernel: MoE gating + expert mix + bidirectional LSTM + Linear(2H -> 1)
# ----------------------------------------------------------------------------
def pimoe_kernel(cap_ref, feat_ref, cc_ref, dc_ref, tp_ref,
                 w_exp_ref, w_feat_ref, wih_ref, whh_ref, wfc_ref,
                 out_ref, wts_ref, h_all_ref,
                 *, num_experts, top_k, alpha, hidden_dim, pred_len):
    E, H, T = num_experts, hidden_dim, pred_len

    cap = cap_ref[...]                       # (B, S)
    feat = feat_ref[...]                     # (B, F)
    cc = cc_ref[...]                         # (B, T)
    dc = dc_ref[...]                         # (B, T)
    tp = tp_ref[...]                         # (B, T)
    B = cap.shape[0]
    S = cap.shape[1]
    F = feat.shape[1]

    # ---------------- gating (inference path: logits = clean_logits) --------
    w_feat_aug = w_feat_ref[...]             # (F+1, E): rows 0..F-1 weight, row F bias
    logits = jnp.dot(feat, w_feat_aug[0:F, :],
                     preferred_element_type=jnp.float32) + w_feat_aug[F:F + 1, :]

    # torch.kthvalue(logits, E - top_k + 1) via rank counting (E tiny & static).
    k0 = E - top_k
    num_less = jnp.zeros_like(logits)
    num_leq = jnp.zeros_like(logits)
    for j in range(E):
        xj = logits[:, j:j + 1]
        num_less = num_less + (xj < logits).astype(jnp.float32)
        num_leq = num_leq + (xj <= logits).astype(jnp.float32)
    is_kth = jnp.logical_and(num_less <= k0, k0 < num_leq)
    kth_val = jnp.max(jnp.where(is_kth, logits, -jnp.inf), axis=1, keepdims=True)
    mask = logits < kth_val                  # experts NOT in the top-k

    sm = _softmax(logits)
    dec = jnp.where(mask,
                    alpha * jnp.log(sm + 1.0),
                    alpha * (jnp.exp(sm) - 1.0))
    wts = _softmax(dec)                      # (B, E)
    wts_ref[...] = wts

    # ---------------- experts: one packed matmul ----------------------------
    w_exp_aug = w_exp_ref[...]               # (S+1, E*T): last row is the bias
    out_all = jnp.dot(cap, w_exp_aug[0:S, :],
                      preferred_element_type=jnp.float32) + w_exp_aug[S:S + 1, :]
    deg = wts[:, 0:1] * out_all[:, 0:T]
    for e in range(1, E):
        deg = deg + wts[:, e:e + 1] * out_all[:, e * T:(e + 1) * T]          # (B, T)

    # ---------------- bidirectional LSTM (fused fwd/bwd step) ---------------
    # Packed gate layout (width 8H): [ i_f i_b | f_f f_b | g_f g_b | o_f o_b ]
    wih = wih_ref[...]                       # (9, 8H): rows 0..3 fwd, 4..7 bwd, 8 bias
    whh = whh_ref[...]                       # (2H, 8H) block-diagonal, permuted

    chans = (deg, cc, dc, tp)
    h_cat = jnp.zeros((B, 2 * H), jnp.float32)
    c_cat = jnp.zeros((B, 2 * H), jnp.float32)

    for s in range(T):                       # fully unrolled (T static)
        tf = s
        tb = T - 1 - s
        gates = wih[8:9, :]                  # combined bias row
        for ch in range(4):                  # input proj (off the recurrent chain)
            gates = gates + chans[ch][:, tf:tf + 1] * wih[ch:ch + 1, :]
            gates = gates + chans[ch][:, tb:tb + 1] * wih[4 + ch:5 + ch, :]
        if s > 0:                            # h == c == 0 at s == 0
            gates = gates + jnp.dot(h_cat, whh,
                                    preferred_element_type=jnp.float32)
        i_cat = _sigmoid(gates[:, 0:2 * H])
        f_cat = _sigmoid(gates[:, 2 * H:4 * H])
        g_cat = jnp.tanh(gates[:, 4 * H:6 * H])
        o_cat = _sigmoid(gates[:, 6 * H:8 * H])
        c_cat = f_cat * c_cat + i_cat * g_cat
        h_cat = o_cat * jnp.tanh(c_cat)      # [h_f(tf) | h_b(tb)]
        # spill each step's hidden state to VMEM scratch (frees the vregs)
        h_all_ref[:, tf * 2 * H:tf * 2 * H + H] = h_cat[:, 0:H]
        h_all_ref[:, tb * 2 * H + H:(tb + 1) * 2 * H] = h_cat[:, H:2 * H]

    # ---------------- Linear(2H -> 1) over all T steps: one MXU matmul ------
    wfc_w = wfc_ref[0:2 * T * H, :]          # (2*T*H, T) block-diagonal
    wfc_b = wfc_ref[2 * T * H:2 * T * H + 1, :]   # (1, T) = bfc broadcast
    out_ref[...] = jnp.dot(h_all_ref[...], wfc_w,
                           preferred_element_type=jnp.float32) + wfc_b


# ----------------------------------------------------------------------------
# Wrapper: one pallas_call, whole-array VMEM blocks (footprint << VMEM)
# ----------------------------------------------------------------------------
def pimoe_forward(packed, capacity_increment, features, charge_current,
                  discharge_current, Temperature, *, num_experts, top_k,
                  alpha, hidden_dim):
    B = capacity_increment.shape[0]
    P = charge_current.shape[1]
    vmem = pl.BlockSpec(memory_space=pltpu.MemorySpace.VMEM)

    out, wts = pl.pallas_call(
        functools.partial(pimoe_kernel, num_experts=num_experts, top_k=top_k,
                          alpha=alpha, hidden_dim=hidden_dim, pred_len=P),
        out_shape=(jax.ShapeDtypeStruct((B, P), jnp.float32),
                   jax.ShapeDtypeStruct((B, num_experts), jnp.float32)),
        in_specs=[vmem] * 10,
        out_specs=(vmem, vmem),
        scratch_shapes=[pltpu.VMEM((B, 2 * P * hidden_dim), jnp.float32)],
    )(capacity_increment, features, charge_current, discharge_current,
      Temperature,
      packed['w_exp_aug'], packed['w_feat_aug'], packed['wih_p'],
      packed['whh_p'], packed['wfc_aug'])
    return out, wts


# ----------------------------------------------------------------------------
# Host-side parameter packing (done once, outside the hot path)
# ----------------------------------------------------------------------------
def pack_params(params, *, pred_len, hidden_dim):
    H, T = hidden_dim, pred_len

    def scatter_dir(w, d):
        # (rows, 4H) -> (rows, 8H) with gate columns interleaved
        # [ i_f i_b | f_f f_b | g_f g_b | o_f o_b ]; zeros for the other dir.
        r = w.shape[0]
        z = jnp.zeros((r, 4, 2, H), jnp.float32)
        z = z.at[:, :, d, :].set(w.reshape(r, 4, H))
        return z.reshape(r, 8 * H)

    w_exp_aug = jnp.concatenate([params['w_exp'], params['b_exp']], axis=0)
    w_feat_aug = jnp.concatenate([params['w_feat'], params['b_feat']], axis=0)
    wih_p = jnp.concatenate(
        [scatter_dir(params['wih_f'], 0),
         scatter_dir(params['wih_b'], 1),
         scatter_dir(params['b_f'], 0) + scatter_dir(params['b_b'], 1)],
        axis=0)                                              # (9, 8H)
    whh_p = jnp.concatenate(
        [scatter_dir(params['whh_f'], 0),
         scatter_dir(params['whh_b'], 1)], axis=0)           # (2H, 8H)
    # block-diagonal output projection: wfc_w[t*2H + j, t] = wfc[0, j]
    wfc_w = jnp.kron(jnp.eye(T, dtype=jnp.float32),
                     params['wfc'].reshape(2 * H, 1))        # (2*T*H, T)
    wfc_aug = jnp.concatenate(
        [wfc_w, jnp.broadcast_to(params['bfc'], (1, T))], axis=0)
    return dict(w_exp_aug=w_exp_aug, w_feat_aug=w_feat_aug, wih_p=wih_p,
                whh_p=whh_p, wfc_aug=wfc_aug)


def init_params(key, *, seq_len, pred_len, num_experts, input_dim, hidden_dim):
    ks = jax.random.split(key, 12)
    s = 0.1
    return {
        # expert linears packed: (S, E*P); column block e is expert e's weight
        'w_exp': jax.random.normal(ks[0], (seq_len, num_experts * pred_len),
                                   jnp.float32) * s,
        'b_exp': jax.random.normal(ks[1], (1, num_experts * pred_len),
                                   jnp.float32) * s,
        'w_feat': jax.random.normal(ks[2], (input_dim, num_experts), jnp.float32) * s,
        'b_feat': jax.random.normal(ks[3], (1, num_experts), jnp.float32) * s,
        'wih_f': jax.random.normal(ks[4], (4, 4 * hidden_dim), jnp.float32) * s,
        'whh_f': jax.random.normal(ks[5], (hidden_dim, 4 * hidden_dim), jnp.float32) * s,
        'b_f': jax.random.normal(ks[6], (1, 4 * hidden_dim), jnp.float32) * s,
        'wih_b': jax.random.normal(ks[7], (4, 4 * hidden_dim), jnp.float32) * s,
        'whh_b': jax.random.normal(ks[8], (hidden_dim, 4 * hidden_dim), jnp.float32) * s,
        'b_b': jax.random.normal(ks[9], (1, 4 * hidden_dim), jnp.float32) * s,
        'wfc': jax.random.normal(ks[10], (1, 2 * hidden_dim), jnp.float32) * s,
        'bfc': jax.random.normal(ks[11], (1, 1), jnp.float32) * s,
    }


# ----------------------------------------------------------------------------
# Pure-JAX reference (mirrors the PyTorch forward in eval mode)
# ----------------------------------------------------------------------------
def reference_forward(params, cap, feat, cc, dc, temp, *, num_experts, top_k,
                      alpha, hidden_dim):
    E = num_experts
    B, _ = cap.shape
    P = cc.shape[1]

    logits = feat @ params['w_feat'] + params['b_feat']           # (B, E)
    k = E - top_k + 1
    kth = jnp.sort(logits, axis=1)[:, k - 1:k]                    # (B, 1)
    mask = logits < kth
    sm = _softmax(logits)
    dec = jnp.where(mask, alpha * jnp.log(sm + 1.0),
                    alpha * (jnp.exp(sm) - 1.0))
    wts = _softmax(dec)

    outs = (cap @ params['w_exp'] + params['b_exp']).reshape(B, E, P)
    deg = jnp.einsum('be,bep->bp', wts, outs)

    x = jnp.stack([deg, cc, dc, temp], axis=2)                    # (B, T, 4)
    H = hidden_dim

    def run_dir(x_seq, wih, whh, b):
        Bb = x_seq.shape[0]

        def step(carry, x_t):
            h, c = carry
            gates = x_t @ wih + h @ whh + b
            i = jax.nn.sigmoid(gates[:, :H])
            f = jax.nn.sigmoid(gates[:, H:2 * H])
            g = jnp.tanh(gates[:, 2 * H:3 * H])
            o = jax.nn.sigmoid(gates[:, 3 * H:])
            c = f * c + i * g
            h = o * jnp.tanh(c)
            return (h, c), h

        init = (jnp.zeros((Bb, H), jnp.float32),
                jnp.zeros((Bb, H), jnp.float32))
        _, hs = lax.scan(step, init, jnp.transpose(x_seq, (1, 0, 2)))
        return jnp.transpose(hs, (1, 0, 2))                       # (B, T, H)

    hf = run_dir(x, params['wih_f'], params['whh_f'], params['b_f'])
    hb = run_dir(x[:, ::-1, :], params['wih_b'], params['whh_b'],
                 params['b_b'])[:, ::-1, :]
    hcat = jnp.concatenate([hf, hb], axis=-1)                     # (B, T, 2H)
    out = jnp.sum(hcat * params['wfc'].reshape(1, 1, -1), axis=-1) \
        + params['bfc'][0, 0]
    return out, wts


if __name__ == "__main__":
    B, S, P = 2, 8, 16          # batch, seq_len, pred_len
    E, K = 4, 2                 # num_experts, top_k
    H = 32                      # hidden_dim
    F = 12                      # input_dim (dataset != 'TPSL')
    alpha = 0.5

    key = jax.random.PRNGKey(0)
    kp, k1, k2, k3, k4, k5 = jax.random.split(key, 6)
    params = init_params(kp, seq_len=S, pred_len=P, num_experts=E,
                         input_dim=F, hidden_dim=H)
    packed = pack_params(params, pred_len=P, hidden_dim=H)
    packed = jax.tree_util.tree_map(jax.block_until_ready, packed)

    capacity_increment = jax.random.normal(k1, (B, S), jnp.float32)
    features = jax.random.normal(k2, (B, F), jnp.float32)
    charge_current = jax.random.normal(k3, (B, P), jnp.float32)
    discharge_current = jax.random.normal(k4, (B, P), jnp.float32)
    Temperature = jax.random.normal(k5, (B, P), jnp.float32)

    fwd = jax.jit(functools.partial(pimoe_forward, num_experts=E, top_k=K,
                                    alpha=alpha, hidden_dim=H))
    final_out, weights = fwd(packed, capacity_increment, features,
                             charge_current, discharge_current, Temperature)
    jax.block_until_ready((final_out, weights))

    ref_out, ref_wts = reference_forward(
        params, capacity_increment, features, charge_current,
        discharge_current, Temperature,
        num_experts=E, top_k=K, alpha=alpha, hidden_dim=H)
    np.testing.assert_allclose(np.asarray(final_out), np.asarray(ref_out),
                               rtol=1e-4, atol=1e-4)
    np.testing.assert_allclose(np.asarray(weights), np.asarray(ref_wts),
                               rtol=1e-4, atol=1e-4)

    print("KERNEL_OK")
</pallas_src>

<mosaic_0001>
module attributes {stable_mosaic.version = 11 : i64} {
  func.func @pimoe_kernel(%arg0: memref<2x8xf32, #tpu.memory_space<vmem>>, %arg1: memref<2x12xf32, #tpu.memory_space<vmem>>, %arg2: memref<2x16xf32, #tpu.memory_space<vmem>>, %arg3: memref<2x16xf32, #tpu.memory_space<vmem>>, %arg4: memref<2x16xf32, #tpu.memory_space<vmem>>, %arg5: memref<9x64xf32, #tpu.memory_space<vmem>>, %arg6: memref<13x4xf32, #tpu.memory_space<vmem>>, %arg7: memref<9x256xf32, #tpu.memory_space<vmem>>, %arg8: memref<64x256xf32, #tpu.memory_space<vmem>>, %arg9: memref<1025x16xf32, #tpu.memory_space<vmem>>, %arg10: memref<2x16xf32, #tpu.memory_space<vmem>>, %arg11: memref<2x4xf32, #tpu.memory_space<vmem>>, %arg12: memref<2x1024xf32, #tpu.memory_space<vmem>>) attributes {dimension_semantics = [], scalar_prefetch = 0 : i64, scratch_operands = 1 : i64, tpu.core_type = #tpu.core_type<tc>} {
    %c0 = arith.constant 0 : index
    %c0_0 = arith.constant 0 : index
    %0 = vector.load %arg0[%c0, %c0_0] : memref<2x8xf32, #tpu.memory_space<vmem>>, vector<2x8xf32>
    %c0_1 = arith.constant 0 : index
    %c0_2 = arith.constant 0 : index
    %1 = vector.load %arg1[%c0_1, %c0_2] : memref<2x12xf32, #tpu.memory_space<vmem>>, vector<2x12xf32>
    %c0_3 = arith.constant 0 : index
    %c0_4 = arith.constant 0 : index
    %2 = vector.load %arg2[%c0_3, %c0_4] : memref<2x16xf32, #tpu.memory_space<vmem>>, vector<2x16xf32>
    %c0_5 = arith.constant 0 : index
    %c0_6 = arith.constant 0 : index
    %3 = vector.load %arg3[%c0_5, %c0_6] : memref<2x16xf32, #tpu.memory_space<vmem>>, vector<2x16xf32>
    %c0_7 = arith.constant 0 : index
    %c0_8 = arith.constant 0 : index
    %4 = vector.load %arg4[%c0_7, %c0_8] : memref<2x16xf32, #tpu.memory_space<vmem>>, vector<2x16xf32>
    %c0_9 = arith.constant 0 : index
    %c0_10 = arith.constant 0 : index
    %5 = vector.load %arg6[%c0_9, %c0_10] : memref<13x4xf32, #tpu.memory_space<vmem>>, vector<13x4xf32>
    %6 = vector.extract_strided_slice %5 {offsets = [0, 0], sizes = [12, 4], strides = [1, 1]} : vector<13x4xf32> to vector<12x4xf32>
    %cst = arith.constant dense<0.000000e+00> : vector<2x4xf32>
    %7 = tpu.matmul %1, %6, %cst {dimension_numbers = #tpu.dot_dimension_numbers<[1], [0], [0], [1], [0, 0, 1, 1], [], []>} : vector<2x12xf32>, vector<12x4xf32>, vector<2x4xf32> -> vector<2x4xf32>
    %8 = vector.extract_strided_slice %5 {offsets = [12, 0], sizes = [1, 4], strides = [1, 1]} : vector<13x4xf32> to vector<1x4xf32>
    %9 = vector.broadcast %8 : vector<1x4xf32> to vector<2x4xf32>
    %10 = arith.addf %7, %9 : vector<2x4xf32>
    %cst_11 = arith.constant 0.000000e+00 : f32
    %11 = vector.broadcast %cst_11 : f32 to vector<2x4xf32>
    %cst_12 = arith.constant 0.000000e+00 : f32
    %12 = vector.broadcast %cst_12 : f32 to vector<2x4xf32>
    %13 = vector.extract_strided_slice %10 {offsets = [0, 0], sizes = [2, 1], strides = [1, 1]} : vector<2x4xf32> to vector<2x1xf32>
    %14 = vector.broadcast %13 : vector<2x1xf32> to vector<2x4xf32>
    %15 = arith.cmpf olt, %14, %10 : vector<2x4xf32>
    %16 = arith.extui %15 : vector<2x4xi1> to vector<2x4xi32>
    %17 = arith.sitofp %16 : vector<2x4xi32> to vector<2x4xf32>
    %18 = arith.addf %11, %17 : vector<2x4xf32>
    %19 = vector.broadcast %13 : vector<2x1xf32> to vector<2x4xf32>
    %20 = arith.cmpf ole, %19, %10 : vector<2x4xf32>
    %21 = arith.extui %20 : vector<2x4xi1> to vector<2x4xi32>
    %22 = arith.sitofp %21 : vector<2x4xi32> to vector<2x4xf32>
    %23 = arith.addf %12, %22 : vector<2x4xf32>
    %24 = vector.extract_strided_slice %10 {offsets = [0, 1], sizes = [2, 1], strides = [1, 1]} : vector<2x4xf32> to vector<2x1xf32>
    %25 = vector.broadcast %24 : vector<2x1xf32> to vector<2x4xf32>
    %26 = arith.cmpf olt, %25, %10 : vector<2x4xf32>
    %27 = arith.extui %26 : vector<2x4xi1> to vector<2x4xi32>
    %28 = arith.sitofp %27 : vector<2x4xi32> to vector<2x4xf32>
    %29 = arith.addf %18, %28 : vector<2x4xf32>
    %30 = vector.broadcast %24 : vector<2x1xf32> to vector<2x4xf32>
    %31 = arith.cmpf ole, %30, %10 : vector<2x4xf32>
    %32 = arith.extui %31 : vector<2x4xi1> to vector<2x4xi32>
    %33 = arith.sitofp %32 : vector<2x4xi32> to vector<2x4xf32>
    %34 = arith.addf %23, %33 : vector<2x4xf32>
    %35 = vector.extract_strided_slice %10 {offsets = [0, 2], sizes = [2, 1], strides = [1, 1]} : vector<2x4xf32> to vector<2x1xf32>
    %36 = vector.broadcast %35 : vector<2x1xf32> to vector<2x4xf32>
    %37 = arith.cmpf olt, %36, %10 : vector<2x4xf32>
    %38 = arith.extui %37 : vector<2x4xi1> to vector<2x4xi32>
    %39 = arith.sitofp %38 : vector<2x4xi32> to vector<2x4xf32>
    %40 = arith.addf %29, %39 : vector<2x4xf32>
    %41 = vector.broadcast %35 : vector<2x1xf32> to vector<2x4xf32>
    %42 = arith.cmpf ole, %41, %10 : vector<2x4xf32>
    %43 = arith.extui %42 : vector<2x4xi1> to vector<2x4xi32>
    %44 = arith.sitofp %43 : vector<2x4xi32> to vector<2x4xf32>
    %45 = arith.addf %34, %44 : vector<2x4xf32>
    %46 = vector.extract_strided_slice %10 {offsets = [0, 3], sizes = [2, 1], strides = [1, 1]} : vector<2x4xf32> to vector<2x1xf32>
    %47 = vector.broadcast %46 : vector<2x1xf32> to vector<2x4xf32>
    %48 = arith.cmpf olt, %47, %10 : vector<2x4xf32>
    %49 = arith.extui %48 : vector<2x4xi1> to vector<2x4xi32>
    %50 = arith.sitofp %49 : vector<2x4xi32> to vector<2x4xf32>
    %51 = arith.addf %40, %50 : vector<2x4xf32>
    %52 = vector.broadcast %46 : vector<2x1xf32> to vector<2x4xf32>
    %53 = arith.cmpf ole, %52, %10 : vector<2x4xf32>
    %54 = arith.extui %53 : vector<2x4xi1> to vector<2x4xi32>
    %55 = arith.sitofp %54 : vector<2x4xi32> to vector<2x4xf32>
    %56 = arith.addf %45, %55 : vector<2x4xf32>
    %cst_13 = arith.constant 2.000000e+00 : f32
    %57 = vector.broadcast %cst_13 : f32 to vector<2x4xf32>
    %58 = arith.cmpf ole, %51, %57 : vector<2x4xf32>
    %cst_14 = arith.constant 2.000000e+00 : f32
    %59 = vector.broadcast %cst_14 : f32 to vector<2x4xf32>
    %60 = arith.cmpf ogt, %56, %59 : vector<2x4xf32>
    %61 = arith.andi %58, %60 : vector<2x4xi1>
    %cst_15 = arith.constant 0xFF800000 : f32
    %62 = vector.broadcast %cst_15 : f32 to vector<2x4xf32>
    %63 = arith.select %61, %10, %62 : vector<2x4xi1>, vector<2x4xf32>
    %cst_16 = arith.constant dense<0xFF800000> : vector<2xf32>
    %64 = vector.multi_reduction <maximumf>, %63, %cst_16 [1] : vector<2x4xf32> to vector<2xf32>
    %65 = vector.shape_cast %64 : vector<2xf32> to vector<2x1xf32>
    %66 = vector.broadcast %65 : vector<2x1xf32> to vector<2x4xf32>
    %67 = arith.cmpf olt, %10, %66 : vector<2x4xf32>
    %cst_17 = arith.constant dense<0xFF800000> : vector<2xf32>
    %68 = vector.multi_reduction <maximumf>, %10, %cst_17 [1] : vector<2x4xf32> to vector<2xf32>
    %69 = vector.shape_cast %68 : vector<2xf32> to vector<2x1xf32>
    %70 = vector.broadcast %69 : vector<2x1xf32> to vector<2x4xf32>
    %71 = arith.subf %10, %70 : vector<2x4xf32>
    %72 = math.exp %71 : vector<2x4xf32>
    %cst_18 = arith.constant dense<0.000000e+00> : vector<2xf32>
    %73 = vector.multi_reduction <add>, %72, %cst_18 [1] : vector<2x4xf32> to vector<2xf32>
    %74 = vector.shape_cast %73 : vector<2xf32> to vector<2x1xf32>
    %75 = vector.broadcast %74 : vector<2x1xf32> to vector<2x4xf32>
    %76 = arith.divf %72, %75 : vector<2x4xf32>
    %cst_19 = arith.constant 1.000000e+00 : f32
    %77 = vector.broadcast %cst_19 : f32 to vector<2x4xf32>
    %78 = arith.addf %76, %77 : vector<2x4xf32>
    %79 = math.log %78 : vector<2x4xf32>
    %cst_20 = arith.constant 5.000000e-01 : f32
    %80 = vector.broadcast %cst_20 : f32 to vector<2x4xf32>
    %81 = arith.mulf %80, %79 : vector<2x4xf32>
    %82 = math.exp %76 : vector<2x4xf32>
    %cst_21 = arith.constant 1.000000e+00 : f32
    %83 = vector.broadcast %cst_21 : f32 to vector<2x4xf32>
    %84 = arith.subf %82, %83 : vector<2x4xf32>
    %cst_22 = arith.constant 5.000000e-01 : f32
    %85 = vector.broadcast %cst_22 : f32 to vector<2x4xf32>
    %86 = arith.mulf %85, %84 : vector<2x4xf32>
    %87 = arith.select %67, %81, %86 : vector<2x4xi1>, vector<2x4xf32>
    %cst_23 = arith.constant dense<0xFF800000> : vector<2xf32>
    %88 = vector.multi_reduction <maximumf>, %87, %cst_23 [1] : vector<2x4xf32> to vector<2xf32>
    %89 = vector.shape_cast %88 : vector<2xf32> to vector<2x1xf32>
    %90 = vector.broadcast %89 : vector<2x1xf32> to vector<2x4xf32>
    %91 = arith.subf %87, %90 : vector<2x4xf32>
    %92 = math.exp %91 : vector<2x4xf32>
    %cst_24 = arith.constant dense<0.000000e+00> : vector<2xf32>
    %93 = vector.multi_reduction <add>, %92, %cst_24 [1] : vector<2x4xf32> to vector<2xf32>
    %94 = vector.shape_cast %93 : vector<2xf32> to vector<2x1xf32>
    %95 = vector.broadcast %94 : vector<2x1xf32> to vector<2x4xf32>
    %96 = arith.divf %92, %95 : vector<2x4xf32>
    %c0_25 = arith.constant 0 : index
    %c0_26 = arith.constant 0 : index
    %97 = vector.load %arg11[%c0_25, %c0_26] : memref<2x4xf32, #tpu.memory_space<vmem>>, vector<2x4xf32>
    tpu.vector_store %arg11[%c0_25, %c0_26], %96 {strides = array<i32>} : memref<2x4xf32, #tpu.memory_space<vmem>>, vector<2x4xf32>,
    %c0_27 = arith.constant 0 : index
    %c0_28 = arith.constant 0 : index
    %98 = vector.load %arg5[%c0_27, %c0_28] : memref<9x64xf32, #tpu.memory_space<vmem>>, vector<9x64xf32>
    %99 = vector.extract_strided_slice %98 {offsets = [0, 0], sizes = [8, 64], strides = [1, 1]} : vector<9x64xf32> to vector<8x64xf32>
    %cst_29 = arith.constant dense<0.000000e+00> : vector<2x64xf32>
    %100 = tpu.matmul %0, %99, %cst_29 {dimension_numbers = #tpu.dot_dimension_numbers<[1], [0], [0], [1], [0, 0, 1, 1], [], []>} : vector<2x8xf32>, vector<8x64xf32>, vector<2x64xf32> -> vector<2x64xf32>
    %101 = vector.extract_strided_slice %98 {offsets = [8, 0], sizes = [1, 64], strides = [1, 1]} : vector<9x64xf32> to vector<1x64xf32>
    %102 = vector.broadcast %101 : vector<1x64xf32> to vector<2x64xf32>
    %103 = arith.addf %100, %102 : vector<2x64xf32>
    %104 = vector.extract_strided_slice %96 {offsets = [0, 0], sizes = [2, 1], strides = [1, 1]} : vector<2x4xf32> to vector<2x1xf32>
    %105 = vector.extract_strided_slice %103 {offsets = [0, 0], sizes = [2, 16], strides = [1, 1]} : vector<2x64xf32> to vector<2x16xf32>
    %106 = vector.broadcast %104 : vector<2x1xf32> to vector<2x16xf32>
    %107 = arith.mulf %106, %105 : vector<2x16xf32>
    %108 = vector.extract_strided_slice %96 {offsets = [0, 1], sizes = [2, 1], strides = [1, 1]} : vector<2x4xf32> to vector<2x1xf32>
    %109 = vector.extract_strided_slice %103 {offsets = [0, 16], sizes = [2, 16], strides = [1, 1]} : vector<2x64xf32> to vector<2x16xf32>
    %110 = vector.broadcast %108 : vector<2x1xf32> to vector<2x16xf32>
    %111 = arith.mulf %110, %109 : vector<2x16xf32>
    %112 = arith.addf %107, %111 : vector<2x16xf32>
    %113 = vector.extract_strided_slice %96 {offsets = [0, 2], sizes = [2, 1], strides = [1, 1]} : vector<2x4xf32> to vector<2x1xf32>
    %114 = vector.extract_strided_slice %103 {offsets = [0, 32], sizes = [2, 16], strides = [1, 1]} : vector<2x64xf32> to vector<2x16xf32>
    %115 = vector.broadcast %113 : vector<2x1xf32> to vector<2x16xf32>
    %116 = arith.mulf %115, %114 : vector<2x16xf32>
    %117 = arith.addf %112, %116 : vector<2x16xf32>
    %118 = vector.extract_strided_slice %96 {offsets = [0, 3], sizes = [2, 1], strides = [1, 1]} : vector<2x4xf32> to vector<2x1xf32>
    %119 = vector.extract_strided_slice %103 {offsets = [0, 48], sizes = [2, 16], strides = [1, 1]} : vector<2x64xf32> to vector<2x16xf32>
    %120 = vector.broadcast %118 : vector<2x1xf32> to vector<2x16xf32>
    %121 = arith.mulf %120, %119 : vector<2x16xf32>
    %122 = arith.addf %117, %121 : vector<2x16xf32>
    %c0_30 = arith.constant 0 : index
    %c0_31 = arith.constant 0 : index
    %123 = vector.load %arg7[%c0_30, %c0_31] : memref<9x256xf32, #tpu.memory_space<vmem>>, vector<9x256xf32>
    %c0_32 = arith.constant 0 : index
    %c0_33 = arith.constant 0 : index
    %124 = vector.load %arg8[%c0_32, %c0_33] : memref<64x256xf32, #tpu.memory_space<vmem>>, vector<64x256xf32>
    %cst_34 = arith.constant 0.000000e+00 : f32
    %125 = vector.broadcast %cst_34 : f32 to vector<2x64xf32>
    %126 = vector.extract_strided_slice %123 {offsets = [8, 0], sizes = [1, 256], strides = [1, 1]} : vector<9x256xf32> to vector<1x256xf32>
    %127 = vector.extract_strided_slice %122 {offsets = [0, 0], sizes = [2, 1], strides = [1, 1]} : vector<2x16xf32> to vector<2x1xf32>
    %128 = vector.extract_strided_slice %123 {offsets = [0, 0], sizes = [1, 256], strides = [1, 1]} : vector<9x256xf32> to vector<1x256xf32>
    %129 = vector.broadcast %127 : vector<2x1xf32> to vector<2x256xf32>
    %130 = vector.broadcast %128 : vector<1x256xf32> to vector<2x256xf32>
    %131 = arith.mulf %129, %130 : vector<2x256xf32>
    %132 = vector.broadcast %126 : vector<1x256xf32> to vector<2x256xf32>
    %133 = arith.addf %132, %131 : vector<2x256xf32>
    %134 = vector.extract_strided_slice %122 {offsets = [0, 15], sizes = [2, 1], strides = [1, 1]} : vector<2x16xf32> to vector<2x1xf32>
    %135 = vector.extract_strided_slice %123 {offsets = [4, 0], sizes = [1, 256], strides = [1, 1]} : vector<9x256xf32> to vector<1x256xf32>
    %136 = vector.broadcast %134 : vector<2x1xf32> to vector<2x256xf32>
    %137 = vector.broadcast %135 : vector<1x256xf32> to vector<2x256xf32>
    %138 = arith.mulf %136, %137 : vector<2x256xf32>
    %139 = arith.addf %133, %138 : vector<2x256xf32>
    %140 = vector.extract_strided_slice %2 {offsets = [0, 0], sizes = [2, 1], strides = [1, 1]} : vector<2x16xf32> to vector<2x1xf32>
    %141 = vector.extract_strided_slice %123 {offsets = [1, 0], sizes = [1, 256], strides = [1, 1]} : vector<9x256xf32> to vector<1x256xf32>
    %142 = vector.broadcast %140 : vector<2x1xf32> to vector<2x256xf32>
    %143 = vector.broadcast %141 : vector<1x256xf32> to vector<2x256xf32>
    %144 = arith.mulf %142, %143 : vector<2x256xf32>
    %145 = arith.addf %139, %144 : vector<2x256xf32>
    %146 = vector.extract_strided_slice %2 {offsets = [0, 15], sizes = [2, 1], strides = [1, 1]} : vector<2x16xf32> to vector<2x1xf32>
    %147 = vector.extract_strided_slice %123 {offsets = [5, 0], sizes = [1, 256], strides = [1, 1]} : vector<9x256xf32> to vector<1x256xf32>
    %148 = vector.broadcast %146 : vector<2x1xf32> to vector<2x256xf32>
    %149 = vector.broadcast %147 : vector<1x256xf32> to vector<2x256xf32>
    %150 = arith.mulf %148, %149 : vector<2x256xf32>
    %151 = arith.addf %145, %150 : vector<2x256xf32>
    %152 = vector.extract_strided_slice %3 {offsets = [0, 0], sizes = [2, 1], strides = [1, 1]} : vector<2x16xf32> to vector<2x1xf32>
    %153 = vector.extract_strided_slice %123 {offsets = [2, 0], sizes = [1, 256], strides = [1, 1]} : vector<9x256xf32> to vector<1x256xf32>
    %154 = vector.broadcast %152 : vector<2x1xf32> to vector<2x256xf32>
    %155 = vector.broadcast %153 : vector<1x256xf32> to vector<2x256xf32>
    %156 = arith.mulf %154, %155 : vector<2x256xf32>
    %157 = arith.addf %151, %156 : vector<2x256xf32>
    %158 = vector.extract_strided_slice %3 {offsets = [0, 15], sizes = [2, 1], strides = [1, 1]} : vector<2x16xf32> to vector<2x1xf32>
    %159 = vector.extract_strided_slice %123 {offsets = [6, 0], sizes = [1, 256], strides = [1, 1]} : vector<9x256xf32> to vector<1x256xf32>
    %160 = vector.broadcast %158 : vector<2x1xf32> to vector<2x256xf32>
    %161 = vector.broadcast %159 : vector<1x256xf32> to vector<2x256xf32>
    %162 = arith.mulf %160, %161 : vector<2x256xf32>
    %163 = arith.addf %157, %162 : vector<2x256xf32>
    %164 = vector.extract_strided_slice %4 {offsets = [0, 0], sizes = [2, 1], strides = [1, 1]} : vector<2x16xf32> to vector<2x1xf32>
    %165 = vector.extract_strided_slice %123 {offsets = [3, 0], sizes = [1, 256], strides = [1, 1]} : vector<9x256xf32> to vector<1x256xf32>
    %166 = vector.broadcast %164 : vector<2x1xf32> to vector<2x256xf32>
    %167 = vector.broadcast %165 : vector<1x256xf32> to vector<2x256xf32>
    %168 = arith.mulf %166, %167 : vector<2x256xf32>
    %169 = arith.addf %163, %168 : vector<2x256xf32>
    %170 = vector.extract_strided_slice %4 {offsets = [0, 15], sizes = [2, 1], strides = [1, 1]} : vector<2x16xf32> to vector<2x1xf32>
    %171 = vector.extract_strided_slice %123 {offsets = [7, 0], sizes = [1, 256], strides = [1, 1]} : vector<9x256xf32> to vector<1x256xf32>
    %172 = vector.broadcast %170 : vector<2x1xf32> to vector<2x256xf32>
    %173 = vector.broadcast %171 : vector<1x256xf32> to vector<2x256xf32>
    %174 = arith.mulf %172, %173 : vector<2x256xf32>
    %175 = arith.addf %169, %174 : vector<2x256xf32>
    %176 = vector.extract_strided_slice %175 {offsets = [0, 0], sizes = [2, 64], strides = [1, 1]} : vector<2x256xf32> to vector<2x64xf32>
    %cst_35 = arith.constant 5.000000e-01 : f32
    %177 = vector.broadcast %cst_35 : f32 to vector<2x64xf32>
    %178 = arith.mulf %177, %176 : vector<2x64xf32>
    %179 = math.tanh %178 : vector<2x64xf32>
    %cst_36 = arith.constant 5.000000e-01 : f32
    %180 = vector.broadcast %cst_36 : f32 to vector<2x64xf32>
    %181 = arith.mulf %180, %179 : vector<2x64xf32>
    %cst_37 = arith.constant 5.000000e-01 : f32
    %182 = vector.broadcast %cst_37 : f32 to vector<2x64xf32>
    %183 = arith.addf %181, %182 : vector<2x64xf32>
    %184 = vector.extract_strided_slice %175 {offsets = [0, 64], sizes = [2, 64], strides = [1, 1]} : vector<2x256xf32> to vector<2x64xf32>
    %cst_38 = arith.constant 5.000000e-01 : f32
    %185 = vector.broadcast %cst_38 : f32 to vector<2x64xf32>
    %186 = arith.mulf %185, %184 : vector<2x64xf32>
    %187 = math.tanh %186 : vector<2x64xf32>
    %cst_39 = arith.constant 5.000000e-01 : f32
    %188 = vector.broadcast %cst_39 : f32 to vector<2x64xf32>
    %189 = arith.mulf %188, %187 : vector<2x64xf32>
    %cst_40 = arith.constant 5.000000e-01 : f32
    %190 = vector.broadcast %cst_40 : f32 to vector<2x64xf32>
    %191 = arith.addf %189, %190 : vector<2x64xf32>
    %192 = vector.extract_strided_slice %175 {offsets = [0, 128], sizes = [2, 64], strides = [1, 1]} : vector<2x256xf32> to vector<2x64xf32>
    %193 = math.tanh %192 : vector<2x64xf32>
    %194 = vector.extract_strided_slice %175 {offsets = [0, 192], sizes = [2, 64], strides = [1, 1]} : vector<2x256xf32> to vector<2x64xf32>
    %cst_41 = arith.constant 5.000000e-01 : f32
    %195 = vector.broadcast %cst_41 : f32 to vector<2x64xf32>
    %196 = arith.mulf %195, %194 : vector<2x64xf32>
    %197 = math.tanh %196 : vector<2x64xf32>
    %cst_42 = arith.constant 5.000000e-01 : f32
    %198 = vector.broadcast %cst_42 : f32 to vector<2x64xf32>
    %199 = arith.mulf %198, %197 : vector<2x64xf32>
    %cst_43 = arith.constant 5.000000e-01 : f32
    %200 = vector.broadcast %cst_43 : f32 to vector<2x64xf32>
    %201 = arith.addf %199, %200 : vector<2x64xf32>
    %202 = arith.mulf %191, %125 : vector<2x64xf32>
    %203 = arith.mulf %183, %193 : vector<2x64xf32>
    %204 = arith.addf %202, %203 : vector<2x64xf32>
    %205 = math.tanh %204 : vector<2x64xf32>
    %206 = arith.mulf %201, %205 : vector<2x64xf32>
    %207 = vector.extract_strided_slice %206 {offsets = [0, 0], sizes = [2, 32], strides = [1, 1]} : vector<2x64xf32> to vector<2x32xf32>
    %c0_44 = arith.constant 0 : index
    %c0_45 = arith.constant 0 : index
    %208 = vector.load %arg12[%c0_44, %c0_45] : memref<2x1024xf32, #tpu.memory_space<vmem>>, vector<2x32xf32>
    tpu.vector_store %arg12[%c0_44, %c0_45], %207 {strides = array<i32>} : memref<2x1024xf32, #tpu.memory_space<vmem>>, vector<2x32xf32>,
    %209 = vector.extract_strided_slice %206 {offsets = [0, 32], sizes = [2, 32], strides = [1, 1]} : vector<2x64xf32> to vector<2x32xf32>
    %c0_46 = arith.constant 0 : index
    %c992 = arith.constant 992 : index
    %210 = vector.load %arg12[%c0_46, %c992] : memref<2x1024xf32, #tpu.memory_space<vmem>>, vector<2x32xf32>
    tpu.vector_store %arg12[%c0_46, %c992], %209 {strides = array<i32>} : memref<2x1024xf32, #tpu.memory_space<vmem>>, vector<2x32xf32>,
    %211 = vector.extract_strided_slice %123 {offsets = [8, 0], sizes = [1, 256], strides = [1, 1]} : vector<9x256xf32> to vector<1x256xf32>
    %212 = vector.extract_strided_slice %122 {offsets = [0, 1], sizes = [2, 1], strides = [1, 1]} : vector<2x16xf32> to vector<2x1xf32>
    %213 = vector.extract_strided_slice %123 {offsets = [0, 0], sizes = [1, 256], strides = [1, 1]} : vector<9x256xf32> to vector<1x256xf32>
    %214 = vector.broadcast %212 : vector<2x1xf32> to vector<2x256xf32>
    %215 = vector.broadcast %213 : vector<1x256xf32> to vector<2x256xf32>
    %216 = arith.mulf %214, %215 : vector<2x256xf32>
    %217 = vector.broadcast %211 : vector<1x256xf32> to vector<2x256xf32>
    %218 = arith.addf %217, %216 : vector<2x256xf32>
    %219 = vector.extract_strided_slice %122 {offsets = [0, 14], sizes = [2, 1], strides = [1, 1]} : vector<2x16xf32> to vector<2x1xf32>
    %220 = vector.extract_strided_slice %123 {offsets = [4, 0], sizes = [1, 256], strides = [1, 1]} : vector<9x256xf32> to vector<1x256xf32>
    %221 = vector.broadcast %219 : vector<2x1xf32> to vector<2x256xf32>
    %222 = vector.broadcast %220 : vector<1x256xf32> to vector<2x256xf32>
    %223 = arith.mulf %221, %222 : vector<2x256xf32>
    %224 = arith.addf %218, %223 : vector<2x256xf32>
    %225 = vector.extract_strided_slice %2 {offsets = [0, 1], sizes = [2, 1], strides = [1, 1]} : vector<2x16xf32> to vector<2x1xf32>
    %226 = vector.extract_strided_slice %123 {offsets = [1, 0], sizes = [1, 256], strides = [1, 1]} : vector<9x256xf32> to vector<1x256xf32>
    %227 = vector.broadcast %225 : vector<2x1xf32> to vector<2x256xf32>
    %228 = vector.broadcast %226 : vector<1x256xf32> to vector<2x256xf32>
    %229 = arith.mulf %227, %228 : vector<2x256xf32>
    %230 = arith.addf %224, %229 : vector<2x256xf32>
    %231 = vector.extract_strided_slice %2 {offsets = [0, 14], sizes = [2, 1], strides = [1, 1]} : vector<2x16xf32> to vector<2x1xf32>
    %232 = vector.extract_strided_slice %123 {offsets = [5, 0], sizes = [1, 256], strides = [1, 1]} : vector<9x256xf32> to vector<1x256xf32>
    %233 = vector.broadcast %231 : vector<2x1xf32> to vector<2x256xf32>
    %234 = vector.broadcast %232 : vector<1x256xf32> to vector<2x256xf32>
    %235 = arith.mulf %233, %234 : vector<2x256xf32>
    %236 = arith.addf %230, %235 : vector<2x256xf32>
    %237 = vector.extract_strided_slice %3 {offsets = [0, 1], sizes = [2, 1], strides = [1, 1]} : vector<2x16xf32> to vector<2x1xf32>
    %238 = vector.extract_strided_slice %123 {offsets = [2, 0], sizes = [1, 256], strides = [1, 1]} : vector<9x256xf32> to vector<1x256xf32>
    %239 = vector.broadcast %237 : vector<2x1xf32> to vector<2x256xf32>
    %240 = vector.broadcast %238 : vector<1x256xf32> to vector<2x256xf32>
    %241 = arith.mulf %239, %240 : vector<2x256xf32>
    %242 = arith.addf %236, %241 : vector<2x256xf32>
    %243 = vector.extract_strided_slice %3 {offsets = [0, 14], sizes = [2, 1], strides = [1, 1]} : vector<2x16xf32> to vector<2x1xf32>
    %244 = vector.extract_strided_slice %123 {offsets = [6, 0], sizes = [1, 256], strides = [1, 1]} : vector<9x256xf32> to vector<1x256xf32>
    %245 = vector.broadcast %243 : vector<2x1xf32> to vector<2x256xf32>
    %246 = vector.broadcast %244 : vector<1x256xf32> to vector<2x256xf32>
    %247 = arith.mulf %245, %246 : vector<2x256xf32>
    %248 = arith.addf %242, %247 : vector<2x256xf32>
    %249 = vector.extract_strided_slice %4 {offsets = [0, 1], sizes = [2, 1], strides = [1, 1]} : vector<2x16xf32> to vector<2x1xf32>
    %250 = vector.extract_strided_slice %123 {offsets = [3, 0], sizes = [1, 256], strides = [1, 1]} : vector<9x256xf32> to vector<1x256xf32>
    %251 = vector.broadcast %249 : vector<2x1xf32> to vector<2x256xf32>
    %252 = vector.broadcast %250 : vector<1x256xf32> to vector<2x256xf32>
    %253 = arith.mulf %251, %252 : vector<2x256xf32>
    %254 = arith.addf %248, %253 : vector<2x256xf32>
    %255 = vector.extract_strided_slice %4 {offsets = [0, 14], sizes = [2, 1], strides = [1, 1]} : vector<2x16xf32> to vector<2x1xf32>
    %256 = vector.extract_strided_slice %123 {offsets = [7, 0], sizes = [1, 256], strides = [1, 1]} : vector<9x256xf32> to vector<1x256xf32>
    %257 = vector.broadcast %255 : vector<2x1xf32> to vector<2x256xf32>
    %258 = vector.broadcast %256 : vector<1x256xf32> to vector<2x256xf32>
    %259 = arith.mulf %257, %258 : vector<2x256xf32>
    %260 = arith.addf %254, %259 : vector<2x256xf32>
    %cst_47 = arith.constant dense<0.000000e+00> : vector<2x256xf32>
    %261 = tpu.matmul %206, %124, %cst_47 {dimension_numbers = #tpu.dot_dimension_numbers<[1], [0], [0], [1], [0, 0, 1, 1], [], []>} : vector<2x64xf32>, vector<64x256xf32>, vector<2x256xf32> -> vector<2x256xf32>
    %262 = arith.addf %260, %261 : vector<2x256xf32>
    %263 = vector.extract_strided_slice %262 {offsets = [0, 0], sizes = [2, 64], strides = [1, 1]} : vector<2x256xf32> to vector<2x64xf32>
    %cst_48 = arith.constant 5.000000e-01 : f32
    %264 = vector.broadcast %cst_48 : f32 to vector<2x64xf32>
    %265 = arith.mulf %264, %263 : vector<2x64xf32>
    %266 = math.tanh %265 : vector<2x64xf32>
    %cst_49 = arith.constant 5.000000e-01 : f32
    %267 = vector.broadcast %cst_49 : f32 to vector<2x64xf32>
    %268 = arith.mulf %267, %266 : vector<2x64xf32>
    %cst_50 = arith.constant 5.000000e-01 : f32
    %269 = vector.broadcast %cst_50 : f32 to vector<2x64xf32>
    %270 = arith.addf %268, %269 : vector<2x64xf32>
    %271 = vector.extract_strided_slice %262 {offsets = [0, 64], sizes = [2, 64], strides = [1, 1]} : vector<2x256xf32> to vector<2x64xf32>
    %cst_51 = arith.constant 5.000000e-01 : f32
    %272 = vector.broadcast %cst_51 : f32 to vector<2x64xf32>
    %273 = arith.mulf %272, %271 : vector<2x64xf32>
    %274 = math.tanh %273 : vector<2x64xf32>
    %cst_52 = arith.constant 5.000000e-01 : f32
    %275 = vector.broadcast %cst_52 : f32 to vector<2x64xf32>
    %276 = arith.mulf %275, %274 : vector<2x64xf32>
    %cst_53 = arith.constant 5.000000e-01 : f32
    %277 = vector.broadcast %cst_53 : f32 to vector<2x64xf32>
    %278 = arith.addf %276, %277 : vector<2x64xf32>
    %279 = vector.extract_strided_slice %262 {offsets = [0, 128], sizes = [2, 64], strides = [1, 1]} : vector<2x256xf32> to vector<2x64xf32>
    %280 = math.tanh %279 : vector<2x64xf32>
    %281 = vector.extract_strided_slice %262 {offsets = [0, 192], sizes = [2, 64], strides = [1, 1]} : vector<2x256xf32> to vector<2x64xf32>
    %cst_54 = arith.constant 5.000000e-01 : f32
    %282 = vector.broadcast %cst_54 : f32 to vector<2x64xf32>
    %283 = arith.mulf %282, %281 : vector<2x64xf32>
    %284 = math.tanh %283 : vector<2x64xf32>
    %cst_55 = arith.constant 5.000000e-01 : f32
    %285 = vector.broadcast %cst_55 : f32 to vector<2x64xf32>
    %286 = arith.mulf %285, %284 : vector<2x64xf32>
    %cst_56 = arith.constant 5.000000e-01 : f32
    %287 = vector.broadcast %cst_56 : f32 to vector<2x64xf32>
    %288 = arith.addf %286, %287 : vector<2x64xf32>
    %289 = arith.mulf %278, %204 : vector<2x64xf32>
    %290 = arith.mulf %270, %280 : vector<2x64xf32>
    %291 = arith.addf %289, %290 : vector<2x64xf32>
    %292 = math.tanh %291 : vector<2x64xf32>
    %293 = arith.mulf %288, %292 : vector<2x64xf32>
    %294 = vector.extract_strided_slice %293 {offsets = [0, 0], sizes = [2, 32], strides = [1, 1]} : vector<2x64xf32> to vector<2x32xf32>
    %c0_57 = arith.constant 0 : index
    %c64 = arith.constant 64 : index
    %295 = vector.load %arg12[%c0_57, %c64] : memref<2x1024xf32, #tpu.memory_space<vmem>>, vector<2x32xf32>
    tpu.vector_store %arg12[%c0_57, %c64], %294 {strides = array<i32>} : memref<2x1024xf32, #tpu.memory_space<vmem>>, vector<2x32xf32>,
    %296 = vector.extract_strided_slice %293 {offsets = [0, 32], sizes = [2, 32], strides = [1, 1]} : vector<2x64xf32> to vector<2x32xf32>
    %c0_58 = arith.constant 0 : index
    %c928 = arith.constant 928 : index
    %297 = vector.load %arg12[%c0_58, %c928] : memref<2x1024xf32, #tpu.memory_space<vmem>>, vector<2x32xf32>
    tpu.vector_store %arg12[%c0_58, %c928], %296 {strides = array<i32>} : memref<2x1024xf32, #tpu.memory_space<vmem>>, vector<2x32xf32>,
    %298 = vector.extract_strided_slice %123 {offsets = [8, 0], sizes = [1, 256], strides = [1, 1]} : vector<9x256xf32> to vector<1x256xf32>
    %299 = vector.extract_strided_slice %122 {offsets = [0, 2], sizes = [2, 1], strides = [1, 1]} : vector<2x16xf32> to vector<2x1xf32>
    %300 = vector.extract_strided_slice %123 {offsets = [0, 0], sizes = [1, 256], strides = [1, 1]} : vector<9x256xf32> to vector<1x256xf32>
    %301 = vector.broadcast %299 : vector<2x1xf32> to vector<2x256xf32>
    %302 = vector.broadcast %300 : vector<1x256xf32> to vector<2x256xf32>
    %303 = arith.mulf %301, %302 : vector<2x256xf32>
    %304 = vector.broadcast %298 : vector<1x256xf32> to vector<2x256xf32>
    %305 = arith.addf %304, %303 : vector<2x256xf32>
    %306 = vector.extract_strided_slice %122 {offsets = [0, 13], sizes = [2, 1], strides = [1, 1]} : vector<2x16xf32> to vector<2x1xf32>
    %307 = vector.extract_strided_slice %123 {offsets = [4, 0], sizes = [1, 256], strides = [1, 1]} : vector<9x256xf32> to vector<1x256xf32>
    %308 = vector.broadcast %306 : vector<2x1xf32> to vector<2x256xf32>
    %309 = vector.broadcast %307 : vector<1x256xf32> to vector<2x256xf32>
    %310 = arith.mulf %308, %309 : vector<2x256xf32>
    %311 = arith.addf %305, %310 : vector<2x256xf32>
    %312 = vector.extract_strided_slice %2 {offsets = [0, 2], sizes = [2, 1], strides = [1, 1]} : vector<2x16xf32> to vector<2x1xf32>
    %313 = vector.extract_strided_slice %123 {offsets = [1, 0], sizes = [1, 256], strides = [1, 1]} : vector<9x256xf32> to vector<1x256xf32>
    %314 = vector.broadcast %312 : vector<2x1xf32> to vector<2x256xf32>
    %315 = vector.broadcast %313 : vector<1x256xf32> to vector<2x256xf32>
    %316 = arith.mulf %314, %315 : vector<2x256xf32>
    %317 = arith.addf %311, %316 : vector<2x256xf32>
    %318 = vector.extract_strided_slice %2 {offsets = [0, 13], sizes = [2, 1], strides = [1, 1]} : vector<2x16xf32> to vector<2x1xf32>
    %319 = vector.extract_strided_slice %123 {offsets = [5, 0], sizes = [1, 256], strides = [1, 1]} : vector<9x256xf32> to vector<1x256xf32>
    %320 = vector.broadcast %318 : vector<2x1xf32> to vector<2x256xf32>
    %321 = vector.broadcast %319 : vector<1x256xf32> to vector<2x256xf32>
    %322 = arith.mulf %320, %321 : vector<2x256xf32>
    %323 = arith.addf %317, %322 : vector<2x256xf32>
    %324 = vector.extract_strided_slice %3 {offsets = [0, 2], sizes = [2, 1], strides = [1, 1]} : vector<2x16xf32> to vector<2x1xf32>
    %325 = vector.extract_strided_slice %123 {offsets = [2, 0], sizes = [1, 256], strides = [1, 1]} : vector<9x256xf32> to vector<1x256xf32>
    %326 = vector.broadcast %324 : vector<2x1xf32> to vector<2x256xf32>
    %327 = vector.broadcast %325 : vector<1x256xf32> to vector<2x256xf32>
    %328 = arith.mulf %326, %327 : vector<2x256xf32>
    %329 = arith.addf %323, %328 : vector<2x256xf32>
    %330 = vector.extract_strided_slice %3 {offsets = [0, 13], sizes = [2, 1], strides = [1, 1]} : vector<2x16xf32> to vector<2x1xf32>
    %331 = vector.extract_strided_slice %123 {offsets = [6, 0], sizes = [1, 256], strides = [1, 1]} : vector<9x256xf32> to vector<1x256xf32>
    %332 = vector.broadcast %330 : vector<2x1xf32> to vector<2x256xf32>
    %333 = vector.broadcast %331 : vector<1x256xf32> to vector<2x256xf32>
    %334 = arith.mulf %332, %333 : vector<2x256xf32>
    %335 = arith.addf %329, %334 : vector<2x256xf32>
    %336 = vector.extract_strided_slice %4 {offsets = [0, 2], sizes = [2, 1], strides = [1, 1]} : vector<2x16xf32> to vector<2x1xf32>
    %337 = vector.extract_strided_slice %123 {offsets = [3, 0], sizes = [1, 256], strides = [1, 1]} : vector<9x256xf32> to vector<1x256xf32>
    %338 = vector.broadcast %336 : vector<2x1xf32> to vector<2x256xf32>
    %339 = vector.broadcast %337 : vector<1x256xf32> to vector<2x256xf32>
    %340 = arith.mulf %338, %339 : vector<2x256xf32>
    %341 = arith.addf %335, %340 : vector<2x256xf32>
    %342 = vector.extract_strided_slice %4 {offsets = [0, 13], sizes = [2, 1], strides = [1, 1]} : vector<2x16xf32> to vector<2x1xf32>
    %343 = vector.extract_strided_slice %123 {offsets = [7, 0], sizes = [1, 256], strides = [1, 1]} : vector<9x256xf32> to vector<1x256xf32>
    %344 = vector.broadcast %342 : vector<2x1xf32> to vector<2x256xf32>
    %345 = vector.broadcast %343 : vector<1x256xf32> to vector<2x256xf32>
    %346 = arith.mulf %344, %345 : vector<2x256xf32>
    %347 = arith.addf %341, %346 : vector<2x256xf32>
    %cst_59 = arith.constant dense<0.000000e+00> : vector<2x256xf32>
    %348 = tpu.matmul %293, %124, %cst_59 {dimension_numbers = #tpu.dot_dimension_numbers<[1], [0], [0], [1], [0, 0, 1, 1], [], []>} : vector<2x64xf32>, vector<64x256xf32>, vector<2x256xf32> -> vector<2x256xf32>
    %349 = arith.addf %347, %348 : vector<2x256xf32>
    %350 = vector.extract_strided_slice %349 {offsets = [0, 0], sizes = [2, 64], strides = [1, 1]} : vector<2x256xf32> to vector<2x64xf32>
    %cst_60 = arith.constant 5.000000e-01 : f32
    %351 = vector.broadcast %cst_60 : f32 to vector<2x64xf32>
    %352 = arith.mulf %351, %350 : vector<2x64xf32>
    %353 = math.tanh %352 : vector<2x64xf32>
    %cst_61 = arith.constant 5.000000e-01 : f32
    %354 = vector.broadcast %cst_61 : f32 to vector<2x64xf32>
    %355 = arith.mulf %354, %353 : vector<2x64xf32>
    %cst_62 = arith.constant 5.000000e-01 : f32
    %356 = vector.broadcast %cst_62 : f32 to vector<2x64xf32>
    %357 = arith.addf %355, %356 : vector<2x64xf32>
    %358 = vector.extract_strided_slice %349 {offsets = [0, 64], sizes = [2, 64], strides = [1, 1]} : vector<2x256xf32> to vector<2x64xf32>
    %cst_63 = arith.constant 5.000000e-01 : f32
    %359 = vector.broadcast %cst_63 : f32 to vector<2x64xf32>
    %360 = arith.mulf %359, %358 : vector<2x64xf32>
    %361 = math.tanh %360 : vector<2x64xf32>
    %cst_64 = arith.constant 5.000000e-01 : f32
    %362 = vector.broadcast %cst_64 : f32 to vector<2x64xf32>
    %363 = arith.mulf %362, %361 : vector<2x64xf32>
    %cst_65 = arith.constant 5.000000e-01 : f32
    %364 = vector.broadcast %cst_65 : f32 to vector<2x64xf32>
    %365 = arith.addf %363, %364 : vector<2x64xf32>
    %366 = vector.extract_strided_slice %349 {offsets = [0, 128], sizes = [2, 64], strides = [1, 1]} : vector<2x256xf32> to vector<2x64xf32>
    %367 = math.tanh %366 : vector<2x64xf32>
    %368 = vector.extract_strided_slice %349 {offsets = [0, 192], sizes = [2, 64], strides = [1, 1]} : vector<2x256xf32> to vector<2x64xf32>
    %cst_66 = arith.constant 5.000000e-01 : f32
    %369 = vector.broadcast %cst_66 : f32 to vector<2x64xf32>
    %370 = arith.mulf %369, %368 : vector<2x64xf32>
    %371 = math.tanh %370 : vector<2x64xf32>
    %cst_67 = arith.constant 5.000000e-01 : f32
    %372 = vector.broadcast %cst_67 : f32 to vector<2x64xf32>
    %373 = arith.mulf %372, %371 : vector<2x64xf32>
    %cst_68 = arith.constant 5.000000e-01 : f32
    %374 = vector.broadcast %cst_68 : f32 to vector<2x64xf32>
    %375 = arith.addf %373, %374 : vector<2x64xf32>
    %376 = arith.mulf %365, %291 : vector<2x64xf32>
    %377 = arith.mulf %357, %367 : vector<2x64xf32>
    %378 = arith.addf %376, %377 : vector<2x64xf32>
    %379 = math.tanh %378 : vector<2x64xf32>
    %380 = arith.mulf %375, %379 : vector<2x64xf32>
    %381 = vector.extract_strided_slice %380 {offsets = [0, 0], sizes = [2, 32], strides = [1, 1]} : vector<2x64xf32> to vector<2x32xf32>
    %c0_69 = arith.constant 0 : index
    %c128 = arith.constant 128 : index
    %382 = vector.load %arg12[%c0_69, %c128] : memref<2x1024xf32, #tpu.memory_space<vmem>>, vector<2x32xf32>
    tpu.vector_store %arg12[%c0_69, %c128], %381 {strides = array<i32>} : memref<2x1024xf32, #tpu.memory_space<vmem>>, vector<2x32xf32>,
    %383 = vector.extract_strided_slice %380 {offsets = [0, 32], sizes = [2, 32], strides = [1, 1]} : vector<2x64xf32> to vector<2x32xf32>
    %c0_70 = arith.constant 0 : index
    %c864 = arith.constant 864 : index
    %384 = vector.load %arg12[%c0_70, %c864] : memref<2x1024xf32, #tpu.memory_space<vmem>>, vector<2x32xf32>
    tpu.vector_store %arg12[%c0_70, %c864], %383 {strides = array<i32>} : memref<2x1024xf32, #tpu.memory_space<vmem>>, vector<2x32xf32>,
    %385 = vector.extract_strided_slice %123 {offsets = [8, 0], sizes = [1, 256], strides = [1, 1]} : vector<9x256xf32> to vector<1x256xf32>
    %386 = vector.extract_strided_slice %122 {offsets = [0, 3], sizes = [2, 1], strides = [1, 1]} : vector<2x16xf32> to vector<2x1xf32>
    %387 = vector.extract_strided_slice %123 {offsets = [0, 0], sizes = [1, 256], strides = [1, 1]} : vector<9x256xf32> to vector<1x256xf32>
    %388 = vector.broadcast %386 : vector<2x1xf32> to vector<2x256xf32>
    %389 = vector.broadcast %387 : vector<1x256xf32> to vector<2x256xf32>
    %390 = arith.mulf %388, %389 : vector<2x256xf32>
    %391 = vector.broadcast %385 : vector<1x256xf32> to vector<2x256xf32>
    %392 = arith.addf %391, %390 : vector<2x256xf32>
    %393 = vector.extract_strided_slice %122 {offsets = [0, 12], sizes = [2, 1], strides = [1, 1]} : vector<2x16xf32> to vector<2x1xf32>
    %394 = vector.extract_strided_slice %123 {offsets = [4, 0], sizes = [1, 256], strides = [1, 1]} : vector<9x256xf32> to vector<1x256xf32>
    %395 = vector.broadcast %393 : vector<2x1xf32> to vector<2x256xf32>
    %396 = vector.broadcast %394 : vector<1x256xf32> to vector<2x256xf32>
    %397 = arith.mulf %395, %396 : vector<2x256xf32>
    %398 = arith.addf %392, %397 : vector<2x256xf32>
    %399 = vector.extract_strided_slice %2 {offsets = [0, 3], sizes = [2, 1], strides = [1, 1]} : vector<2x16xf32> to vector<2x1xf32>
    %400 = vector.extract_strided_slice %123 {offsets = [1, 0], sizes = [1, 256], strides = [1, 1]} : vector<9x256xf32> to vector<1x256xf32>
    %401 = vector.broadcast %399 : vector<2x1xf32> to vector<2x256xf32>
    %402 = vector.broadcast %400 : vector<1x256xf32> to vector<2x256xf32>
    %403 = arith.mulf %401, %402 : vector<2x256xf32>
    %404 = arith.addf %398, %403 : vector<2x256xf32>
    %405 = vector.extract_strided_slice %2 {offsets = [0, 12], sizes = [2, 1], strides = [1, 1]} : vector<2x16xf32> to vector<2x1xf32>
    %406 = vector.extract_strided_slice %123 {offsets = [5, 0], sizes = [1, 256], strides = [1, 1]} : vector<9x256xf32> to vector<1x256xf32>
    %407 = vector.broadcast %405 : vector<2x1xf32> to vector<2x256xf32>
    %408 = vector.broadcast %406 : vector<1x256xf32> to vector<2x256xf32>
    %409 = arith.mulf %407, %408 : vector<2x256xf32>
    %410 = arith.addf %404, %409 : vector<2x256xf32>
    %411 = vector.extract_strided_slice %3 {offsets = [0, 3], sizes = [2, 1], strides = [1, 1]} : vector<2x16xf32> to vector<2x1xf32>
    %412 = vector.extract_strided_slice %123 {offsets = [2, 0], sizes = [1, 256], strides = [1, 1]} : vector<9x256xf32> to vector<1x256xf32>
    %413 = vector.broadcast %411 : vector<2x1xf32> to vector<2x256xf32>
    %414 = vector.broadcast %412 : vector<1x256xf32> to vector<2x256xf32>
    %415 = arith.mulf %413, %414 : vector<2x256xf32>
    %416 = arith.addf %410, %415 : vector<2x256xf32>
    %417 = vector.extract_strided_slice %3 {offsets = [0, 12], sizes = [2, 1], strides = [1, 1]} : vector<2x16xf32> to vector<2x1xf32>
    %418 = vector.extract_strided_slice %123 {offsets = [6, 0], sizes = [1, 256], strides = [1, 1]} : vector<9x256xf32> to vector<1x256xf32>
    %419 = vector.broadcast %417 : vector<2x1xf32> to vector<2x256xf32>
    %420 = vector.broadcast %418 : vector<1x256xf32> to vector<2x256xf32>
    %421 = arith.mulf %419, %420 : vector<2x256xf32>
    %422 = arith.addf %416, %421 : vector<2x256xf32>
    %423 = vector.extract_strided_slice %4 {offsets = [0, 3], sizes = [2, 1], strides = [1, 1]} : vector<2x16xf32> to vector<2x1xf32>
    %424 = vector.extract_strided_slice %123 {offsets = [3, 0], sizes = [1, 256], strides = [1, 1]} : vector<9x256xf32> to vector<1x256xf32>
    %425 = vector.broadcast %423 : vector<2x1xf32> to vector<2x256xf32>
    %426 = vector.broadcast %424 : vector<1x256xf32> to vector<2x256xf32>
    %427 = arith.mulf %425, %426 : vector<2x256xf32>
    %428 = arith.addf %422, %427 : vector<2x256xf32>
    %429 = vector.extract_strided_slice %4 {offsets = [0, 12], sizes = [2, 1], strides = [1, 1]} : vector<2x16xf32> to vector<2x1xf32>
    %430 = vector.extract_strided_slice %123 {offsets = [7, 0], sizes = [1, 256], strides = [1, 1]} : vector<9x256xf32> to vector<1x256xf32>
    %431 = vector.broadcast %429 : vector<2x1xf32> to vector<2x256xf32>
    %432 = vector.broadcast %430 : vector<1x256xf32> to vector<2x256xf32>
    %433 = arith.mulf %431, %432 : vector<2x256xf32>
    %434 = arith.addf %428, %433 : vector<2x256xf32>
    %cst_71 = arith.constant dense<0.000000e+00> : vector<2x256xf32>
    %435 = tpu.matmul %380, %124, %cst_71 {dimension_numbers = #tpu.dot_dimension_numbers<[1], [0], [0], [1], [0, 0, 1, 1], [], []>} : vector<2x64xf32>, vector<64x256xf32>, vector<2x256xf32> -> vector<2x256xf32>
    %436 = arith.addf %434, %435 : vector<2x256xf32>
    %437 = vector.extract_strided_slice %436 {offsets = [0, 0], sizes = [2, 64], strides = [1, 1]} : vector<2x256xf32> to vector<2x64xf32>
    %cst_72 = arith.constant 5.000000e-01 : f32
    %438 = vector.broadcast %cst_72 : f32 to vector<2x64xf32>
    %439 = arith.mulf %438, %437 : vector<2x64xf32>
    %440 = math.tanh %439 : vector<2x64xf32>
    %cst_73 = arith.constant 5.000000e-01 : f32
    %441 = vector.broadcast %cst_73 : f32 to vector<2x64xf32>
    %442 = arith.mulf %441, %440 : vector<2x64xf32>
    %cst_74 = arith.constant 5.000000e-01 : f32
    %443 = vector.broadcast %cst_74 : f32 to vector<2x64xf32>
    %444 = arith.addf %442, %443 : vector<2x64xf32>
    %445 = vector.extract_strided_slice %436 {offsets = [0, 64], sizes = [2, 64], strides = [1, 1]} : vector<2x256xf32> to vector<2x64xf32>
    %cst_75 = arith.constant 5.000000e-01 : f32
    %446 = vector.broadcast %cst_75 : f32 to vector<2x64xf32>
    %447 = arith.mulf %446, %445 : vector<2x64xf32>
    %448 = math.tanh %447 : vector<2x64xf32>
    %cst_76 = arith.constant 5.000000e-01 : f32
    %449 = vector.broadcast %cst_76 : f32 to vector<2x64xf32>
    %450 = arith.mulf %449, %448 : vector<2x64xf32>
    %cst_77 = arith.constant 5.000000e-01 : f32
    %451 = vector.broadcast %cst_77 : f32 to vector<2x64xf32>
    %452 = arith.addf %450, %451 : vector<2x64xf32>
    %453 = vector.extract_strided_slice %436 {offsets = [0, 128], sizes = [2, 64], strides = [1, 1]} : vector<2x256xf32> to vector<2x64xf32>
    %454 = math.tanh %453 : vector<2x64xf32>
    %455 = vector.extract_strided_slice %436 {offsets = [0, 192], sizes = [2, 64], strides = [1, 1]} : vector<2x256xf32> to vector<2x64xf32>
    %cst_78 = arith.constant 5.000000e-01 : f32
    %456 = vector.broadcast %cst_78 : f32 to vector<2x64xf32>
    %457 = arith.mulf %456, %455 : vector<2x64xf32>
    %458 = math.tanh %457 : vector<2x64xf32>
    %cst_79 = arith.constant 5.000000e-01 : f32
    %459 = vector.broadcast %cst_79 : f32 to vector<2x64xf32>
    %460 = arith.mulf %459, %458 : vector<2x64xf32>
    %cst_80 = arith.constant 5.000000e-01 : f32
    %461 = vector.broadcast %cst_80 : f32 to vector<2x64xf32>
    %462 = arith.addf %460, %461 : vector<2x64xf32>
    %463 = arith.mulf %452, %378 : vector<2x64xf32>
    %464 = arith.mulf %444, %454 : vector<2x64xf32>
    %465 = arith.addf %463, %464 : vector<2x64xf32>
    %466 = math.tanh %465 : vector<2x64xf32>
    %467 = arith.mulf %462, %466 : vector<2x64xf32>
    %468 = vector.extract_strided_slice %467 {offsets = [0, 0], sizes = [2, 32], strides = [1, 1]} : vector<2x64xf32> to vector<2x32xf32>
    %c0_81 = arith.constant 0 : index
    %c192 = arith.constant 192 : index
    %469 = vector.load %arg12[%c0_81, %c192] : memref<2x1024xf32, #tpu.memory_space<vmem>>, vector<2x32xf32>
    tpu.vector_store %arg12[%c0_81, %c192], %468 {strides = array<i32>} : memref<2x1024xf32, #tpu.memory_space<vmem>>, vector<2x32xf32>,
    %470 = vector.extract_strided_slice %467 {offsets = [0, 32], sizes = [2, 32], strides = [1, 1]} : vector<2x64xf32> to vector<2x32xf32>
    %c0_82 = arith.constant 0 : index
    %c800 = arith.constant 800 : index
    %471 = vector.load %arg12[%c0_82, %c800] : memref<2x1024xf32, #tpu.memory_space<vmem>>, vector<2x32xf32>
    tpu.vector_store %arg12[%c0_82, %c800], %470 {strides = array<i32>} : memref<2x1024xf32, #tpu.memory_space<vmem>>, vector<2x32xf32>,
    %472 = vector.extract_strided_slice %123 {offsets = [8, 0], sizes = [1, 256], strides = [1, 1]} : vector<9x256xf32> to vector<1x256xf32>
    %473 = vector.extract_strided_slice %122 {offsets = [0, 4], sizes = [2, 1], strides = [1, 1]} : vector<2x16xf32> to vector<2x1xf32>
    %474 = vector.extract_strided_slice %123 {offsets = [0, 0], sizes = [1, 256], strides = [1, 1]} : vector<9x256xf32> to vector<1x256xf32>
    %475 = vector.broadcast %473 : vector<2x1xf32> to vector<2x256xf32>
    %476 = vector.broadcast %474 : vector<1x256xf32> to vector<2x256xf32>
    %477 = arith.mulf %475, %476 : vector<2x256xf32>
    %478 = vector.broadcast %472 : vector<1x256xf32> to vector<2x256xf32>
    %479 = arith.addf %478, %477 : vector<2x256xf32>
    %480 = vector.extract_strided_slice %122 {offsets = [0, 11], sizes = [2, 1], strides = [1, 1]} : vector<2x16xf32> to vector<2x1xf32>
    %481 = vector.extract_strided_slice %123 {offsets = [4, 0], sizes = [1, 256], strides = [1, 1]} : vector<9x256xf32> to vector<1x256xf32>
    %482 = vector.broadcast %480 : vector<2x1xf32> to vector<2x256xf32>
    %483 = vector.broadcast %481 : vector<1x256xf32> to vector<2x256xf32>
    %484 = arith.mulf %482, %483 : vector<2x256xf32>
    %485 = arith.addf %479, %484 : vector<2x256xf32>
    %486 = vector.extract_strided_slice %2 {offsets = [0, 4], sizes = [2, 1], strides = [1, 1]} : vector<2x16xf32> to vector<2x1xf32>
    %487 = vector.extract_strided_slice %123 {offsets = [1, 0], sizes = [1, 256], strides = [1, 1]} : vector<9x256xf32> to vector<1x256xf32>
    %488 = vector.broadcast %486 : vector<2x1xf32> to vector<2x256xf32>
    %489 = vector.broadcast %487 : vector<1x256xf32> to vector<2x256xf32>
    %490 = arith.mulf %488, %489 : vector<2x256xf32>
    %491 = arith.addf %485, %490 : vector<2x256xf32>
    %492 = vector.extract_strided_slice %2 {offsets = [0, 11], sizes = [2, 1], strides = [1, 1]} : vector<2x16xf32> to vector<2x1xf32>
    %493 = vector.extract_strided_slice %123 {offsets = [5, 0], sizes = [1, 256], strides = [1, 1]} : vector<9x256xf32> to vector<1x256xf32>
    %494 = vector.broadcast %492 : vector<2x1xf32> to vector<2x256xf32>
    %495 = vector.broadcast %493 : vector<1x256xf32> to vector<2x256xf32>
    %496 = arith.mulf %494, %495 : vector<2x256xf32>
    %497 = arith.addf %491, %496 : vector<2x256xf32>
    %498 = vector.extract_strided_slice %3 {offsets = [0, 4], sizes = [2, 1], strides = [1, 1]} : vector<2x16xf32> to vector<2x1xf32>
    %499 = vector.extract_strided_slice %123 {offsets = [2, 0], sizes = [1, 256], strides = [1, 1]} : vector<9x256xf32> to vector<1x256xf32>
    %500 = vector.broadcast %498 : vector<2x1xf32> to vector<2x256xf32>
    %501 = vector.broadcast %499 : vector<1x256xf32> to vector<2x256xf32>
    %502 = arith.mulf %500, %501 : vector<2x256xf32>
    %503 = arith.addf %497, %502 : vector<2x256xf32>
    %504 = vector.extract_strided_slice %3 {offsets = [0, 11], sizes = [2, 1], strides = [1, 1]} : vector<2x16xf32> to vector<2x1xf32>
    %505 = vector.extract_strided_slice %123 {offsets = [6, 0], sizes = [1, 256], strides = [1, 1]} : vector<9x256xf32> to vector<1x256xf32>
    %506 = vector.broadcast %504 : vector<2x1xf32> to vector<2x256xf32>
    %507 = vector.broadcast %505 : vector<1x256xf32> to vector<2x256xf32>
    %508 = arith.mulf %506, %507 : vector<2x256xf32>
    %509 = arith.addf %503, %508 : vector<2x256xf32>
    %510 = vector.extract_strided_slice %4 {offsets = [0, 4], sizes = [2, 1], strides = [1, 1]} : vector<2x16xf32> to vector<2x1xf32>
    %511 = vector.extract_strided_slice %123 {offsets = [3, 0], sizes = [1, 256], strides = [1, 1]} : vector<9x256xf32> to vector<1x256xf32>
    %512 = vector.broadcast %510 : vector<2x1xf32> to vector<2x256xf32>
    %513 = vector.broadcast %511 : vector<1x256xf32> to vector<2x256xf32>
    %514 = arith.mulf %512, %513 : vector<2x256xf32>
    %515 = arith.addf %509, %514 : vector<2x256xf32>
    %516 = vector.extract_strided_slice %4 {offsets = [0, 11], sizes = [2, 1], strides = [1, 1]} : vector<2x16xf32> to vector<2x1xf32>
    %517 = vector.extract_strided_slice %123 {offsets = [7, 0], sizes = [1, 256], strides = [1, 1]} : vector<9x256xf32> to vector<1x256xf32>
    %518 = vector.broadcast %516 : vector<2x1xf32> to vector<2x256xf32>
    %519 = vector.broadcast %517 : vector<1x256xf32> to vector<2x256xf32>
    %520 = arith.mulf %518, %519 : vector<2x256xf32>
    %521 = arith.addf %515, %520 : vector<2x256xf32>
    %cst_83 = arith.constant dense<0.000000e+00> : vector<2x256xf32>
    %522 = tpu.matmul %467, %124, %cst_83 {dimension_numbers = #tpu.dot_dimension_numbers<[1], [0], [0], [1], [0, 0, 1, 1], [], []>} : vector<2x64xf32>, vector<64x256xf32>, vector<2x256xf32> -> vector<2x256xf32>
    %523 = arith.addf %521, %522 : vector<2x256xf32>
    %524 = vector.extract_strided_slice %523 {offsets = [0, 0], sizes = [2, 64], strides = [1, 1]} : vector<2x256xf32> to vector<2x64xf32>
    %cst_84 = arith.constant 5.000000e-01 : f32
    %525 = vector.broadcast %cst_84 : f32 to vector<2x64xf32>
    %526 = arith.mulf %525, %524 : vector<2x64xf32>
    %527 = math.tanh %526 : vector<2x64xf32>
    %cst_85 = arith.constant 5.000000e-01 : f32
    %528 = vector.broadcast %cst_85 : f32 to vector<2x64xf32>
    %529 = arith.mulf %528, %527 : vector<2x64xf32>
    %cst_86 = arith.constant 5.000000e-01 : f32
    %530 = vector.broadcast %cst_86 : f32 to vector<2x64xf32>
    %531 = arith.addf %529, %530 : vector<2x64xf32>
    %532 = vector.extract_strided_slice %523 {offsets = [0, 64], sizes = [2, 64], strides = [1, 1]} : vector<2x256xf32> to vector<2x64xf32>
    %cst_87 = arith.constant 5.000000e-01 : f32
    %533 = vector.broadcast %cst_87 : f32 to vector<2x64xf32>
    %534 = arith.mulf %533, %532 : vector<2x64xf32>
    %535 = math.tanh %534 : vector<2x64xf32>
    %cst_88 = arith.constant 5.000000e-01 : f32
    %536 = vector.broadcast %cst_88 : f32 to vector<2x64xf32>
    %537 = arith.mulf %536, %535 : vector<2x64xf32>
    %cst_89 = arith.constant 5.000000e-01 : f32
    %538 = vector.broadcast %cst_89 : f32 to vector<2x64xf32>
    %539 = arith.addf %537, %538 : vector<2x64xf32>
    %540 = vector.extract_strided_slice %523 {offsets = [0, 128], sizes = [2, 64], strides = [1, 1]} : vector<2x256xf32> to vector<2x64xf32>
    %541 = math.tanh %540 : vector<2x64xf32>
    %542 = vector.extract_strided_slice %523 {offsets = [0, 192], sizes = [2, 64], strides = [1, 1]} : vector<2x256xf32> to vector<2x64xf32>
    %cst_90 = arith.constant 5.000000e-01 : f32
    %543 = vector.broadcast %cst_90 : f32 to vector<2x64xf32>
    %544 = arith.mulf %543, %542 : vector<2x64xf32>
    %545 = math.tanh %544 : vector<2x64xf32>
    %cst_91 = arith.constant 5.000000e-01 : f32
    %546 = vector.broadcast %cst_91 : f32 to vector<2x64xf32>
    %547 = arith.mulf %546, %545 : vector<2x64xf32>
    %cst_92 = arith.constant 5.000000e-01 : f32
    %548 = vector.broadcast %cst_92 : f32 to vector<2x64xf32>
    %549 = arith.addf %547, %548 : vector<2x64xf32>
    %550 = arith.mulf %539, %465 : vector<2x64xf32>
    %551 = arith.mulf %531, %541 : vector<2x64xf32>
    %552 = arith.addf %550, %551 : vector<2x64xf32>
    %553 = math.tanh %552 : vector<2x64xf32>
    %554 = arith.mulf %549, %553 : vector<2x64xf32>
    %555 = vector.extract_strided_slice %554 {offsets = [0, 0], sizes = [2, 32], strides = [1, 1]} : vector<2x64xf32> to vector<2x32xf32>
    %c0_93 = arith.constant 0 : index
    %c256 = arith.constant 256 : index
    %556 = vector.load %arg12[%c0_93, %c256] : memref<2x1024xf32, #tpu.memory_space<vmem>>, vector<2x32xf32>
    tpu.vector_store %arg12[%c0_93, %c256], %555 {strides = array<i32>} : memref<2x1024xf32, #tpu.memory_space<vmem>>, vector<2x32xf32>,
    %557 = vector.extract_strided_slice %554 {offsets = [0, 32], sizes = [2, 32], strides = [1, 1]} : vector<2x64xf32> to vector<2x32xf32>
    %c0_94 = arith.constant 0 : index
    %c736 = arith.constant 736 : index
    %558 = vector.load %arg12[%c0_94, %c736] : memref<2x1024xf32, #tpu.memory_space<vmem>>, vector<2x32xf32>
    tpu.vector_store %arg12[%c0_94, %c736], %557 {strides = array<i32>} : memref<2x1024xf32, #tpu.memory_space<vmem>>, vector<2x32xf32>,
    %559 = vector.extract_strided_slice %123 {offsets = [8, 0], sizes = [1, 256], strides = [1, 1]} : vector<9x256xf32> to vector<1x256xf32>
    %560 = vector.extract_strided_slice %122 {offsets = [0, 5], sizes = [2, 1], strides = [1, 1]} : vector<2x16xf32> to vector<2x1xf32>
    %561 = vector.extract_strided_slice %123 {offsets = [0, 0], sizes = [1, 256], strides = [1, 1]} : vector<9x256xf32> to vector<1x256xf32>
    %562 = vector.broadcast %560 : vector<2x1xf32> to vector<2x256xf32>
    %563 = vector.broadcast %561 : vector<1x256xf32> to vector<2x256xf32>
    %564 = arith.mulf %562, %563 : vector<2x256xf32>
    %565 = vector.broadcast %559 : vector<1x256xf32> to vector<2x256xf32>
    %566 = arith.addf %565, %564 : vector<2x256xf32>
    %567 = vector.extract_strided_slice %122 {offsets = [0, 10], sizes = [2, 1], strides = [1, 1]} : vector<2x16xf32> to vector<2x1xf32>
    %568 = vector.extract_strided_slice %123 {offsets = [4, 0], sizes = [1, 256], strides = [1, 1]} : vector<9x256xf32> to vector<1x256xf32>
    %569 = vector.broadcast %567 : vector<2x1xf32> to vector<2x256xf32>
    %570 = vector.broadcast %568 : vector<1x256xf32> to vector<2x256xf32>
    %571 = arith.mulf %569, %570 : vector<2x256xf32>
    %572 = arith.addf %566, %571 : vector<2x256xf32>
    %573 = vector.extract_strided_slice %2 {offsets = [0, 5], sizes = [2, 1], strides = [1, 1]} : vector<2x16xf32> to vector<2x1xf32>
    %574 = vector.extract_strided_slice %123 {offsets = [1, 0], sizes = [1, 256], strides = [1, 1]} : vector<9x256xf32> to vector<1x256xf32>
    %575 = vector.broadcast %573 : vector<2x1xf32> to vector<2x256xf32>
    %576 = vector.broadcast %574 : vector<1x256xf32> to vector<2x256xf32>
    %577 = arith.mulf %575, %576 : vector<2x256xf32>
    %578 = arith.addf %572, %577 : vector<2x256xf32>
    %579 = vector.extract_strided_slice %2 {offsets = [0, 10], sizes = [2, 1], strides = [1, 1]} : vector<2x16xf32> to vector<2x1xf32>
    %580 = vector.extract_strided_slice %123 {offsets = [5, 0], sizes = [1, 256], strides = [1, 1]} : vector<9x256xf32> to vector<1x256xf32>
    %581 = vector.broadcast %579 : vector<2x1xf32> to vector<2x256xf32>
    %582 = vector.broadcast %580 : vector<1x256xf32> to vector<2x256xf32>
    %583 = arith.mulf %581, %582 : vector<2x256xf32>
    %584 = arith.addf %578, %583 : vector<2x256xf32>
    %585 = vector.extract_strided_slice %3 {offsets = [0, 5], sizes = [2, 1], strides = [1, 1]} : vector<2x16xf32> to vector<2x1xf32>
    %586 = vector.extract_strided_slice %123 {offsets = [2, 0], sizes = [1, 256], strides = [1, 1]} : vector<9x256xf32> to vector<1x256xf32>
    %587 = vector.broadcast %585 : vector<2x1xf32> to vector<2x256xf32>
    %588 = vector.broadcast %586 : vector<1x256xf32> to vector<2x256xf32>
    %589 = arith.mulf %587, %588 : vector<2x256xf32>
    %590 = arith.addf %584, %589 : vector<2x256xf32>
    %591 = vector.extract_strided_slice %3 {offsets = [0, 10], sizes = [2, 1], strides = [1, 1]} : vector<2x16xf32> to vector<2x1xf32>
    %592 = vector.extract_strided_slice %123 {offsets = [6, 0], sizes = [1, 256], strides = [1, 1]} : vector<9x256xf32> to vector<1x256xf32>
    %593 = vector.broadcast %591 : vector<2x1xf32> to vector<2x256xf32>
    %594 = vector.broadcast %592 : vector<1x256xf32> to vector<2x256xf32>
    %595 = arith.mulf %593, %594 : vector<2x256xf32>
    %596 = arith.addf %590, %595 : vector<2x256xf32>
    %597 = vector.extract_strided_slice %4 {offsets = [0, 5], sizes = [2, 1], strides = [1, 1]} : vector<2x16xf32> to vector<2x1xf32>
    %598 = vector.extract_strided_slice %123 {offsets = [3, 0], sizes = [1, 256], strides = [1, 1]} : vector<9x256xf32> to vector<1x256xf32>
    %599 = vector.broadcast %597 : vector<2x1xf32> to vector<2x256xf32>
    %600 = vector.broadcast %598 : vector<1x256xf32> to vector<2x256xf32>
    %601 = arith.mulf %599, %600 : vector<2x256xf32>
    %602 = arith.addf %596, %601 : vector<2x256xf32>
    %603 = vector.extract_strided_slice %4 {offsets = [0, 10], sizes = [2, 1], strides = [1, 1]} : vector<2x16xf32> to vector<2x1xf32>
    %604 = vector.extract_strided_slice %123 {offsets = [7, 0], sizes = [1, 256], strides = [1, 1]} : vector<9x256xf32> to vector<1x256xf32>
    %605 = vector.broadcast %603 : vector<2x1xf32> to vector<2x256xf32>
    %606 = vector.broadcast %604 : vector<1x256xf32> to vector<2x256xf32>
    %607 = arith.mulf %605, %606 : vector<2x256xf32>
    %608 = arith.addf %602, %607 : vector<2x256xf32>
    %cst_95 = arith.constant dense<0.000000e+00> : vector<2x256xf32>
    %609 = tpu.matmul %554, %124, %cst_95 {dimension_numbers = #tpu.dot_dimension_numbers<[1], [0], [0], [1], [0, 0, 1, 1], [], []>} : vector<2x64xf32>, vector<64x256xf32>, vector<2x256xf32> -> vector<2x256xf32>
    %610 = arith.addf %608, %609 : vector<2x256xf32>
    %611 = vector.extract_strided_slice %610 {offsets = [0, 0], sizes = [2, 64], strides = [1, 1]} : vector<2x256xf32> to vector<2x64xf32>
    %cst_96 = arith.constant 5.000000e-01 : f32
    %612 = vector.broadcast %cst_96 : f32 to vector<2x64xf32>
    %613 = arith.mulf %612, %611 : vector<2x64xf32>
    %614 = math.tanh %613 : vector<2x64xf32>
    %cst_97 = arith.constant 5.000000e-01 : f32
    %615 = vector.broadcast %cst_97 : f32 to vector<2x64xf32>
    %616 = arith.mulf %615, %614 : vector<2x64xf32>
    %cst_98 = arith.constant 5.000000e-01 : f32
    %617 = vector.broadcast %cst_98 : f32 to vector<2x64xf32>
    %618 = arith.addf %616, %617 : vector<2x64xf32>
    %619 = vector.extract_strided_slice %610 {offsets = [0, 64], sizes = [2, 64], strides = [1, 1]} : vector<2x256xf32> to vector<2x64xf32>
    %cst_99 = arith.constant 5.000000e-01 : f32
    %620 = vector.broadcast %cst_99 : f32 to vector<2x64xf32>
    %621 = arith.mulf %620, %619 : vector<2x64xf32>
    %622 = math.tanh %621 : vector<2x64xf32>
    %cst_100 = arith.constant 5.000000e-01 : f32
    %623 = vector.broadcast %cst_100 : f32 to vector<2x64xf32>
    %624 = arith.mulf %623, %622 : vector<2x64xf32>
    %cst_101 = arith.constant 5.000000e-01 : f32
    %625 = vector.broadcast %cst_101 : f32 to vector<2x64xf32>
    %626 = arith.addf %624, %625 : vector<2x64xf32>
    %627 = vector.extract_strided_slice %610 {offsets = [0, 128], sizes = [2, 64], strides = [1, 1]} : vector<2x256xf32> to vector<2x64xf32>
    %628 = math.tanh %627 : vector<2x64xf32>
    %629 = vector.extract_strided_slice %610 {offsets = [0, 192], sizes = [2, 64], strides = [1, 1]} : vector<2x256xf32> to vector<2x64xf32>
    %cst_102 = arith.constant 5.000000e-01 : f32
    %630 = vector.broadcast %cst_102 : f32 to vector<2x64xf32>
    %631 = arith.mulf %630, %629 : vector<2x64xf32>
    %632 = math.tanh %631 : vector<2x64xf32>
    %cst_103 = arith.constant 5.000000e-01 : f32
    %633 = vector.broadcast %cst_103 : f32 to vector<2x64xf32>
    %634 = arith.mulf %633, %632 : vector<2x64xf32>
    %cst_104 = arith.constant 5.000000e-01 : f32
    %635 = vector.broadcast %cst_104 : f32 to vector<2x64xf32>
    %636 = arith.addf %634, %635 : vector<2x64xf32>
    %637 = arith.mulf %626, %552 : vector<2x64xf32>
    %638 = arith.mulf %618, %628 : vector<2x64xf32>
    %639 = arith.addf %637, %638 : vector<2x64xf32>
    %640 = math.tanh %639 : vector<2x64xf32>
    %641 = arith.mulf %636, %640 : vector<2x64xf32>
    %642 = vector.extract_strided_slice %641 {offsets = [0, 0], sizes = [2, 32], strides = [1, 1]} : vector<2x64xf32> to vector<2x32xf32>
    %c0_105 = arith.constant 0 : index
    %c320 = arith.constant 320 : index
    %643 = vector.load %arg12[%c0_105, %c320] : memref<2x1024xf32, #tpu.memory_space<vmem>>, vector<2x32xf32>
    tpu.vector_store %arg12[%c0_105, %c320], %642 {strides = array<i32>} : memref<2x1024xf32, #tpu.memory_space<vmem>>, vector<2x32xf32>,
    %644 = vector.extract_strided_slice %641 {offsets = [0, 32], sizes = [2, 32], strides = [1, 1]} : vector<2x64xf32> to vector<2x32xf32>
    %c0_106 = arith.constant 0 : index
    %c672 = arith.constant 672 : index
    %645 = vector.load %arg12[%c0_106, %c672] : memref<2x1024xf32, #tpu.memory_space<vmem>>, vector<2x32xf32>
    tpu.vector_store %arg12[%c0_106, %c672], %644 {strides = array<i32>} : memref<2x1024xf32, #tpu.memory_space<vmem>>, vector<2x32xf32>,
    %646 = vector.extract_strided_slice %123 {offsets = [8, 0], sizes = [1, 256], strides = [1, 1]} : vector<9x256xf32> to vector<1x256xf32>
    %647 = vector.extract_strided_slice %122 {offsets = [0, 6], sizes = [2, 1], strides = [1, 1]} : vector<2x16xf32> to vector<2x1xf32>
    %648 = vector.extract_strided_slice %123 {offsets = [0, 0], sizes = [1, 256], strides = [1, 1]} : vector<9x256xf32> to vector<1x256xf32>
    %649 = vector.broadcast %647 : vector<2x1xf32> to vector<2x256xf32>
    %650 = vector.broadcast %648 : vector<1x256xf32> to vector<2x256xf32>
    %651 = arith.mulf %649, %650 : vector<2x256xf32>
    %652 = vector.broadcast %646 : vector<1x256xf32> to vector<2x256xf32>
    %653 = arith.addf %652, %651 : vector<2x256xf32>
    %654 = vector.extract_strided_slice %122 {offsets = [0, 9], sizes = [2, 1], strides = [1, 1]} : vector<2x16xf32> to vector<2x1xf32>
    %655 = vector.extract_strided_slice %123 {offsets = [4, 0], sizes = [1, 256], strides = [1, 1]} : vector<9x256xf32> to vector<1x256xf32>
    %656 = vector.broadcast %654 : vector<2x1xf32> to vector<2x256xf32>
    %657 = vector.broadcast %655 : vector<1x256xf32> to vector<2x256xf32>
    %658 = arith.mulf %656, %657 : vector<2x256xf32>
    %659 = arith.addf %653, %658 : vector<2x256xf32>
    %660 = vector.extract_strided_slice %2 {offsets = [0, 6], sizes = [2, 1], strides = [1, 1]} : vector<2x16xf32> to vector<2x1xf32>
    %661 = vector.extract_strided_slice %123 {offsets = [1, 0], sizes = [1, 256], strides = [1, 1]} : vector<9x256xf32> to vector<1x256xf32>
    %662 = vector.broadcast %660 : vector<2x1xf32> to vector<2x256xf32>
    %663 = vector.broadcast %661 : vector<1x256xf32> to vector<2x256xf32>
    %664 = arith.mulf %662, %663 : vector<2x256xf32>
    %665 = arith.addf %659, %664 : vector<2x256xf32>
    %666 = vector.extract_strided_slice %2 {offsets = [0, 9], sizes = [2, 1], strides = [1, 1]} : vector<2x16xf32> to vector<2x1xf32>
    %667 = vector.extract_strided_slice %123 {offsets = [5, 0], sizes = [1, 256], strides = [1, 1]} : vector<9x256xf32> to vector<1x256xf32>
    %668 = vector.broadcast %666 : vector<2x1xf32> to vector<2x256xf32>
    %669 = vector.broadcast %667 : vector<1x256xf32> to vector<2x256xf32>
    %670 = arith.mulf %668, %669 : vector<2x256xf32>
    %671 = arith.addf %665, %670 : vector<2x256xf32>
    %672 = vector.extract_strided_slice %3 {offsets = [0, 6], sizes = [2, 1], strides = [1, 1]} : vector<2x16xf32> to vector<2x1xf32>
    %673 = vector.extract_strided_slice %123 {offsets = [2, 0], sizes = [1, 256], strides = [1, 1]} : vector<9x256xf32> to vector<1x256xf32>
    %674 = vector.broadcast %672 : vector<2x1xf32> to vector<2x256xf32>
    %675 = vector.broadcast %673 : vector<1x256xf32> to vector<2x256xf32>
    %676 = arith.mulf %674, %675 : vector<2x256xf32>
    %677 = arith.addf %671, %676 : vector<2x256xf32>
    %678 = vector.extract_strided_slice %3 {offsets = [0, 9], sizes = [2, 1], strides = [1, 1]} : vector<2x16xf32> to vector<2x1xf32>
    %679 = vector.extract_strided_slice %123 {offsets = [6, 0], sizes = [1, 256], strides = [1, 1]} : vector<9x256xf32> to vector<1x256xf32>
    %680 = vector.broadcast %678 : vector<2x1xf32> to vector<2x256xf32>
    %681 = vector.broadcast %679 : vector<1x256xf32> to vector<2x256xf32>
    %682 = arith.mulf %680, %681 : vector<2x256xf32>
    %683 = arith.addf %677, %682 : vector<2x256xf32>
    %684 = vector.extract_strided_slice %4 {offsets = [0, 6], sizes = [2, 1], strides = [1, 1]} : vector<2x16xf32> to vector<2x1xf32>
    %685 = vector.extract_strided_slice %123 {offsets = [3, 0], sizes = [1, 256], strides = [1, 1]} : vector<9x256xf32> to vector<1x256xf32>
    %686 = vector.broadcast %684 : vector<2x1xf32> to vector<2x256xf32>
    %687 = vector.broadcast %685 : vector<1x256xf32> to vector<2x256xf32>
    %688 = arith.mulf %686, %687 : vector<2x256xf32>
    %689 = arith.addf %683, %688 : vector<2x256xf32>
    %690 = vector.extract_strided_slice %4 {offsets = [0, 9], sizes = [2, 1], strides = [1, 1]} : vector<2x16xf32> to vector<2x1xf32>
    %691 = vector.extract_strided_slice %123 {offsets = [7, 0], sizes = [1, 256], strides = [1, 1]} : vector<9x256xf32> to vector<1x256xf32>
    %692 = vector.broadcast %690 : vector<2x1xf32> to vector<2x256xf32>
    %693 = vector.broadcast %691 : vector<1x256xf32> to vector<2x256xf32>
    %694 = arith.mulf %692, %693 : vector<2x256xf32>
    %695 = arith.addf %689, %694 : vector<2x256xf32>
    %cst_107 = arith.constant dense<0.000000e+00> : vector<2x256xf32>
    %696 = tpu.matmul %641, %124, %cst_107 {dimension_numbers = #tpu.dot_dimension_numbers<[1], [0], [0], [1], [0, 0, 1, 1], [], []>} : vector<2x64xf32>, vector<64x256xf32>, vector<2x256xf32> -> vector<2x256xf32>
    %697 = arith.addf %695, %696 : vector<2x256xf32>
    %698 = vector.extract_strided_slice %697 {offsets = [0, 0], sizes = [2, 64], strides = [1, 1]} : vector<2x256xf32> to vector<2x64xf32>
    %cst_108 = arith.constant 5.000000e-01 : f32
    %699 = vector.broadcast %cst_108 : f32 to vector<2x64xf32>
    %700 = arith.mulf %699, %698 : vector<2x64xf32>
    %701 = math.tanh %700 : vector<2x64xf32>
    %cst_109 = arith.constant 5.000000e-01 : f32
    %702 = vector.broadcast %cst_109 : f32 to vector<2x64xf32>
    %703 = arith.mulf %702, %701 : vector<2x64xf32>
    %cst_110 = arith.constant 5.000000e-01 : f32
    %704 = vector.broadcast %cst_110 : f32 to vector<2x64xf32>
    %705 = arith.addf %703, %704 : vector<2x64xf32>
    %706 = vector.extract_strided_slice %697 {offsets = [0, 64], sizes = [2, 64], strides = [1, 1]} : vector<2x256xf32> to vector<2x64xf32>
    %cst_111 = arith.constant 5.000000e-01 : f32
    %707 = vector.broadcast %cst_111 : f32 to vector<2x64xf32>
    %708 = arith.mulf %707, %706 : vector<2x64xf32>
    %709 = math.tanh %708 : vector<2x64xf32>
    %cst_112 = arith.constant 5.000000e-01 : f32
    %710 = vector.broadcast %cst_112 : f32 to vector<2x64xf32>
    %711 = arith.mulf %710, %709 : vector<2x64xf32>
    %cst_113 = arith.constant 5.000000e-01 : f32
    %712 = vector.broadcast %cst_113 : f32 to vector<2x64xf32>
    %713 = arith.addf %711, %712 : vector<2x64xf32>
    %714 = vector.extract_strided_slice %697 {offsets = [0, 128], sizes = [2, 64], strides = [1, 1]} : vector<2x256xf32> to vector<2x64xf32>
    %715 = math.tanh %714 : vector<2x64xf32>
    %716 = vector.extract_strided_slice %697 {offsets = [0, 192], sizes = [2, 64], strides = [1, 1]} : vector<2x256xf32> to vector<2x64xf32>
    %cst_114 = arith.constant 5.000000e-01 : f32
    %717 = vector.broadcast %cst_114 : f32 to vector<2x64xf32>
    %718 = arith.mulf %717, %716 : vector<2x64xf32>
    %719 = math.tanh %718 : vector<2x64xf32>
    %cst_115 = arith.constant 5.000000e-01 : f32
    %720 = vector.broadcast %cst_115 : f32 to vector<2x64xf32>
    %721 = arith.mulf %720, %719 : vector<2x64xf32>
    %cst_116 = arith.constant 5.000000e-01 : f32
    %722 = vector.broadcast %cst_116 : f32 to vector<2x64xf32>
    %723 = arith.addf %721, %722 : vector<2x64xf32>
    %724 = arith.mulf %713, %639 : vector<2x64xf32>
    %725 = arith.mulf %705, %715 : vector<2x64xf32>
    %726 = arith.addf %724, %725 : vector<2x64xf32>
    %727 = math.tanh %726 : vector<2x64xf32>
    %728 = arith.mulf %723, %727 : vector<2x64xf32>
    %729 = vector.extract_strided_slice %728 {offsets = [0, 0], sizes = [2, 32], strides = [1, 1]} : vector<2x64xf32> to vector<2x32xf32>
    %c0_117 = arith.constant 0 : index
    %c384 = arith.constant 384 : index
    %730 = vector.load %arg12[%c0_117, %c384] : memref<2x1024xf32, #tpu.memory_space<vmem>>, vector<2x32xf32>
    tpu.vector_store %arg12[%c0_117, %c384], %729 {strides = array<i32>} : memref<2x1024xf32, #tpu.memory_space<vmem>>, vector<2x32xf32>,
    %731 = vector.extract_strided_slice %728 {offsets = [0, 32], sizes = [2, 32], strides = [1, 1]} : vector<2x64xf32> to vector<2x32xf32>
    %c0_118 = arith.constant 0 : index
    %c608 = arith.constant 608 : index
    %732 = vector.load %arg12[%c0_118, %c608] : memref<2x1024xf32, #tpu.memory_space<vmem>>, vector<2x32xf32>
    tpu.vector_store %arg12[%c0_118, %c608], %731 {strides = array<i32>} : memref<2x1024xf32, #tpu.memory_space<vmem>>, vector<2x32xf32>,
    %733 = vector.extract_strided_slice %123 {offsets = [8, 0], sizes = [1, 256], strides = [1, 1]} : vector<9x256xf32> to vector<1x256xf32>
    %734 = vector.extract_strided_slice %122 {offsets = [0, 7], sizes = [2, 1], strides = [1, 1]} : vector<2x16xf32> to vector<2x1xf32>
    %735 = vector.extract_strided_slice %123 {offsets = [0, 0], sizes = [1, 256], strides = [1, 1]} : vector<9x256xf32> to vector<1x256xf32>
    %736 = vector.broadcast %734 : vector<2x1xf32> to vector<2x256xf32>
    %737 = vector.broadcast %735 : vector<1x256xf32> to vector<2x256xf32>
    %738 = arith.mulf %736, %737 : vector<2x256xf32>
    %739 = vector.broadcast %733 : vector<1x256xf32> to vector<2x256xf32>
    %740 = arith.addf %739, %738 : vector<2x256xf32>
    %741 = vector.extract_strided_slice %122 {offsets = [0, 8], sizes = [2, 1], strides = [1, 1]} : vector<2x16xf32> to vector<2x1xf32>
    %742 = vector.extract_strided_slice %123 {offsets = [4, 0], sizes = [1, 256], strides = [1, 1]} : vector<9x256xf32> to vector<1x256xf32>
    %743 = vector.broadcast %741 : vector<2x1xf32> to vector<2x256xf32>
    %744 = vector.broadcast %742 : vector<1x256xf32> to vector<2x256xf32>
    %745 = arith.mulf %743, %744 : vector<2x256xf32>
    %746 = arith.addf %740, %745 : vector<2x256xf32>
    %747 = vector.extract_strided_slice %2 {offsets = [0, 7], sizes = [2, 1], strides = [1, 1]} : vector<2x16xf32> to vector<2x1xf32>
    %748 = vector.extract_strided_slice %123 {offsets = [1, 0], sizes = [1, 256], strides = [1, 1]} : vector<9x256xf32> to vector<1x256xf32>
    %749 = vector.broadcast %747 : vector<2x1xf32> to vector<2x256xf32>
    %750 = vector.broadcast %748 : vector<1x256xf32> to vector<2x256xf32>
    %751 = arith.mulf %749, %750 : vector<2x256xf32>
    %752 = arith.addf %746, %751 : vector<2x256xf32>
    %753 = vector.extract_strided_slice %2 {offsets = [0, 8], sizes = [2, 1], strides = [1, 1]} : vector<2x16xf32> to vector<2x1xf32>
    %754 = vector.extract_strided_slice %123 {offsets = [5, 0], sizes = [1, 256], strides = [1, 1]} : vector<9x256xf32> to vector<1x256xf32>
    %755 = vector.broadcast %753 : vector<2x1xf32> to vector<2x256xf32>
    %756 = vector.broadcast %754 : vector<1x256xf32> to vector<2x256xf32>
    %757 = arith.mulf %755, %756 : vector<2x256xf32>
    %758 = arith.addf %752, %757 : vector<2x256xf32>
    %759 = vector.extract_strided_slice %3 {offsets = [0, 7], sizes = [2, 1], strides = [1, 1]} : vector<2x16xf32> to vector<2x1xf32>
    %760 = vector.extract_strided_slice %123 {offsets = [2, 0], sizes = [1, 256], strides = [1, 1]} : vector<9x256xf32> to vector<1x256xf32>
    %761 = vector.broadcast %759 : vector<2x1xf32> to vector<2x256xf32>
    %762 = vector.broadcast %760 : vector<1x256xf32> to vector<2x256xf32>
    %763 = arith.mulf %761, %762 : vector<2x256xf32>
    %764 = arith.addf %758, %763 : vector<2x256xf32>
    %765 = vector.extract_strided_slice %3 {offsets = [0, 8], sizes = [2, 1], strides = [1, 1]} : vector<2x16xf32> to vector<2x1xf32>
    %766 = vector.extract_strided_slice %123 {offsets = [6, 0], sizes = [1, 256], strides = [1, 1]} : vector<9x256xf32> to vector<1x256xf32>
    %767 = vector.broadcast %765 : vector<2x1xf32> to vector<2x256xf32>
    %768 = vector.broadcast %766 : vector<1x256xf32> to vector<2x256xf32>
    %769 = arith.mulf %767, %768 : vector<2x256xf32>
    %770 = arith.addf %764, %769 : vector<2x256xf32>
    %771 = vector.extract_strided_slice %4 {offsets = [0, 7], sizes = [2, 1], strides = [1, 1]} : vector<2x16xf32> to vector<2x1xf32>
    %772 = vector.extract_strided_slice %123 {offsets = [3, 0], sizes = [1, 256], strides = [1, 1]} : vector<9x256xf32> to vector<1x256xf32>
    %773 = vector.broadcast %771 : vector<2x1xf32> to vector<2x256xf32>
    %774 = vector.broadcast %772 : vector<1x256xf32> to vector<2x256xf32>
    %775 = arith.mulf %773, %774 : vector<2x256xf32>
    %776 = arith.addf %770, %775 : vector<2x256xf32>
    %777 = vector.extract_strided_slice %4 {offsets = [0, 8], sizes = [2, 1], strides = [1, 1]} : vector<2x16xf32> to vector<2x1xf32>
    %778 = vector.extract_strided_slice %123 {offsets = [7, 0], sizes = [1, 256], strides = [1, 1]} : vector<9x256xf32> to vector<1x256xf32>
    %779 = vector.broadcast %777 : vector<2x1xf32> to vector<2x256xf32>
    %780 = vector.broadcast %778 : vector<1x256xf32> to vector<2x256xf32>
    %781 = arith.mulf %779, %780 : vector<2x256xf32>
    %782 = arith.addf %776, %781 : vector<2x256xf32>
    %cst_119 = arith.constant dense<0.000000e+00> : vector<2x256xf32>
    %783 = tpu.matmul %728, %124, %cst_119 {dimension_numbers = #tpu.dot_dimension_numbers<[1], [0], [0], [1], [0, 0, 1, 1], [], []>} : vector<2x64xf32>, vector<64x256xf32>, vector<2x256xf32> -> vector<2x256xf32>
    %784 = arith.addf %782, %783 : vector<2x256xf32>
    %785 = vector.extract_strided_slice %784 {offsets = [0, 0], sizes = [2, 64], strides = [1, 1]} : vector<2x256xf32> to vector<2x64xf32>
    %cst_120 = arith.constant 5.000000e-01 : f32
    %786 = vector.broadcast %cst_120 : f32 to vector<2x64xf32>
    %787 = arith.mulf %786, %785 : vector<2x64xf32>
    %788 = math.tanh %787 : vector<2x64xf32>
    %cst_121 = arith.constant 5.000000e-01 : f32
    %789 = vector.broadcast %cst_121 : f32 to vector<2x64xf32>
    %790 = arith.mulf %789, %788 : vector<2x64xf32>
    %cst_122 = arith.constant 5.000000e-01 : f32
    %791 = vector.broadcast %cst_122 : f32 to vector<2x64xf32>
    %792 = arith.addf %790, %791 : vector<2x64xf32>
    %793 = vector.extract_strided_slice %784 {offsets = [0, 64], sizes = [2, 64], strides = [1, 1]} : vector<2x256xf32> to vector<2x64xf32>
    %cst_123 = arith.constant 5.000000e-01 : f32
    %794 = vector.broadcast %cst_123 : f32 to vector<2x64xf32>
    %795 = arith.mulf %794, %793 : vector<2x64xf32>
    %796 = math.tanh %795 : vector<2x64xf32>
    %cst_124 = arith.constant 5.000000e-01 : f32
    %797 = vector.broadcast %cst_124 : f32 to vector<2x64xf32>
    %798 = arith.mulf %797, %796 : vector<2x64xf32>
    %cst_125 = arith.constant 5.000000e-01 : f32
    %799 = vector.broadcast %cst_125 : f32 to vector<2x64xf32>
    %800 = arith.addf %798, %799 : vector<2x64xf32>
    %801 = vector.extract_strided_slice %784 {offsets = [0, 128], sizes = [2, 64], strides = [1, 1]} : vector<2x256xf32> to vector<2x64xf32>
    %802 = math.tanh %801 : vector<2x64xf32>
    %803 = vector.extract_strided_slice %784 {offsets = [0, 192], sizes = [2, 64], strides = [1, 1]} : vector<2x256xf32> to vector<2x64xf32>
    %cst_126 = arith.constant 5.000000e-01 : f32
    %804 = vector.broadcast %cst_126 : f32 to vector<2x64xf32>
    %805 = arith.mulf %804, %803 : vector<2x64xf32>
    %806 = math.tanh %805 : vector<2x64xf32>
    %cst_127 = arith.constant 5.000000e-01 : f32
    %807 = vector.broadcast %cst_127 : f32 to vector<2x64xf32>
    %808 = arith.mulf %807, %806 : vector<2x64xf32>
    %cst_128 = arith.constant 5.000000e-01 : f32
    %809 = vector.broadcast %cst_128 : f32 to vector<2x64xf32>
    %810 = arith.addf %808, %809 : vector<2x64xf32>
    %811 = arith.mulf %800, %726 : vector<2x64xf32>
    %812 = arith.mulf %792, %802 : vector<2x64xf32>
    %813 = arith.addf %811, %812 : vector<2x64xf32>
    %814 = math.tanh %813 : vector<2x64xf32>
    %815 = arith.mulf %810, %814 : vector<2x64xf32>
    %816 = vector.extract_strided_slice %815 {offsets = [0, 0], sizes = [2, 32], strides = [1, 1]} : vector<2x64xf32> to vector<2x32xf32>
    %c0_129 = arith.constant 0 : index
    %c448 = arith.constant 448 : index
    %817 = vector.load %arg12[%c0_129, %c448] : memref<2x1024xf32, #tpu.memory_space<vmem>>, vector<2x32xf32>
    tpu.vector_store %arg12[%c0_129, %c448], %816 {strides = array<i32>} : memref<2x1024xf32, #tpu.memory_space<vmem>>, vector<2x32xf32>,
    %818 = vector.extract_strided_slice %815 {offsets = [0, 32], sizes = [2, 32], strides = [1, 1]} : vector<2x64xf32> to vector<2x32xf32>
    %c0_130 = arith.constant 0 : index
    %c544 = arith.constant 544 : index
    %819 = vector.load %arg12[%c0_130, %c544] : memref<2x1024xf32, #tpu.memory_space<vmem>>, vector<2x32xf32>
    tpu.vector_store %arg12[%c0_130, %c544], %818 {strides = array<i32>} : memref<2x1024xf32, #tpu.memory_space<vmem>>, vector<2x32xf32>,
    %820 = vector.extract_strided_slice %123 {offsets = [8, 0], sizes = [1, 256], strides = [1, 1]} : vector<9x256xf32> to vector<1x256xf32>
    %821 = vector.extract_strided_slice %122 {offsets = [0, 8], sizes = [2, 1], strides = [1, 1]} : vector<2x16xf32> to vector<2x1xf32>
    %822 = vector.extract_strided_slice %123 {offsets = [0, 0], sizes = [1, 256], strides = [1, 1]} : vector<9x256xf32> to vector<1x256xf32>
    %823 = vector.broadcast %821 : vector<2x1xf32> to vector<2x256xf32>
    %824 = vector.broadcast %822 : vector<1x256xf32> to vector<2x256xf32>
    %825 = arith.mulf %823, %824 : vector<2x256xf32>
    %826 = vector.broadcast %820 : vector<1x256xf32> to vector<2x256xf32>
    %827 = arith.addf %826, %825 : vector<2x256xf32>
    %828 = vector.extract_strided_slice %122 {offsets = [0, 7], sizes = [2, 1], strides = [1, 1]} : vector<2x16xf32> to vector<2x1xf32>
    %829 = vector.extract_strided_slice %123 {offsets = [4, 0], sizes = [1, 256], strides = [1, 1]} : vector<9x256xf32> to vector<1x256xf32>
    %830 = vector.broadcast %828 : vector<2x1xf32> to vector<2x256xf32>
    %831 = vector.broadcast %829 : vector<1x256xf32> to vector<2x256xf32>
    %832 = arith.mulf %830, %831 : vector<2x256xf32>
    %833 = arith.addf %827, %832 : vector<2x256xf32>
    %834 = vector.extract_strided_slice %2 {offsets = [0, 8], sizes = [2, 1], strides = [1, 1]} : vector<2x16xf32> to vector<2x1xf32>
    %835 = vector.extract_strided_slice %123 {offsets = [1, 0], sizes = [1, 256], strides = [1, 1]} : vector<9x256xf32> to vector<1x256xf32>
    %836 = vector.broadcast %834 : vector<2x1xf32> to vector<2x256xf32>
    %837 = vector.broadcast %835 : vector<1x256xf32> to vector<2x256xf32>
    %838 = arith.mulf %836, %837 : vector<2x256xf32>
    %839 = arith.addf %833, %838 : vector<2x256xf32>
    %840 = vector.extract_strided_slice %2 {offsets = [0, 7], sizes = [2, 1], strides = [1, 1]} : vector<2x16xf32> to vector<2x1xf32>
    %841 = vector.extract_strided_slice %123 {offsets = [5, 0], sizes = [1, 256], strides = [1, 1]} : vector<9x256xf32> to vector<1x256xf32>
    %842 = vector.broadcast %840 : vector<2x1xf32> to vector<2x256xf32>
    %843 = vector.broadcast %841 : vector<1x256xf32> to vector<2x256xf32>
    %844 = arith.mulf %842, %843 : vector<2x256xf32>
    %845 = arith.addf %839, %844 : vector<2x256xf32>
    %846 = vector.extract_strided_slice %3 {offsets = [0, 8], sizes = [2, 1], strides = [1, 1]} : vector<2x16xf32> to vector<2x1xf32>
    %847 = vector.extract_strided_slice %123 {offsets = [2, 0], sizes = [1, 256], strides = [1, 1]} : vector<9x256xf32> to vector<1x256xf32>
    %848 = vector.broadcast %846 : vector<2x1xf32> to vector<2x256xf32>
    %849 = vector.broadcast %847 : vector<1x256xf32> to vector<2x256xf32>
    %850 = arith.mulf %848, %849 : vector<2x256xf32>
    %851 = arith.addf %845, %850 : vector<2x256xf32>
    %852 = vector.extract_strided_slice %3 {offsets = [0, 7], sizes = [2, 1], strides = [1, 1]} : vector<2x16xf32> to vector<2x1xf32>
    %853 = vector.extract_strided_slice %123 {offsets = [6, 0], sizes = [1, 256], strides = [1, 1]} : vector<9x256xf32> to vector<1x256xf32>
    %854 = vector.broadcast %852 : vector<2x1xf32> to vector<2x256xf32>
    %855 = vector.broadcast %853 : vector<1x256xf32> to vector<2x256xf32>
    %856 = arith.mulf %854, %855 : vector<2x256xf32>
    %857 = arith.addf %851, %856 : vector<2x256xf32>
    %858 = vector.extract_strided_slice %4 {offsets = [0, 8], sizes = [2, 1], strides = [1, 1]} : vector<2x16xf32> to vector<2x1xf32>
    %859 = vector.extract_strided_slice %123 {offsets = [3, 0], sizes = [1, 256], strides = [1, 1]} : vector<9x256xf32> to vector<1x256xf32>
    %860 = vector.broadcast %858 : vector<2x1xf32> to vector<2x256xf32>
    %861 = vector.broadcast %859 : vector<1x256xf32> to vector<2x256xf32>
    %862 = arith.mulf %860, %861 : vector<2x256xf32>
    %863 = arith.addf %857, %862 : vector<2x256xf32>
    %864 = vector.extract_strided_slice %4 {offsets = [0, 7], sizes = [2, 1], strides = [1, 1]} : vector<2x16xf32> to vector<2x1xf32>
    %865 = vector.extract_strided_slice %123 {offsets = [7, 0], sizes = [1, 256], strides = [1, 1]} : vector<9x256xf32> to vector<1x256xf32>
    %866 = vector.broadcast %864 : vector<2x1xf32> to vector<2x256xf32>
    %867 = vector.broadcast %865 : vector<1x256xf32> to vector<2x256xf32>
    %868 = arith.mulf %866, %867 : vector<2x256xf32>
    %869 = arith.addf %863, %868 : vector<2x256xf32>
    %cst_131 = arith.constant dense<0.000000e+00> : vector<2x256xf32>
    %870 = tpu.matmul %815, %124, %cst_131 {dimension_numbers = #tpu.dot_dimension_numbers<[1], [0], [0], [1], [0, 0, 1, 1], [], []>} : vector<2x64xf32>, vector<64x256xf32>, vector<2x256xf32> -> vector<2x256xf32>
    %871 = arith.addf %869, %870 : vector<2x256xf32>
    %872 = vector.extract_strided_slice %871 {offsets = [0, 0], sizes = [2, 64], strides = [1, 1]} : vector<2x256xf32> to vector<2x64xf32>
    %cst_132 = arith.constant 5.000000e-01 : f32
    %873 = vector.broadcast %cst_132 : f32 to vector<2x64xf32>
    %874 = arith.mulf %873, %872 : vector<2x64xf32>
    %875 = math.tanh %874 : vector<2x64xf32>
    %cst_133 = arith.constant 5.000000e-01 : f32
    %876 = vector.broadcast %cst_133 : f32 to vector<2x64xf32>
    %877 = arith.mulf %876, %875 : vector<2x64xf32>
    %cst_134 = arith.constant 5.000000e-01 : f32
    %878 = vector.broadcast %cst_134 : f32 to vector<2x64xf32>
    %879 = arith.addf %877, %878 : vector<2x64xf32>
    %880 = vector.extract_strided_slice %871 {offsets = [0, 64], sizes = [2, 64], strides = [1, 1]} : vector<2x256xf32> to vector<2x64xf32>
    %cst_135 = arith.constant 5.000000e-01 : f32
    %881 = vector.broadcast %cst_135 : f32 to vector<2x64xf32>
    %882 = arith.mulf %881, %880 : vector<2x64xf32>
    %883 = math.tanh %882 : vector<2x64xf32>
    %cst_136 = arith.constant 5.000000e-01 : f32
    %884 = vector.broadcast %cst_136 : f32 to vector<2x64xf32>
    %885 = arith.mulf %884, %883 : vector<2x64xf32>
    %cst_137 = arith.constant 5.000000e-01 : f32
    %886 = vector.broadcast %cst_137 : f32 to vector<2x64xf32>
    %887 = arith.addf %885, %886 : vector<2x64xf32>
    %888 = vector.extract_strided_slice %871 {offsets = [0, 128], sizes = [2, 64], strides = [1, 1]} : vector<2x256xf32> to vector<2x64xf32>
    %889 = math.tanh %888 : vector<2x64xf32>
    %890 = vector.extract_strided_slice %871 {offsets = [0, 192], sizes = [2, 64], strides = [1, 1]} : vector<2x256xf32> to vector<2x64xf32>
    %cst_138 = arith.constant 5.000000e-01 : f32
    %891 = vector.broadcast %cst_138 : f32 to vector<2x64xf32>
    %892 = arith.mulf %891, %890 : vector<2x64xf32>
    %893 = math.tanh %892 : vector<2x64xf32>
    %cst_139 = arith.constant 5.000000e-01 : f32
    %894 = vector.broadcast %cst_139 : f32 to vector<2x64xf32>
    %895 = arith.mulf %894, %893 : vector<2x64xf32>
    %cst_140 = arith.constant 5.000000e-01 : f32
    %896 = vector.broadcast %cst_140 : f32 to vector<2x64xf32>
    %897 = arith.addf %895, %896 : vector<2x64xf32>
    %898 = arith.mulf %887, %813 : vector<2x64xf32>
    %899 = arith.mulf %879, %889 : vector<2x64xf32>
    %900 = arith.addf %898, %899 : vector<2x64xf32>
    %901 = math.tanh %900 : vector<2x64xf32>
    %902 = arith.mulf %897, %901 : vector<2x64xf32>
    %903 = vector.extract_strided_slice %902 {offsets = [0, 0], sizes = [2, 32], strides = [1, 1]} : vector<2x64xf32> to vector<2x32xf32>
    %c0_141 = arith.constant 0 : index
    %c512 = arith.constant 512 : index
    %904 = vector.load %arg12[%c0_141, %c512] : memref<2x1024xf32, #tpu.memory_space<vmem>>, vector<2x32xf32>
    tpu.vector_store %arg12[%c0_141, %c512], %903 {strides = array<i32>} : memref<2x1024xf32, #tpu.memory_space<vmem>>, vector<2x32xf32>,
    %905 = vector.extract_strided_slice %902 {offsets = [0, 32], sizes = [2, 32], strides = [1, 1]} : vector<2x64xf32> to vector<2x32xf32>
    %c0_142 = arith.constant 0 : index
    %c480 = arith.constant 480 : index
    %906 = vector.load %arg12[%c0_142, %c480] : memref<2x1024xf32, #tpu.memory_space<vmem>>, vector<2x32xf32>
    tpu.vector_store %arg12[%c0_142, %c480], %905 {strides = array<i32>} : memref<2x1024xf32, #tpu.memory_space<vmem>>, vector<2x32xf32>,
    %907 = vector.extract_strided_slice %123 {offsets = [8, 0], sizes = [1, 256], strides = [1, 1]} : vector<9x256xf32> to vector<1x256xf32>
    %908 = vector.extract_strided_slice %122 {offsets = [0, 9], sizes = [2, 1], strides = [1, 1]} : vector<2x16xf32> to vector<2x1xf32>
    %909 = vector.extract_strided_slice %123 {offsets = [0, 0], sizes = [1, 256], strides = [1, 1]} : vector<9x256xf32> to vector<1x256xf32>
    %910 = vector.broadcast %908 : vector<2x1xf32> to vector<2x256xf32>
    %911 = vector.broadcast %909 : vector<1x256xf32> to vector<2x256xf32>
    %912 = arith.mulf %910, %911 : vector<2x256xf32>
    %913 = vector.broadcast %907 : vector<1x256xf32> to vector<2x256xf32>
    %914 = arith.addf %913, %912 : vector<2x256xf32>
    %915 = vector.extract_strided_slice %122 {offsets = [0, 6], sizes = [2, 1], strides = [1, 1]} : vector<2x16xf32> to vector<2x1xf32>
    %916 = vector.extract_strided_slice %123 {offsets = [4, 0], sizes = [1, 256], strides = [1, 1]} : vector<9x256xf32> to vector<1x256xf32>
    %917 = vector.broadcast %915 : vector<2x1xf32> to vector<2x256xf32>
    %918 = vector.broadcast %916 : vector<1x256xf32> to vector<2x256xf32>
    %919 = arith.mulf %917, %918 : vector<2x256xf32>
    %920 = arith.addf %914, %919 : vector<2x256xf32>
    %921 = vector.extract_strided_slice %2 {offsets = [0, 9], sizes = [2, 1], strides = [1, 1]} : vector<2x16xf32> to vector<2x1xf32>
    %922 = vector.extract_strided_slice %123 {offsets = [1, 0], sizes = [1, 256], strides = [1, 1]} : vector<9x256xf32> to vector<1x256xf32>
    %923 = vector.broadcast %921 : vector<2x1xf32> to vector<2x256xf32>
    %924 = vector.broadcast %922 : vector<1x256xf32> to vector<2x256xf32>
    %925 = arith.mulf %923, %924 : vector<2x256xf32>
    %926 = arith.addf %920, %925 : vector<2x256xf32>
    %927 = vector.extract_strided_slice %2 {offsets = [0, 6], sizes = [2, 1], strides = [1, 1]} : vector<2x16xf32> to vector<2x1xf32>
    %928 = vector.extract_strided_slice %123 {offsets = [5, 0], sizes = [1, 256], strides = [1, 1]} : vector<9x256xf32> to vector<1x256xf32>
    %929 = vector.broadcast %927 : vector<2x1xf32> to vector<2x256xf32>
    %930 = vector.broadcast %928 : vector<1x256xf32> to vector<2x256xf32>
    %931 = arith.mulf %929, %930 : vector<2x256xf32>
    %932 = arith.addf %926, %931 : vector<2x256xf32>
    %933 = vector.extract_strided_slice %3 {offsets = [0, 9], sizes = [2, 1], strides = [1, 1]} : vector<2x16xf32> to vector<2x1xf32>
    %934 = vector.extract_strided_slice %123 {offsets = [2, 0], sizes = [1, 256], strides = [1, 1]} : vector<9x256xf32> to vector<1x256xf32>
    %935 = vector.broadcast %933 : vector<2x1xf32> to vector<2x256xf32>
    %936 = vector.broadcast %934 : vector<1x256xf32> to vector<2x256xf32>
    %937 = arith.mulf %935, %936 : vector<2x256xf32>
    %938 = arith.addf %932, %937 : vector<2x256xf32>
    %939 = vector.extract_strided_slice %3 {offsets = [0, 6], sizes = [2, 1], strides = [1, 1]} : vector<2x16xf32> to vector<2x1xf32>
    %940 = vector.extract_strided_slice %123 {offsets = [6, 0], sizes = [1, 256], strides = [1, 1]} : vector<9x256xf32> to vector<1x256xf32>
    %941 = vector.broadcast %939 : vector<2x1xf32> to vector<2x256xf32>
    %942 = vector.broadcast %940 : vector<1x256xf32> to vector<2x256xf32>
    %943 = arith.mulf %941, %942 : vector<2x256xf32>
    %944 = arith.addf %938, %943 : vector<2x256xf32>
    %945 = vector.extract_strided_slice %4 {offsets = [0, 9], sizes = [2, 1], strides = [1, 1]} : vector<2x16xf32> to vector<2x1xf32>
    %946 = vector.extract_strided_slice %123 {offsets = [3, 0], sizes = [1, 256], strides = [1, 1]} : vector<9x256xf32> to vector<1x256xf32>
    %947 = vector.broadcast %945 : vector<2x1xf32> to vector<2x256xf32>
    %948 = vector.broadcast %946 : vector<1x256xf32> to vector<2x256xf32>
    %949 = arith.mulf %947, %948 : vector<2x256xf32>
    %950 = arith.addf %944, %949 : vector<2x256xf32>
    %951 = vector.extract_strided_slice %4 {offsets = [0, 6], sizes = [2, 1], strides = [1, 1]} : vector<2x16xf32> to vector<2x1xf32>
    %952 = vector.extract_strided_slice %123 {offsets = [7, 0], sizes = [1, 256], strides = [1, 1]} : vector<9x256xf32> to vector<1x256xf32>
    %953 = vector.broadcast %951 : vector<2x1xf32> to vector<2x256xf32>
    %954 = vector.broadcast %952 : vector<1x256xf32> to vector<2x256xf32>
    %955 = arith.mulf %953, %954 : vector<2x256xf32>
    %956 = arith.addf %950, %955 : vector<2x256xf32>
    %cst_143 = arith.constant dense<0.000000e+00> : vector<2x256xf32>
    %957 = tpu.matmul %902, %124, %cst_143 {dimension_numbers = #tpu.dot_dimension_numbers<[1], [0], [0], [1], [0, 0, 1, 1], [], []>} : vector<2x64xf32>, vector<64x256xf32>, vector<2x256xf32> -> vector<2x256xf32>
    %958 = arith.addf %956, %957 : vector<2x256xf32>
    %959 = vector.extract_strided_slice %958 {offsets = [0, 0], sizes = [2, 64], strides = [1, 1]} : vector<2x256xf32> to vector<2x64xf32>
    %cst_144 = arith.constant 5.000000e-01 : f32
    %960 = vector.broadcast %cst_144 : f32 to vector<2x64xf32>
    %961 = arith.mulf %960, %959 : vector<2x64xf32>
    %962 = math.tanh %961 : vector<2x64xf32>
    %cst_145 = arith.constant 5.000000e-01 : f32
    %963 = vector.broadcast %cst_145 : f32 to vector<2x64xf32>
    %964 = arith.mulf %963, %962 : vector<2x64xf32>
    %cst_146 = arith.constant 5.000000e-01 : f32
    %965 = vector.broadcast %cst_146 : f32 to vector<2x64xf32>
    %966 = arith.addf %964, %965 : vector<2x64xf32>
    %967 = vector.extract_strided_slice %958 {offsets = [0, 64], sizes = [2, 64], strides = [1, 1]} : vector<2x256xf32> to vector<2x64xf32>
    %cst_147 = arith.constant 5.000000e-01 : f32
    %968 = vector.broadcast %cst_147 : f32 to vector<2x64xf32>
    %969 = arith.mulf %968, %967 : vector<2x64xf32>
    %970 = math.tanh %969 : vector<2x64xf32>
    %cst_148 = arith.constant 5.000000e-01 : f32
    %971 = vector.broadcast %cst_148 : f32 to vector<2x64xf32>
    %972 = arith.mulf %971, %970 : vector<2x64xf32>
    %cst_149 = arith.constant 5.000000e-01 : f32
    %973 = vector.broadcast %cst_149 : f32 to vector<2x64xf32>
    %974 = arith.addf %972, %973 : vector<2x64xf32>
    %975 = vector.extract_strided_slice %958 {offsets = [0, 128], sizes = [2, 64], strides = [1, 1]} : vector<2x256xf32> to vector<2x64xf32>
    %976 = math.tanh %975 : vector<2x64xf32>
    %977 = vector.extract_strided_slice %958 {offsets = [0, 192], sizes = [2, 64], strides = [1, 1]} : vector<2x256xf32> to vector<2x64xf32>
    %cst_150 = arith.constant 5.000000e-01 : f32
    %978 = vector.broadcast %cst_150 : f32 to vector<2x64xf32>
    %979 = arith.mulf %978, %977 : vector<2x64xf32>
    %980 = math.tanh %979 : vector<2x64xf32>
    %cst_151 = arith.constant 5.000000e-01 : f32
    %981 = vector.broadcast %cst_151 : f32 to vector<2x64xf32>
    %982 = arith.mulf %981, %980 : vector<2x64xf32>
    %cst_152 = arith.constant 5.000000e-01 : f32
    %983 = vector.broadcast %cst_152 : f32 to vector<2x64xf32>
    %984 = arith.addf %982, %983 : vector<2x64xf32>
    %985 = arith.mulf %974, %900 : vector<2x64xf32>
    %986 = arith.mulf %966, %976 : vector<2x64xf32>
    %987 = arith.addf %985, %986 : vector<2x64xf32>
    %988 = math.tanh %987 : vector<2x64xf32>
    %989 = arith.mulf %984, %988 : vector<2x64xf32>
    %990 = vector.extract_strided_slice %989 {offsets = [0, 0], sizes = [2, 32], strides = [1, 1]} : vector<2x64xf32> to vector<2x32xf32>
    %c0_153 = arith.constant 0 : index
    %c576 = arith.constant 576 : index
    %991 = vector.load %arg12[%c0_153, %c576] : memref<2x1024xf32, #tpu.memory_space<vmem>>, vector<2x32xf32>
    tpu.vector_store %arg12[%c0_153, %c576], %990 {strides = array<i32>} : memref<2x1024xf32, #tpu.memory_space<vmem>>, vector<2x32xf32>,
    %992 = vector.extract_strided_slice %989 {offsets = [0, 32], sizes = [2, 32], strides = [1, 1]} : vector<2x64xf32> to vector<2x32xf32>
    %c0_154 = arith.constant 0 : index
    %c416 = arith.constant 416 : index
    %993 = vector.load %arg12[%c0_154, %c416] : memref<2x1024xf32, #tpu.memory_space<vmem>>, vector<2x32xf32>
    tpu.vector_store %arg12[%c0_154, %c416], %992 {strides = array<i32>} : memref<2x1024xf32, #tpu.memory_space<vmem>>, vector<2x32xf32>,
    %994 = vector.extract_strided_slice %123 {offsets = [8, 0], sizes = [1, 256], strides = [1, 1]} : vector<9x256xf32> to vector<1x256xf32>
    %995 = vector.extract_strided_slice %122 {offsets = [0, 10], sizes = [2, 1], strides = [1, 1]} : vector<2x16xf32> to vector<2x1xf32>
    %996 = vector.extract_strided_slice %123 {offsets = [0, 0], sizes = [1, 256], strides = [1, 1]} : vector<9x256xf32> to vector<1x256xf32>
    %997 = vector.broadcast %995 : vector<2x1xf32> to vector<2x256xf32>
    %998 = vector.broadcast %996 : vector<1x256xf32> to vector<2x256xf32>
    %999 = arith.mulf %997, %998 : vector<2x256xf32>
    %1000 = vector.broadcast %994 : vector<1x256xf32> to vector<2x256xf32>
    %1001 = arith.addf %1000, %999 : vector<2x256xf32>
    %1002 = vector.extract_strided_slice %122 {offsets = [0, 5], sizes = [2, 1], strides = [1, 1]} : vector<2x16xf32> to vector<2x1xf32>
    %1003 = vector.extract_strided_slice %123 {offsets = [4, 0], sizes = [1, 256], strides = [1, 1]} : vector<9x256xf32> to vector<1x256xf32>
    %1004 = vector.broadcast %1002 : vector<2x1xf32> to vector<2x256xf32>
    %1005 = vector.broadcast %1003 : vector<1x256xf32> to vector<2x256xf32>
    %1006 = arith.mulf %1004, %1005 : vector<2x256xf32>
    %1007 = arith.addf %1001, %1006 : vector<2x256xf32>
    %1008 = vector.extract_strided_slice %2 {offsets = [0, 10], sizes = [2, 1], strides = [1, 1]} : vector<2x16xf32> to vector<2x1xf32>
    %1009 = vector.extract_strided_slice %123 {offsets = [1, 0], sizes = [1, 256], strides = [1, 1]} : vector<9x256xf32> to vector<1x256xf32>
    %1010 = vector.broadcast %1008 : vector<2x1xf32> to vector<2x256xf32>
    %1011 = vector.broadcast %1009 : vector<1x256xf32> to vector<2x256xf32>
    %1012 = arith.mulf %1010, %1011 : vector<2x256xf32>
    %1013 = arith.addf %1007, %1012 : vector<2x256xf32>
    %1014 = vector.extract_strided_slice %2 {offsets = [0, 5], sizes = [2, 1], strides = [1, 1]} : vector<2x16xf32> to vector<2x1xf32>
    %1015 = vector.extract_strided_slice %123 {offsets = [5, 0], sizes = [1, 256], strides = [1, 1]} : vector<9x256xf32> to vector<1x256xf32>
    %1016 = vector.broadcast %1014 : vector<2x1xf32> to vector<2x256xf32>
    %1017 = vector.broadcast %1015 : vector<1x256xf32> to vector<2x256xf32>
    %1018 = arith.mulf %1016, %1017 : vector<2x256xf32>
    %1019 = arith.addf %1013, %1018 : vector<2x256xf32>
    %1020 = vector.extract_strided_slice %3 {offsets = [0, 10], sizes = [2, 1], strides = [1, 1]} : vector<2x16xf32> to vector<2x1xf32>
    %1021 = vector.extract_strided_slice %123 {offsets = [2, 0], sizes = [1, 256], strides = [1, 1]} : vector<9x256xf32> to vector<1x256xf32>
    %1022 = vector.broadcast %1020 : vector<2x1xf32> to vector<2x256xf32>
    %1023 = vector.broadcast %1021 : vector<1x256xf32> to vector<2x256xf32>
    %1024 = arith.mulf %1022, %1023 : vector<2x256xf32>
    %1025 = arith.addf %1019, %1024 : vector<2x256xf32>
    %1026 = vector.extract_strided_slice %3 {offsets = [0, 5], sizes = [2, 1], strides = [1, 1]} : vector<2x16xf32> to vector<2x1xf32>
    %1027 = vector.extract_strided_slice %123 {offsets = [6, 0], sizes = [1, 256], strides = [1, 1]} : vector<9x256xf32> to vector<1x256xf32>
    %1028 = vector.broadcast %1026 : vector<2x1xf32> to vector<2x256xf32>
    %1029 = vector.broadcast %1027 : vector<1x256xf32> to vector<2x256xf32>
    %1030 = arith.mulf %1028, %1029 : vector<2x256xf32>
    %1031 = arith.addf %1025, %1030 : vector<2x256xf32>
    %1032 = vector.extract_strided_slice %4 {offsets = [0, 10], sizes = [2, 1], strides = [1, 1]} : vector<2x16xf32> to vector<2x1xf32>
    %1033 = vector.extract_strided_slice %123 {offsets = [3, 0], sizes = [1, 256], strides = [1, 1]} : vector<9x256xf32> to vector<1x256xf32>
    %1034 = vector.broadcast %1032 : vector<2x1xf32> to vector<2x256xf32>
    %1035 = vector.broadcast %1033 : vector<1x256xf32> to vector<2x256xf32>
    %1036 = arith.mulf %1034, %1035 : vector<2x256xf32>
    %1037 = arith.addf %1031, %1036 : vector<2x256xf32>
    %1038 = vector.extract_strided_slice %4 {offsets = [0, 5], sizes = [2, 1], strides = [1, 1]} : vector<2x16xf32> to vector<2x1xf32>
    %1039 = vector.extract_strided_slice %123 {offsets = [7, 0], sizes = [1, 256], strides = [1, 1]} : vector<9x256xf32> to vector<1x256xf32>
    %1040 = vector.broadcast %1038 : vector<2x1xf32> to vector<2x256xf32>
    %1041 = vector.broadcast %1039 : vector<1x256xf32> to vector<2x256xf32>
    %1042 = arith.mulf %1040, %1041 : vector<2x256xf32>
    %1043 = arith.addf %1037, %1042 : vector<2x256xf32>
    %cst_155 = arith.constant dense<0.000000e+00> : vector<2x256xf32>
    %1044 = tpu.matmul %989, %124, %cst_155 {dimension_numbers = #tpu.dot_dimension_numbers<[1], [0], [0], [1], [0, 0, 1, 1], [], []>} : vector<2x64xf32>, vector<64x256xf32>, vector<2x256xf32> -> vector<2x256xf32>
    %1045 = arith.addf %1043, %1044 : vector<2x256xf32>
    %1046 = vector.extract_strided_slice %1045 {offsets = [0, 0], sizes = [2, 64], strides = [1, 1]} : vector<2x256xf32> to vector<2x64xf32>
    %cst_156 = arith.constant 5.000000e-01 : f32
    %1047 = vector.broadcast %cst_156 : f32 to vector<2x64xf32>
    %1048 = arith.mulf %1047, %1046 : vector<2x64xf32>
    %1049 = math.tanh %1048 : vector<2x64xf32>
    %cst_157 = arith.constant 5.000000e-01 : f32
    %1050 = vector.broadcast %cst_157 : f32 to vector<2x64xf32>
    %1051 = arith.mulf %1050, %1049 : vector<2x64xf32>
    %cst_158 = arith.constant 5.000000e-01 : f32
    %1052 = vector.broadcast %cst_158 : f32 to vector<2x64xf32>
    %1053 = arith.addf %1051, %1052 : vector<2x64xf32>
    %1054 = vector.extract_strided_slice %1045 {offsets = [0, 64], sizes = [2, 64], strides = [1, 1]} : vector<2x256xf32> to vector<2x64xf32>
    %cst_159 = arith.constant 5.000000e-01 : f32
    %1055 = vector.broadcast %cst_159 : f32 to vector<2x64xf32>
    %1056 = arith.mulf %1055, %1054 : vector<2x64xf32>
    %1057 = math.tanh %1056 : vector<2x64xf32>
    %cst_160 = arith.constant 5.000000e-01 : f32
    %1058 = vector.broadcast %cst_160 : f32 to vector<2x64xf32>
    %1059 = arith.mulf %1058, %1057 : vector<2x64xf32>
    %cst_161 = arith.constant 5.000000e-01 : f32
    %1060 = vector.broadcast %cst_161 : f32 to vector<2x64xf32>
    %1061 = arith.addf %1059, %1060 : vector<2x64xf32>
    %1062 = vector.extract_strided_slice %1045 {offsets = [0, 128], sizes = [2, 64], strides = [1, 1]} : vector<2x256xf32> to vector<2x64xf32>
    %1063 = math.tanh %1062 : vector<2x64xf32>
    %1064 = vector.extract_strided_slice %1045 {offsets = [0, 192], sizes = [2, 64], strides = [1, 1]} : vector<2x256xf32> to vector<2x64xf32>
    %cst_162 = arith.constant 5.000000e-01 : f32
    %1065 = vector.broadcast %cst_162 : f32 to vector<2x64xf32>
    %1066 = arith.mulf %1065, %1064 : vector<2x64xf32>
    %1067 = math.tanh %1066 : vector<2x64xf32>
    %cst_163 = arith.constant 5.000000e-01 : f32
    %1068 = vector.broadcast %cst_163 : f32 to vector<2x64xf32>
    %1069 = arith.mulf %1068, %1067 : vector<2x64xf32>
    %cst_164 = arith.constant 5.000000e-01 : f32
    %1070 = vector.broadcast %cst_164 : f32 to vector<2x64xf32>
    %1071 = arith.addf %1069, %1070 : vector<2x64xf32>
    %1072 = arith.mulf %1061, %987 : vector<2x64xf32>
    %1073 = arith.mulf %1053, %1063 : vector<2x64xf32>
    %1074 = arith.addf %1072, %1073 : vector<2x64xf32>
    %1075 = math.tanh %1074 : vector<2x64xf32>
    %1076 = arith.mulf %1071, %1075 : vector<2x64xf32>
    %1077 = vector.extract_strided_slice %1076 {offsets = [0, 0], sizes = [2, 32], strides = [1, 1]} : vector<2x64xf32> to vector<2x32xf32>
    %c0_165 = arith.constant 0 : index
    %c640 = arith.constant 640 : index
    %1078 = vector.load %arg12[%c0_165, %c640] : memref<2x1024xf32, #tpu.memory_space<vmem>>, vector<2x32xf32>
    tpu.vector_store %arg12[%c0_165, %c640], %1077 {strides = array<i32>} : memref<2x1024xf32, #tpu.memory_space<vmem>>, vector<2x32xf32>,
    %1079 = vector.extract_strided_slice %1076 {offsets = [0, 32], sizes = [2, 32], strides = [1, 1]} : vector<2x64xf32> to vector<2x32xf32>
    %c0_166 = arith.constant 0 : index
    %c352 = arith.constant 352 : index
    %1080 = vector.load %arg12[%c0_166, %c352] : memref<2x1024xf32, #tpu.memory_space<vmem>>, vector<2x32xf32>
    tpu.vector_store %arg12[%c0_166, %c352], %1079 {strides = array<i32>} : memref<2x1024xf32, #tpu.memory_space<vmem>>, vector<2x32xf32>,
    %1081 = vector.extract_strided_slice %123 {offsets = [8, 0], sizes = [1, 256], strides = [1, 1]} : vector<9x256xf32> to vector<1x256xf32>
    %1082 = vector.extract_strided_slice %122 {offsets = [0, 11], sizes = [2, 1], strides = [1, 1]} : vector<2x16xf32> to vector<2x1xf32>
    %1083 = vector.extract_strided_slice %123 {offsets = [0, 0], sizes = [1, 256], strides = [1, 1]} : vector<9x256xf32> to vector<1x256xf32>
    %1084 = vector.broadcast %1082 : vector<2x1xf32> to vector<2x256xf32>
    %1085 = vector.broadcast %1083 : vector<1x256xf32> to vector<2x256xf32>
    %1086 = arith.mulf %1084, %1085 : vector<2x256xf32>
    %1087 = vector.broadcast %1081 : vector<1x256xf32> to vector<2x256xf32>
    %1088 = arith.addf %1087, %1086 : vector<2x256xf32>
    %1089 = vector.extract_strided_slice %122 {offsets = [0, 4], sizes = [2, 1], strides = [1, 1]} : vector<2x16xf32> to vector<2x1xf32>
    %1090 = vector.extract_strided_slice %123 {offsets = [4, 0], sizes = [1, 256], strides = [1, 1]} : vector<9x256xf32> to vector<1x256xf32>
    %1091 = vector.broadcast %1089 : vector<2x1xf32> to vector<2x256xf32>
    %1092 = vector.broadcast %1090 : vector<1x256xf32> to vector<2x256xf32>
    %1093 = arith.mulf %1091, %1092 : vector<2x256xf32>
    %1094 = arith.addf %1088, %1093 : vector<2x256xf32>
    %1095 = vector.extract_strided_slice %2 {offsets = [0, 11], sizes = [2, 1], strides = [1, 1]} : vector<2x16xf32> to vector<2x1xf32>
    %1096 = vector.extract_strided_slice %123 {offsets = [1, 0], sizes = [1, 256], strides = [1, 1]} : vector<9x256xf32> to vector<1x256xf32>
    %1097 = vector.broadcast %1095 : vector<2x1xf32> to vector<2x256xf32>
    %1098 = vector.broadcast %1096 : vector<1x256xf32> to vector<2x256xf32>
    %1099 = arith.mulf %1097, %1098 : vector<2x256xf32>
    %1100 = arith.addf %1094, %1099 : vector<2x256xf32>
    %1101 = vector.extract_strided_slice %2 {offsets = [0, 4], sizes = [2, 1], strides = [1, 1]} : vector<2x16xf32> to vector<2x1xf32>
    %1102 = vector.extract_strided_slice %123 {offsets = [5, 0], sizes = [1, 256], strides = [1, 1]} : vector<9x256xf32> to vector<1x256xf32>
    %1103 = vector.broadcast %1101 : vector<2x1xf32> to vector<2x256xf32>
    %1104 = vector.broadcast %1102 : vector<1x256xf32> to vector<2x256xf32>
    %1105 = arith.mulf %1103, %1104 : vector<2x256xf32>
    %1106 = arith.addf %1100, %1105 : vector<2x256xf32>
    %1107 = vector.extract_strided_slice %3 {offsets = [0, 11], sizes = [2, 1], strides = [1, 1]} : vector<2x16xf32> to vector<2x1xf32>
    %1108 = vector.extract_strided_slice %123 {offsets = [2, 0], sizes = [1, 256], strides = [1, 1]} : vector<9x256xf32> to vector<1x256xf32>
    %1109 = vector.broadcast %1107 : vector<2x1xf32> to vector<2x256xf32>
    %1110 = vector.broadcast %1108 : vector<1x256xf32> to vector<2x256xf32>
    %1111 = arith.mulf %1109, %1110 : vector<2x256xf32>
    %1112 = arith.addf %1106, %1111 : vector<2x256xf32>
    %1113 = vector.extract_strided_slice %3 {offsets = [0, 4], sizes = [2, 1], strides = [1, 1]} : vector<2x16xf32> to vector<2x1xf32>
    %1114 = vector.extract_strided_slice %123 {offsets = [6, 0], sizes = [1, 256], strides = [1, 1]} : vector<9x256xf32> to vector<1x256xf32>
    %1115 = vector.broadcast %1113 : vector<2x1xf32> to vector<2x256xf32>
    %1116 = vector.broadcast %1114 : vector<1x256xf32> to vector<2x256xf32>
    %1117 = arith.mulf %1115, %1116 : vector<2x256xf32>
    %1118 = arith.addf %1112, %1117 : vector<2x256xf32>
    %1119 = vector.extract_strided_slice %4 {offsets = [0, 11], sizes = [2, 1], strides = [1, 1]} : vector<2x16xf32> to vector<2x1xf32>
    %1120 = vector.extract_strided_slice %123 {offsets = [3, 0], sizes = [1, 256], strides = [1, 1]} : vector<9x256xf32> to vector<1x256xf32>
    %1121 = vector.broadcast %1119 : vector<2x1xf32> to vector<2x256xf32>
    %1122 = vector.broadcast %1120 : vector<1x256xf32> to vector<2x256xf32>
    %1123 = arith.mulf %1121, %1122 : vector<2x256xf32>
    %1124 = arith.addf %1118, %1123 : vector<2x256xf32>
    %1125 = vector.extract_strided_slice %4 {offsets = [0, 4], sizes = [2, 1], strides = [1, 1]} : vector<2x16xf32> to vector<2x1xf32>
    %1126 = vector.extract_strided_slice %123 {offsets = [7, 0], sizes = [1, 256], strides = [1, 1]} : vector<9x256xf32> to vector<1x256xf32>
    %1127 = vector.broadcast %1125 : vector<2x1xf32> to vector<2x256xf32>
    %1128 = vector.broadcast %1126 : vector<1x256xf32> to vector<2x256xf32>
    %1129 = arith.mulf %1127, %1128 : vector<2x256xf32>
    %1130 = arith.addf %1124, %1129 : vector<2x256xf32>
    %cst_167 = arith.constant dense<0.000000e+00> : vector<2x256xf32>
    %1131 = tpu.matmul %1076, %124, %cst_167 {dimension_numbers = #tpu.dot_dimension_numbers<[1], [0], [0], [1], [0, 0, 1, 1], [], []>} : vector<2x64xf32>, vector<64x256xf32>, vector<2x256xf32> -> vector<2x256xf32>
    %1132 = arith.addf %1130, %1131 : vector<2x256xf32>
    %1133 = vector.extract_strided_slice %1132 {offsets = [0, 0], sizes = [2, 64], strides = [1, 1]} : vector<2x256xf32> to vector<2x64xf32>
    %cst_168 = arith.constant 5.000000e-01 : f32
    %1134 = vector.broadcast %cst_168 : f32 to vector<2x64xf32>
    %1135 = arith.mulf %1134, %1133 : vector<2x64xf32>
    %1136 = math.tanh %1135 : vector<2x64xf32>
    %cst_169 = arith.constant 5.000000e-01 : f32
    %1137 = vector.broadcast %cst_169 : f32 to vector<2x64xf32>
    %1138 = arith.mulf %1137, %1136 : vector<2x64xf32>
    %cst_170 = arith.constant 5.000000e-01 : f32
    %1139 = vector.broadcast %cst_170 : f32 to vector<2x64xf32>
    %1140 = arith.addf %1138, %1139 : vector<2x64xf32>
    %1141 = vector.extract_strided_slice %1132 {offsets = [0, 64], sizes = [2, 64], strides = [1, 1]} : vector<2x256xf32> to vector<2x64xf32>
    %cst_171 = arith.constant 5.000000e-01 : f32
    %1142 = vector.broadcast %cst_171 : f32 to vector<2x64xf32>
    %1143 = arith.mulf %1142, %1141 : vector<2x64xf32>
    %1144 = math.tanh %1143 : vector<2x64xf32>
    %cst_172 = arith.constant 5.000000e-01 : f32
    %1145 = vector.broadcast %cst_172 : f32 to vector<2x64xf32>
    %1146 = arith.mulf %1145, %1144 : vector<2x64xf32>
    %cst_173 = arith.constant 5.000000e-01 : f32
    %1147 = vector.broadcast %cst_173 : f32 to vector<2x64xf32>
    %1148 = arith.addf %1146, %1147 : vector<2x64xf32>
    %1149 = vector.extract_strided_slice %1132 {offsets = [0, 128], sizes = [2, 64], strides = [1, 1]} : vector<2x256xf32> to vector<2x64xf32>
    %1150 = math.tanh %1149 : vector<2x64xf32>
    %1151 = vector.extract_strided_slice %1132 {offsets = [0, 192], sizes = [2, 64], strides = [1, 1]} : vector<2x256xf32> to vector<2x64xf32>
    %cst_174 = arith.constant 5.000000e-01 : f32
    %1152 = vector.broadcast %cst_174 : f32 to vector<2x64xf32>
    %1153 = arith.mulf %1152, %1151 : vector<2x64xf32>
    %1154 = math.tanh %1153 : vector<2x64xf32>
    %cst_175 = arith.constant 5.000000e-01 : f32
    %1155 = vector.broadcast %cst_175 : f32 to vector<2x64xf32>
    %1156 = arith.mulf %1155, %1154 : vector<2x64xf32>
    %cst_176 = arith.constant 5.000000e-01 : f32
    %1157 = vector.broadcast %cst_176 : f32 to vector<2x64xf32>
    %1158 = arith.addf %1156, %1157 : vector<2x64xf32>
    %1159 = arith.mulf %1148, %1074 : vector<2x64xf32>
    %1160 = arith.mulf %1140, %1150 : vector<2x64xf32>
    %1161 = arith.addf %1159, %1160 : vector<2x64xf32>
    %1162 = math.tanh %1161 : vector<2x64xf32>
    %1163 = arith.mulf %1158, %1162 : vector<2x64xf32>
    %1164 = vector.extract_strided_slice %1163 {offsets = [0, 0], sizes = [2, 32], strides = [1, 1]} : vector<2x64xf32> to vector<2x32xf32>
    %c0_177 = arith.constant 0 : index
    %c704 = arith.constant 704 : index
    %1165 = vector.load %arg12[%c0_177, %c704] : memref<2x1024xf32, #tpu.memory_space<vmem>>, vector<2x32xf32>
    tpu.vector_store %arg12[%c0_177, %c704], %1164 {strides = array<i32>} : memref<2x1024xf32, #tpu.memory_space<vmem>>, vector<2x32xf32>,
    %1166 = vector.extract_strided_slice %1163 {offsets = [0, 32], sizes = [2, 32], strides = [1, 1]} : vector<2x64xf32> to vector<2x32xf32>
    %c0_178 = arith.constant 0 : index
    %c288 = arith.constant 288 : index
    %1167 = vector.load %arg12[%c0_178, %c288] : memref<2x1024xf32, #tpu.memory_space<vmem>>, vector<2x32xf32>
    tpu.vector_store %arg12[%c0_178, %c288], %1166 {strides = array<i32>} : memref<2x1024xf32, #tpu.memory_space<vmem>>, vector<2x32xf32>,
    %1168 = vector.extract_strided_slice %123 {offsets = [8, 0], sizes = [1, 256], strides = [1, 1]} : vector<9x256xf32> to vector<1x256xf32>
    %1169 = vector.extract_strided_slice %122 {offsets = [0, 12], sizes = [2, 1], strides = [1, 1]} : vector<2x16xf32> to vector<2x1xf32>
    %1170 = vector.extract_strided_slice %123 {offsets = [0, 0], sizes = [1, 256], strides = [1, 1]} : vector<9x256xf32> to vector<1x256xf32>
    %1171 = vector.broadcast %1169 : vector<2x1xf32> to vector<2x256xf32>
    %1172 = vector.broadcast %1170 : vector<1x256xf32> to vector<2x256xf32>
    %1173 = arith.mulf %1171, %1172 : vector<2x256xf32>
    %1174 = vector.broadcast %1168 : vector<1x256xf32> to vector<2x256xf32>
    %1175 = arith.addf %1174, %1173 : vector<2x256xf32>
    %1176 = vector.extract_strided_slice %122 {offsets = [0, 3], sizes = [2, 1], strides = [1, 1]} : vector<2x16xf32> to vector<2x1xf32>
    %1177 = vector.extract_strided_slice %123 {offsets = [4, 0], sizes = [1, 256], strides = [1, 1]} : vector<9x256xf32> to vector<1x256xf32>
    %1178 = vector.broadcast %1176 : vector<2x1xf32> to vector<2x256xf32>
    %1179 = vector.broadcast %1177 : vector<1x256xf32> to vector<2x256xf32>
    %1180 = arith.mulf %1178, %1179 : vector<2x256xf32>
    %1181 = arith.addf %1175, %1180 : vector<2x256xf32>
    %1182 = vector.extract_strided_slice %2 {offsets = [0, 12], sizes = [2, 1], strides = [1, 1]} : vector<2x16xf32> to vector<2x1xf32>
    %1183 = vector.extract_strided_slice %123 {offsets = [1, 0], sizes = [1, 256], strides = [1, 1]} : vector<9x256xf32> to vector<1x256xf32>
    %1184 = vector.broadcast %1182 : vector<2x1xf32> to vector<2x256xf32>
    %1185 = vector.broadcast %1183 : vector<1x256xf32> to vector<2x256xf32>
    %1186 = arith.mulf %1184, %1185 : vector<2x256xf32>
    %1187 = arith.addf %1181, %1186 : vector<2x256xf32>
    %1188 = vector.extract_strided_slice %2 {offsets = [0, 3], sizes = [2, 1], strides = [1, 1]} : vector<2x16xf32> to vector<2x1xf32>
    %1189 = vector.extract_strided_slice %123 {offsets = [5, 0], sizes = [1, 256], strides = [1, 1]} : vector<9x256xf32> to vector<1x256xf32>
    %1190 = vector.broadcast %1188 : vector<2x1xf32> to vector<2x256xf32>
    %1191 = vector.broadcast %1189 : vector<1x256xf32> to vector<2x256xf32>
    %1192 = arith.mulf %1190, %1191 : vector<2x256xf32>
    %1193 = arith.addf %1187, %1192 : vector<2x256xf32>
    %1194 = vector.extract_strided_slice %3 {offsets = [0, 12], sizes = [2, 1], strides = [1, 1]} : vector<2x16xf32> to vector<2x1xf32>
    %1195 = vector.extract_strided_slice %123 {offsets = [2, 0], sizes = [1, 256], strides = [1, 1]} : vector<9x256xf32> to vector<1x256xf32>
    %1196 = vector.broadcast %1194 : vector<2x1xf32> to vector<2x256xf32>
    %1197 = vector.broadcast %1195 : vector<1x256xf32> to vector<2x256xf32>
    %1198 = arith.mulf %1196, %1197 : vector<2x256xf32>
    %1199 = arith.addf %1193, %1198 : vector<2x256xf32>
    %1200 = vector.extract_strided_slice %3 {offsets = [0, 3], sizes = [2, 1], strides = [1, 1]} : vector<2x16xf32> to vector<2x1xf32>
    %1201 = vector.extract_strided_slice %123 {offsets = [6, 0], sizes = [1, 256], strides = [1, 1]} : vector<9x256xf32> to vector<1x256xf32>
    %1202 = vector.broadcast %1200 : vector<2x1xf32> to vector<2x256xf32>
    %1203 = vector.broadcast %1201 : vector<1x256xf32> to vector<2x256xf32>
    %1204 = arith.mulf %1202, %1203 : vector<2x256xf32>
    %1205 = arith.addf %1199, %1204 : vector<2x256xf32>
    %1206 = vector.extract_strided_slice %4 {offsets = [0, 12], sizes = [2, 1], strides = [1, 1]} : vector<2x16xf32> to vector<2x1xf32>
    %1207 = vector.extract_strided_slice %123 {offsets = [3, 0], sizes = [1, 256], strides = [1, 1]} : vector<9x256xf32> to vector<1x256xf32>
    %1208 = vector.broadcast %1206 : vector<2x1xf32> to vector<2x256xf32>
    %1209 = vector.broadcast %1207 : vector<1x256xf32> to vector<2x256xf32>
    %1210 = arith.mulf %1208, %1209 : vector<2x256xf32>
    %1211 = arith.addf %1205, %1210 : vector<2x256xf32>
    %1212 = vector.extract_strided_slice %4 {offsets = [0, 3], sizes = [2, 1], strides = [1, 1]} : vector<2x16xf32> to vector<2x1xf32>
    %1213 = vector.extract_strided_slice %123 {offsets = [7, 0], sizes = [1, 256], strides = [1, 1]} : vector<9x256xf32> to vector<1x256xf32>
    %1214 = vector.broadcast %1212 : vector<2x1xf32> to vector<2x256xf32>
    %1215 = vector.broadcast %1213 : vector<1x256xf32> to vector<2x256xf32>
    %1216 = arith.mulf %1214, %1215 : vector<2x256xf32>
    %1217 = arith.addf %1211, %1216 : vector<2x256xf32>
    %cst_179 = arith.constant dense<0.000000e+00> : vector<2x256xf32>
    %1218 = tpu.matmul %1163, %124, %cst_179 {dimension_numbers = #tpu.dot_dimension_numbers<[1], [0], [0], [1], [0, 0, 1, 1], [], []>} : vector<2x64xf32>, vector<64x256xf32>, vector<2x256xf32> -> vector<2x256xf32>
    %1219 = arith.addf %1217, %1218 : vector<2x256xf32>
    %1220 = vector.extract_strided_slice %1219 {offsets = [0, 0], sizes = [2, 64], strides = [1, 1]} : vector<2x256xf32> to vector<2x64xf32>
    %cst_180 = arith.constant 5.000000e-01 : f32
    %1221 = vector.broadcast %cst_180 : f32 to vector<2x64xf32>
    %1222 = arith.mulf %1221, %1220 : vector<2x64xf32>
    %1223 = math.tanh %1222 : vector<2x64xf32>
    %cst_181 = arith.constant 5.000000e-01 : f32
    %1224 = vector.broadcast %cst_181 : f32 to vector<2x64xf32>
    %1225 = arith.mulf %1224, %1223 : vector<2x64xf32>
    %cst_182 = arith.constant 5.000000e-01 : f32
    %1226 = vector.broadcast %cst_182 : f32 to vector<2x64xf32>
    %1227 = arith.addf %1225, %1226 : vector<2x64xf32>
    %1228 = vector.extract_strided_slice %1219 {offsets = [0, 64], sizes = [2, 64], strides = [1, 1]} : vector<2x256xf32> to vector<2x64xf32>
    %cst_183 = arith.constant 5.000000e-01 : f32
    %1229 = vector.broadcast %cst_183 : f32 to vector<2x64xf32>
    %1230 = arith.mulf %1229, %1228 : vector<2x64xf32>
    %1231 = math.tanh %1230 : vector<2x64xf32>
    %cst_184 = arith.constant 5.000000e-01 : f32
    %1232 = vector.broadcast %cst_184 : f32 to vector<2x64xf32>
    %1233 = arith.mulf %1232, %1231 : vector<2x64xf32>
    %cst_185 = arith.constant 5.000000e-01 : f32
    %1234 = vector.broadcast %cst_185 : f32 to vector<2x64xf32>
    %1235 = arith.addf %1233, %1234 : vector<2x64xf32>
    %1236 = vector.extract_strided_slice %1219 {offsets = [0, 128], sizes = [2, 64], strides = [1, 1]} : vector<2x256xf32> to vector<2x64xf32>
    %1237 = math.tanh %1236 : vector<2x64xf32>
    %1238 = vector.extract_strided_slice %1219 {offsets = [0, 192], sizes = [2, 64], strides = [1, 1]} : vector<2x256xf32> to vector<2x64xf32>
    %cst_186 = arith.constant 5.000000e-01 : f32
    %1239 = vector.broadcast %cst_186 : f32 to vector<2x64xf32>
    %1240 = arith.mulf %1239, %1238 : vector<2x64xf32>
    %1241 = math.tanh %1240 : vector<2x64xf32>
    %cst_187 = arith.constant 5.000000e-01 : f32
    %1242 = vector.broadcast %cst_187 : f32 to vector<2x64xf32>
    %1243 = arith.mulf %1242, %1241 : vector<2x64xf32>
    %cst_188 = arith.constant 5.000000e-01 : f32
    %1244 = vector.broadcast %cst_188 : f32 to vector<2x64xf32>
    %1245 = arith.addf %1243, %1244 : vector<2x64xf32>
    %1246 = arith.mulf %1235, %1161 : vector<2x64xf32>
    %1247 = arith.mulf %1227, %1237 : vector<2x64xf32>
    %1248 = arith.addf %1246, %1247 : vector<2x64xf32>
    %1249 = math.tanh %1248 : vector<2x64xf32>
    %1250 = arith.mulf %1245, %1249 : vector<2x64xf32>
    %1251 = vector.extract_strided_slice %1250 {offsets = [0, 0], sizes = [2, 32], strides = [1, 1]} : vector<2x64xf32> to vector<2x32xf32>
    %c0_189 = arith.constant 0 : index
    %c768 = arith.constant 768 : index
    %1252 = vector.load %arg12[%c0_189, %c768] : memref<2x1024xf32, #tpu.memory_space<vmem>>, vector<2x32xf32>
    tpu.vector_store %arg12[%c0_189, %c768], %1251 {strides = array<i32>} : memref<2x1024xf32, #tpu.memory_space<vmem>>, vector<2x32xf32>,
    %1253 = vector.extract_strided_slice %1250 {offsets = [0, 32], sizes = [2, 32], strides = [1, 1]} : vector<2x64xf32> to vector<2x32xf32>
    %c0_190 = arith.constant 0 : index
    %c224 = arith.constant 224 : index
    %1254 = vector.load %arg12[%c0_190, %c224] : memref<2x1024xf32, #tpu.memory_space<vmem>>, vector<2x32xf32>
    tpu.vector_store %arg12[%c0_190, %c224], %1253 {strides = array<i32>} : memref<2x1024xf32, #tpu.memory_space<vmem>>, vector<2x32xf32>,
    %1255 = vector.extract_strided_slice %123 {offsets = [8, 0], sizes = [1, 256], strides = [1, 1]} : vector<9x256xf32> to vector<1x256xf32>
    %1256 = vector.extract_strided_slice %122 {offsets = [0, 13], sizes = [2, 1], strides = [1, 1]} : vector<2x16xf32> to vector<2x1xf32>
    %1257 = vector.extract_strided_slice %123 {offsets = [0, 0], sizes = [1, 256], strides = [1, 1]} : vector<9x256xf32> to vector<1x256xf32>
    %1258 = vector.broadcast %1256 : vector<2x1xf32> to vector<2x256xf32>
    %1259 = vector.broadcast %1257 : vector<1x256xf32> to vector<2x256xf32>
    %1260 = arith.mulf %1258, %1259 : vector<2x256xf32>
    %1261 = vector.broadcast %1255 : vector<1x256xf32> to vector<2x256xf32>
    %1262 = arith.addf %1261, %1260 : vector<2x256xf32>
    %1263 = vector.extract_strided_slice %122 {offsets = [0, 2], sizes = [2, 1], strides = [1, 1]} : vector<2x16xf32> to vector<2x1xf32>
    %1264 = vector.extract_strided_slice %123 {offsets = [4, 0], sizes = [1, 256], strides = [1, 1]} : vector<9x256xf32> to vector<1x256xf32>
    %1265 = vector.broadcast %1263 : vector<2x1xf32> to vector<2x256xf32>
    %1266 = vector.broadcast %1264 : vector<1x256xf32> to vector<2x256xf32>
    %1267 = arith.mulf %1265, %1266 : vector<2x256xf32>
    %1268 = arith.addf %1262, %1267 : vector<2x256xf32>
    %1269 = vector.extract_strided_slice %2 {offsets = [0, 13], sizes = [2, 1], strides = [1, 1]} : vector<2x16xf32> to vector<2x1xf32>
    %1270 = vector.extract_strided_slice %123 {offsets = [1, 0], sizes = [1, 256], strides = [1, 1]} : vector<9x256xf32> to vector<1x256xf32>
    %1271 = vector.broadcast %1269 : vector<2x1xf32> to vector<2x256xf32>
    %1272 = vector.broadcast %1270 : vector<1x256xf32> to vector<2x256xf32>
    %1273 = arith.mulf %1271, %1272 : vector<2x256xf32>
    %1274 = arith.addf %1268, %1273 : vector<2x256xf32>
    %1275 = vector.extract_strided_slice %2 {offsets = [0, 2], sizes = [2, 1], strides = [1, 1]} : vector<2x16xf32> to vector<2x1xf32>
    %1276 = vector.extract_strided_slice %123 {offsets = [5, 0], sizes = [1, 256], strides = [1, 1]} : vector<9x256xf32> to vector<1x256xf32>
    %1277 = vector.broadcast %1275 : vector<2x1xf32> to vector<2x256xf32>
    %1278 = vector.broadcast %1276 : vector<1x256xf32> to vector<2x256xf32>
    %1279 = arith.mulf %1277, %1278 : vector<2x256xf32>
    %1280 = arith.addf %1274, %1279 : vector<2x256xf32>
    %1281 = vector.extract_strided_slice %3 {offsets = [0, 13], sizes = [2, 1], strides = [1, 1]} : vector<2x16xf32> to vector<2x1xf32>
    %1282 = vector.extract_strided_slice %123 {offsets = [2, 0], sizes = [1, 256], strides = [1, 1]} : vector<9x256xf32> to vector<1x256xf32>
    %1283 = vector.broadcast %1281 : vector<2x1xf32> to vector<2x256xf32>
    %1284 = vector.broadcast %1282 : vector<1x256xf32> to vector<2x256xf32>
    %1285 = arith.mulf %1283, %1284 : vector<2x256xf32>
    %1286 = arith.addf %1280, %1285 : vector<2x256xf32>
    %1287 = vector.extract_strided_slice %3 {offsets = [0, 2], sizes = [2, 1], strides = [1, 1]} : vector<2x16xf32> to vector<2x1xf32>
    %1288 = vector.extract_strided_slice %123 {offsets = [6, 0], sizes = [1, 256], strides = [1, 1]} : vector<9x256xf32> to vector<1x256xf32>
    %1289 = vector.broadcast %1287 : vector<2x1xf32> to vector<2x256xf32>
    %1290 = vector.broadcast %1288 : vector<1x256xf32> to vector<2x256xf32>
    %1291 = arith.mulf %1289, %1290 : vector<2x256xf32>
    %1292 = arith.addf %1286, %1291 : vector<2x256xf32>
    %1293 = vector.extract_strided_slice %4 {offsets = [0, 13], sizes = [2, 1], strides = [1, 1]} : vector<2x16xf32> to vector<2x1xf32>
    %1294 = vector.extract_strided_slice %123 {offsets = [3, 0], sizes = [1, 256], strides = [1, 1]} : vector<9x256xf32> to vector<1x256xf32>
    %1295 = vector.broadcast %1293 : vector<2x1xf32> to vector<2x256xf32>
    %1296 = vector.broadcast %1294 : vector<1x256xf32> to vector<2x256xf32>
    %1297 = arith.mulf %1295, %1296 : vector<2x256xf32>
    %1298 = arith.addf %1292, %1297 : vector<2x256xf32>
    %1299 = vector.extract_strided_slice %4 {offsets = [0, 2], sizes = [2, 1], strides = [1, 1]} : vector<2x16xf32> to vector<2x1xf32>
    %1300 = vector.extract_strided_slice %123 {offsets = [7, 0], sizes = [1, 256], strides = [1, 1]} : vector<9x256xf32> to vector<1x256xf32>
    %1301 = vector.broadcast %1299 : vector<2x1xf32> to vector<2x256xf32>
    %1302 = vector.broadcast %1300 : vector<1x256xf32> to vector<2x256xf32>
    %1303 = arith.mulf %1301, %1302 : vector<2x256xf32>
    %1304 = arith.addf %1298, %1303 : vector<2x256xf32>
    %cst_191 = arith.constant dense<0.000000e+00> : vector<2x256xf32>
    %1305 = tpu.matmul %1250, %124, %cst_191 {dimension_numbers = #tpu.dot_dimension_numbers<[1], [0], [0], [1], [0, 0, 1, 1], [], []>} : vector<2x64xf32>, vector<64x256xf32>, vector<2x256xf32> -> vector<2x256xf32>
    %1306 = arith.addf %1304, %1305 : vector<2x256xf32>
    %1307 = vector.extract_strided_slice %1306 {offsets = [0, 0], sizes = [2, 64], strides = [1, 1]} : vector<2x256xf32> to vector<2x64xf32>
    %cst_192 = arith.constant 5.000000e-01 : f32
    %1308 = vector.broadcast %cst_192 : f32 to vector<2x64xf32>
    %1309 = arith.mulf %1308, %1307 : vector<2x64xf32>
    %1310 = math.tanh %1309 : vector<2x64xf32>
    %cst_193 = arith.constant 5.000000e-01 : f32
    %1311 = vector.broadcast %cst_193 : f32 to vector<2x64xf32>
    %1312 = arith.mulf %1311, %1310 : vector<2x64xf32>
    %cst_194 = arith.constant 5.000000e-01 : f32
    %1313 = vector.broadcast %cst_194 : f32 to vector<2x64xf32>
    %1314 = arith.addf %1312, %1313 : vector<2x64xf32>
    %1315 = vector.extract_strided_slice %1306 {offsets = [0, 64], sizes = [2, 64], strides = [1, 1]} : vector<2x256xf32> to vector<2x64xf32>
    %cst_195 = arith.constant 5.000000e-01 : f32
    %1316 = vector.broadcast %cst_195 : f32 to vector<2x64xf32>
    %1317 = arith.mulf %1316, %1315 : vector<2x64xf32>
    %1318 = math.tanh %1317 : vector<2x64xf32>
    %cst_196 = arith.constant 5.000000e-01 : f32
    %1319 = vector.broadcast %cst_196 : f32 to vector<2x64xf32>
    %1320 = arith.mulf %1319, %1318 : vector<2x64xf32>
    %cst_197 = arith.constant 5.000000e-01 : f32
    %1321 = vector.broadcast %cst_197 : f32 to vector<2x64xf32>
    %1322 = arith.addf %1320, %1321 : vector<2x64xf32>
    %1323 = vector.extract_strided_slice %1306 {offsets = [0, 128], sizes = [2, 64], strides = [1, 1]} : vector<2x256xf32> to vector<2x64xf32>
    %1324 = math.tanh %1323 : vector<2x64xf32>
    %1325 = vector.extract_strided_slice %1306 {offsets = [0, 192], sizes = [2, 64], strides = [1, 1]} : vector<2x256xf32> to vector<2x64xf32>
    %cst_198 = arith.constant 5.000000e-01 : f32
    %1326 = vector.broadcast %cst_198 : f32 to vector<2x64xf32>
    %1327 = arith.mulf %1326, %1325 : vector<2x64xf32>
    %1328 = math.tanh %1327 : vector<2x64xf32>
    %cst_199 = arith.constant 5.000000e-01 : f32
    %1329 = vector.broadcast %cst_199 : f32 to vector<2x64xf32>
    %1330 = arith.mulf %1329, %1328 : vector<2x64xf32>
    %cst_200 = arith.constant 5.000000e-01 : f32
    %1331 = vector.broadcast %cst_200 : f32 to vector<2x64xf32>
    %1332 = arith.addf %1330, %1331 : vector<2x64xf32>
    %1333 = arith.mulf %1322, %1248 : vector<2x64xf32>
    %1334 = arith.mulf %1314, %1324 : vector<2x64xf32>
    %1335 = arith.addf %1333, %1334 : vector<2x64xf32>
    %1336 = math.tanh %1335 : vector<2x64xf32>
    %1337 = arith.mulf %1332, %1336 : vector<2x64xf32>
    %1338 = vector.extract_strided_slice %1337 {offsets = [0, 0], sizes = [2, 32], strides = [1, 1]} : vector<2x64xf32> to vector<2x32xf32>
    %c0_201 = arith.constant 0 : index
    %c832 = arith.constant 832 : index
    %1339 = vector.load %arg12[%c0_201, %c832] : memref<2x1024xf32, #tpu.memory_space<vmem>>, vector<2x32xf32>
    tpu.vector_store %arg12[%c0_201, %c832], %1338 {strides = array<i32>} : memref<2x1024xf32, #tpu.memory_space<vmem>>, vector<2x32xf32>,
    %1340 = vector.extract_strided_slice %1337 {offsets = [0, 32], sizes = [2, 32], strides = [1, 1]} : vector<2x64xf32> to vector<2x32xf32>
    %c0_202 = arith.constant 0 : index
    %c160 = arith.constant 160 : index
    %1341 = vector.load %arg12[%c0_202, %c160] : memref<2x1024xf32, #tpu.memory_space<vmem>>, vector<2x32xf32>
    tpu.vector_store %arg12[%c0_202, %c160], %1340 {strides = array<i32>} : memref<2x1024xf32, #tpu.memory_space<vmem>>, vector<2x32xf32>,
    %1342 = vector.extract_strided_slice %123 {offsets = [8, 0], sizes = [1, 256], strides = [1, 1]} : vector<9x256xf32> to vector<1x256xf32>
    %1343 = vector.extract_strided_slice %122 {offsets = [0, 14], sizes = [2, 1], strides = [1, 1]} : vector<2x16xf32> to vector<2x1xf32>
    %1344 = vector.extract_strided_slice %123 {offsets = [0, 0], sizes = [1, 256], strides = [1, 1]} : vector<9x256xf32> to vector<1x256xf32>
    %1345 = vector.broadcast %1343 : vector<2x1xf32> to vector<2x256xf32>
    %1346 = vector.broadcast %1344 : vector<1x256xf32> to vector<2x256xf32>
    %1347 = arith.mulf %1345, %1346 : vector<2x256xf32>
    %1348 = vector.broadcast %1342 : vector<1x256xf32> to vector<2x256xf32>
    %1349 = arith.addf %1348, %1347 : vector<2x256xf32>
    %1350 = vector.extract_strided_slice %122 {offsets = [0, 1], sizes = [2, 1], strides = [1, 1]} : vector<2x16xf32> to vector<2x1xf32>
    %1351 = vector.extract_strided_slice %123 {offsets = [4, 0], sizes = [1, 256], strides = [1, 1]} : vector<9x256xf32> to vector<1x256xf32>
    %1352 = vector.broadcast %1350 : vector<2x1xf32> to vector<2x256xf32>
    %1353 = vector.broadcast %1351 : vector<1x256xf32> to vector<2x256xf32>
    %1354 = arith.mulf %1352, %1353 : vector<2x256xf32>
    %1355 = arith.addf %1349, %1354 : vector<2x256xf32>
    %1356 = vector.extract_strided_slice %2 {offsets = [0, 14], sizes = [2, 1], strides = [1, 1]} : vector<2x16xf32> to vector<2x1xf32>
    %1357 = vector.extract_strided_slice %123 {offsets = [1, 0], sizes = [1, 256], strides = [1, 1]} : vector<9x256xf32> to vector<1x256xf32>
    %1358 = vector.broadcast %1356 : vector<2x1xf32> to vector<2x256xf32>
    %1359 = vector.broadcast %1357 : vector<1x256xf32> to vector<2x256xf32>
    %1360 = arith.mulf %1358, %1359 : vector<2x256xf32>
    %1361 = arith.addf %1355, %1360 : vector<2x256xf32>
    %1362 = vector.extract_strided_slice %2 {offsets = [0, 1], sizes = [2, 1], strides = [1, 1]} : vector<2x16xf32> to vector<2x1xf32>
    %1363 = vector.extract_strided_slice %123 {offsets = [5, 0], sizes = [1, 256], strides = [1, 1]} : vector<9x256xf32> to vector<1x256xf32>
    %1364 = vector.broadcast %1362 : vector<2x1xf32> to vector<2x256xf32>
    %1365 = vector.broadcast %1363 : vector<1x256xf32> to vector<2x256xf32>
    %1366 = arith.mulf %1364, %1365 : vector<2x256xf32>
    %1367 = arith.addf %1361, %1366 : vector<2x256xf32>
    %1368 = vector.extract_strided_slice %3 {offsets = [0, 14], sizes = [2, 1], strides = [1, 1]} : vector<2x16xf32> to vector<2x1xf32>
    %1369 = vector.extract_strided_slice %123 {offsets = [2, 0], sizes = [1, 256], strides = [1, 1]} : vector<9x256xf32> to vector<1x256xf32>
    %1370 = vector.broadcast %1368 : vector<2x1xf32> to vector<2x256xf32>
    %1371 = vector.broadcast %1369 : vector<1x256xf32> to vector<2x256xf32>
    %1372 = arith.mulf %1370, %1371 : vector<2x256xf32>
    %1373 = arith.addf %1367, %1372 : vector<2x256xf32>
    %1374 = vector.extract_strided_slice %3 {offsets = [0, 1], sizes = [2, 1], strides = [1, 1]} : vector<2x16xf32> to vector<2x1xf32>
    %1375 = vector.extract_strided_slice %123 {offsets = [6, 0], sizes = [1, 256], strides = [1, 1]} : vector<9x256xf32> to vector<1x256xf32>
    %1376 = vector.broadcast %1374 : vector<2x1xf32> to vector<2x256xf32>
    %1377 = vector.broadcast %1375 : vector<1x256xf32> to vector<2x256xf32>
    %1378 = arith.mulf %1376, %1377 : vector<2x256xf32>
    %1379 = arith.addf %1373, %1378 : vector<2x256xf32>
    %1380 = vector.extract_strided_slice %4 {offsets = [0, 14], sizes = [2, 1], strides = [1, 1]} : vector<2x16xf32> to vector<2x1xf32>
    %1381 = vector.extract_strided_slice %123 {offsets = [3, 0], sizes = [1, 256], strides = [1, 1]} : vector<9x256xf32> to vector<1x256xf32>
    %1382 = vector.broadcast %1380 : vector<2x1xf32> to vector<2x256xf32>
    %1383 = vector.broadcast %1381 : vector<1x256xf32> to vector<2x256xf32>
    %1384 = arith.mulf %1382, %1383 : vector<2x256xf32>
    %1385 = arith.addf %1379, %1384 : vector<2x256xf32>
    %1386 = vector.extract_strided_slice %4 {offsets = [0, 1], sizes = [2, 1], strides = [1, 1]} : vector<2x16xf32> to vector<2x1xf32>
    %1387 = vector.extract_strided_slice %123 {offsets = [7, 0], sizes = [1, 256], strides = [1, 1]} : vector<9x256xf32> to vector<1x256xf32>
    %1388 = vector.broadcast %1386 : vector<2x1xf32> to vector<2x256xf32>
    %1389 = vector.broadcast %1387 : vector<1x256xf32> to vector<2x256xf32>
    %1390 = arith.mulf %1388, %1389 : vector<2x256xf32>
    %1391 = arith.addf %1385, %1390 : vector<2x256xf32>
    %cst_203 = arith.constant dense<0.000000e+00> : vector<2x256xf32>
    %1392 = tpu.matmul %1337, %124, %cst_203 {dimension_numbers = #tpu.dot_dimension_numbers<[1], [0], [0], [1], [0, 0, 1, 1], [], []>} : vector<2x64xf32>, vector<64x256xf32>, vector<2x256xf32> -> vector<2x256xf32>
    %1393 = arith.addf %1391, %1392 : vector<2x256xf32>
    %1394 = vector.extract_strided_slice %1393 {offsets = [0, 0], sizes = [2, 64], strides = [1, 1]} : vector<2x256xf32> to vector<2x64xf32>
    %cst_204 = arith.constant 5.000000e-01 : f32
    %1395 = vector.broadcast %cst_204 : f32 to vector<2x64xf32>
    %1396 = arith.mulf %1395, %1394 : vector<2x64xf32>
    %1397 = math.tanh %1396 : vector<2x64xf32>
    %cst_205 = arith.constant 5.000000e-01 : f32
    %1398 = vector.broadcast %cst_205 : f32 to vector<2x64xf32>
    %1399 = arith.mulf %1398, %1397 : vector<2x64xf32>
    %cst_206 = arith.constant 5.000000e-01 : f32
    %1400 = vector.broadcast %cst_206 : f32 to vector<2x64xf32>
    %1401 = arith.addf %1399, %1400 : vector<2x64xf32>
    %1402 = vector.extract_strided_slice %1393 {offsets = [0, 64], sizes = [2, 64], strides = [1, 1]} : vector<2x256xf32> to vector<2x64xf32>
    %cst_207 = arith.constant 5.000000e-01 : f32
    %1403 = vector.broadcast %cst_207 : f32 to vector<2x64xf32>
    %1404 = arith.mulf %1403, %1402 : vector<2x64xf32>
    %1405 = math.tanh %1404 : vector<2x64xf32>
    %cst_208 = arith.constant 5.000000e-01 : f32
    %1406 = vector.broadcast %cst_208 : f32 to vector<2x64xf32>
    %1407 = arith.mulf %1406, %1405 : vector<2x64xf32>
    %cst_209 = arith.constant 5.000000e-01 : f32
    %1408 = vector.broadcast %cst_209 : f32 to vector<2x64xf32>
    %1409 = arith.addf %1407, %1408 : vector<2x64xf32>
    %1410 = vector.extract_strided_slice %1393 {offsets = [0, 128], sizes = [2, 64], strides = [1, 1]} : vector<2x256xf32> to vector<2x64xf32>
    %1411 = math.tanh %1410 : vector<2x64xf32>
    %1412 = vector.extract_strided_slice %1393 {offsets = [0, 192], sizes = [2, 64], strides = [1, 1]} : vector<2x256xf32> to vector<2x64xf32>
    %cst_210 = arith.constant 5.000000e-01 : f32
    %1413 = vector.broadcast %cst_210 : f32 to vector<2x64xf32>
    %1414 = arith.mulf %1413, %1412 : vector<2x64xf32>
    %1415 = math.tanh %1414 : vector<2x64xf32>
    %cst_211 = arith.constant 5.000000e-01 : f32
    %1416 = vector.broadcast %cst_211 : f32 to vector<2x64xf32>
    %1417 = arith.mulf %1416, %1415 : vector<2x64xf32>
    %cst_212 = arith.constant 5.000000e-01 : f32
    %1418 = vector.broadcast %cst_212 : f32 to vector<2x64xf32>
    %1419 = arith.addf %1417, %1418 : vector<2x64xf32>
    %1420 = arith.mulf %1409, %1335 : vector<2x64xf32>
    %1421 = arith.mulf %1401, %1411 : vector<2x64xf32>
    %1422 = arith.addf %1420, %1421 : vector<2x64xf32>
    %1423 = math.tanh %1422 : vector<2x64xf32>
    %1424 = arith.mulf %1419, %1423 : vector<2x64xf32>
    %1425 = vector.extract_strided_slice %1424 {offsets = [0, 0], sizes = [2, 32], strides = [1, 1]} : vector<2x64xf32> to vector<2x32xf32>
    %c0_213 = arith.constant 0 : index
    %c896 = arith.constant 896 : index
    %1426 = vector.load %arg12[%c0_213, %c896] : memref<2x1024xf32, #tpu.memory_space<vmem>>, vector<2x32xf32>
    tpu.vector_store %arg12[%c0_213, %c896], %1425 {strides = array<i32>} : memref<2x1024xf32, #tpu.memory_space<vmem>>, vector<2x32xf32>,
    %1427 = vector.extract_strided_slice %1424 {offsets = [0, 32], sizes = [2, 32], strides = [1, 1]} : vector<2x64xf32> to vector<2x32xf32>
    %c0_214 = arith.constant 0 : index
    %c96 = arith.constant 96 : index
    %1428 = vector.load %arg12[%c0_214, %c96] : memref<2x1024xf32, #tpu.memory_space<vmem>>, vector<2x32xf32>
    tpu.vector_store %arg12[%c0_214, %c96], %1427 {strides = array<i32>} : memref<2x1024xf32, #tpu.memory_space<vmem>>, vector<2x32xf32>,
    %1429 = vector.extract_strided_slice %123 {offsets = [8, 0], sizes = [1, 256], strides = [1, 1]} : vector<9x256xf32> to vector<1x256xf32>
    %1430 = vector.extract_strided_slice %122 {offsets = [0, 15], sizes = [2, 1], strides = [1, 1]} : vector<2x16xf32> to vector<2x1xf32>
    %1431 = vector.extract_strided_slice %123 {offsets = [0, 0], sizes = [1, 256], strides = [1, 1]} : vector<9x256xf32> to vector<1x256xf32>
    %1432 = vector.broadcast %1430 : vector<2x1xf32> to vector<2x256xf32>
    %1433 = vector.broadcast %1431 : vector<1x256xf32> to vector<2x256xf32>
    %1434 = arith.mulf %1432, %1433 : vector<2x256xf32>
    %1435 = vector.broadcast %1429 : vector<1x256xf32> to vector<2x256xf32>
    %1436 = arith.addf %1435, %1434 : vector<2x256xf32>
    %1437 = vector.extract_strided_slice %122 {offsets = [0, 0], sizes = [2, 1], strides = [1, 1]} : vector<2x16xf32> to vector<2x1xf32>
    %1438 = vector.extract_strided_slice %123 {offsets = [4, 0], sizes = [1, 256], strides = [1, 1]} : vector<9x256xf32> to vector<1x256xf32>
    %1439 = vector.broadcast %1437 : vector<2x1xf32> to vector<2x256xf32>
    %1440 = vector.broadcast %1438 : vector<1x256xf32> to vector<2x256xf32>
    %1441 = arith.mulf %1439, %1440 : vector<2x256xf32>
    %1442 = arith.addf %1436, %1441 : vector<2x256xf32>
    %1443 = vector.extract_strided_slice %2 {offsets = [0, 15], sizes = [2, 1], strides = [1, 1]} : vector<2x16xf32> to vector<2x1xf32>
    %1444 = vector.extract_strided_slice %123 {offsets = [1, 0], sizes = [1, 256], strides = [1, 1]} : vector<9x256xf32> to vector<1x256xf32>
    %1445 = vector.broadcast %1443 : vector<2x1xf32> to vector<2x256xf32>
    %1446 = vector.broadcast %1444 : vector<1x256xf32> to vector<2x256xf32>
    %1447 = arith.mulf %1445, %1446 : vector<2x256xf32>
    %1448 = arith.addf %1442, %1447 : vector<2x256xf32>
    %1449 = vector.extract_strided_slice %2 {offsets = [0, 0], sizes = [2, 1], strides = [1, 1]} : vector<2x16xf32> to vector<2x1xf32>
    %1450 = vector.extract_strided_slice %123 {offsets = [5, 0], sizes = [1, 256], strides = [1, 1]} : vector<9x256xf32> to vector<1x256xf32>
    %1451 = vector.broadcast %1449 : vector<2x1xf32> to vector<2x256xf32>
    %1452 = vector.broadcast %1450 : vector<1x256xf32> to vector<2x256xf32>
    %1453 = arith.mulf %1451, %1452 : vector<2x256xf32>
    %1454 = arith.addf %1448, %1453 : vector<2x256xf32>
    %1455 = vector.extract_strided_slice %3 {offsets = [0, 15], sizes = [2, 1], strides = [1, 1]} : vector<2x16xf32> to vector<2x1xf32>
    %1456 = vector.extract_strided_slice %123 {offsets = [2, 0], sizes = [1, 256], strides = [1, 1]} : vector<9x256xf32> to vector<1x256xf32>
    %1457 = vector.broadcast %1455 : vector<2x1xf32> to vector<2x256xf32>
    %1458 = vector.broadcast %1456 : vector<1x256xf32> to vector<2x256xf32>
    %1459 = arith.mulf %1457, %1458 : vector<2x256xf32>
    %1460 = arith.addf %1454, %1459 : vector<2x256xf32>
    %1461 = vector.extract_strided_slice %3 {offsets = [0, 0], sizes = [2, 1], strides = [1, 1]} : vector<2x16xf32> to vector<2x1xf32>
    %1462 = vector.extract_strided_slice %123 {offsets = [6, 0], sizes = [1, 256], strides = [1, 1]} : vector<9x256xf32> to vector<1x256xf32>
    %1463 = vector.broadcast %1461 : vector<2x1xf32> to vector<2x256xf32>
    %1464 = vector.broadcast %1462 : vector<1x256xf32> to vector<2x256xf32>
    %1465 = arith.mulf %1463, %1464 : vector<2x256xf32>
    %1466 = arith.addf %1460, %1465 : vector<2x256xf32>
    %1467 = vector.extract_strided_slice %4 {offsets = [0, 15], sizes = [2, 1], strides = [1, 1]} : vector<2x16xf32> to vector<2x1xf32>
    %1468 = vector.extract_strided_slice %123 {offsets = [3, 0], sizes = [1, 256], strides = [1, 1]} : vector<9x256xf32> to vector<1x256xf32>
    %1469 = vector.broadcast %1467 : vector<2x1xf32> to vector<2x256xf32>
    %1470 = vector.broadcast %1468 : vector<1x256xf32> to vector<2x256xf32>
    %1471 = arith.mulf %1469, %1470 : vector<2x256xf32>
    %1472 = arith.addf %1466, %1471 : vector<2x256xf32>
    %1473 = vector.extract_strided_slice %4 {offsets = [0, 0], sizes = [2, 1], strides = [1, 1]} : vector<2x16xf32> to vector<2x1xf32>
    %1474 = vector.extract_strided_slice %123 {offsets = [7, 0], sizes = [1, 256], strides = [1, 1]} : vector<9x256xf32> to vector<1x256xf32>
    %1475 = vector.broadcast %1473 : vector<2x1xf32> to vector<2x256xf32>
    %1476 = vector.broadcast %1474 : vector<1x256xf32> to vector<2x256xf32>
    %1477 = arith.mulf %1475, %1476 : vector<2x256xf32>
    %1478 = arith.addf %1472, %1477 : vector<2x256xf32>
    %cst_215 = arith.constant dense<0.000000e+00> : vector<2x256xf32>
    %1479 = tpu.matmul %1424, %124, %cst_215 {dimension_numbers = #tpu.dot_dimension_numbers<[1], [0], [0], [1], [0, 0, 1, 1], [], []>} : vector<2x64xf32>, vector<64x256xf32>, vector<2x256xf32> -> vector<2x256xf32>
    %1480 = arith.addf %1478, %1479 : vector<2x256xf32>
    %1481 = vector.extract_strided_slice %1480 {offsets = [0, 0], sizes = [2, 64], strides = [1, 1]} : vector<2x256xf32> to vector<2x64xf32>
    %cst_216 = arith.constant 5.000000e-01 : f32
    %1482 = vector.broadcast %cst_216 : f32 to vector<2x64xf32>
    %1483 = arith.mulf %1482, %1481 : vector<2x64xf32>
    %1484 = math.tanh %1483 : vector<2x64xf32>
    %cst_217 = arith.constant 5.000000e-01 : f32
    %1485 = vector.broadcast %cst_217 : f32 to vector<2x64xf32>
    %1486 = arith.mulf %1485, %1484 : vector<2x64xf32>
    %cst_218 = arith.constant 5.000000e-01 : f32
    %1487 = vector.broadcast %cst_218 : f32 to vector<2x64xf32>
    %1488 = arith.addf %1486, %1487 : vector<2x64xf32>
    %1489 = vector.extract_strided_slice %1480 {offsets = [0, 64], sizes = [2, 64], strides = [1, 1]} : vector<2x256xf32> to vector<2x64xf32>
    %cst_219 = arith.constant 5.000000e-01 : f32
    %1490 = vector.broadcast %cst_219 : f32 to vector<2x64xf32>
    %1491 = arith.mulf %1490, %1489 : vector<2x64xf32>
    %1492 = math.tanh %1491 : vector<2x64xf32>
    %cst_220 = arith.constant 5.000000e-01 : f32
    %1493 = vector.broadcast %cst_220 : f32 to vector<2x64xf32>
    %1494 = arith.mulf %1493, %1492 : vector<2x64xf32>
    %cst_221 = arith.constant 5.000000e-01 : f32
    %1495 = vector.broadcast %cst_221 : f32 to vector<2x64xf32>
    %1496 = arith.addf %1494, %1495 : vector<2x64xf32>
    %1497 = vector.extract_strided_slice %1480 {offsets = [0, 128], sizes = [2, 64], strides = [1, 1]} : vector<2x256xf32> to vector<2x64xf32>
    %1498 = math.tanh %1497 : vector<2x64xf32>
    %1499 = vector.extract_strided_slice %1480 {offsets = [0, 192], sizes = [2, 64], strides = [1, 1]} : vector<2x256xf32> to vector<2x64xf32>
    %cst_222 = arith.constant 5.000000e-01 : f32
    %1500 = vector.broadcast %cst_222 : f32 to vector<2x64xf32>
    %1501 = arith.mulf %1500, %1499 : vector<2x64xf32>
    %1502 = math.tanh %1501 : vector<2x64xf32>
    %cst_223 = arith.constant 5.000000e-01 : f32
    %1503 = vector.broadcast %cst_223 : f32 to vector<2x64xf32>
    %1504 = arith.mulf %1503, %1502 : vector<2x64xf32>
    %cst_224 = arith.constant 5.000000e-01 : f32
    %1505 = vector.broadcast %cst_224 : f32 to vector<2x64xf32>
    %1506 = arith.addf %1504, %1505 : vector<2x64xf32>
    %1507 = arith.mulf %1496, %1422 : vector<2x64xf32>
    %1508 = arith.mulf %1488, %1498 : vector<2x64xf32>
    %1509 = arith.addf %1507, %1508 : vector<2x64xf32>
    %1510 = math.tanh %1509 : vector<2x64xf32>
    %1511 = arith.mulf %1506, %1510 : vector<2x64xf32>
    %1512 = vector.extract_strided_slice %1511 {offsets = [0, 0], sizes = [2, 32], strides = [1, 1]} : vector<2x64xf32> to vector<2x32xf32>
    %c0_225 = arith.constant 0 : index
    %c960 = arith.constant 960 : index
    %1513 = vector.load %arg12[%c0_225, %c960] : memref<2x1024xf32, #tpu.memory_space<vmem>>, vector<2x32xf32>
    tpu.vector_store %arg12[%c0_225, %c960], %1512 {strides = array<i32>} : memref<2x1024xf32, #tpu.memory_space<vmem>>, vector<2x32xf32>,
    %1514 = vector.extract_strided_slice %1511 {offsets = [0, 32], sizes = [2, 32], strides = [1, 1]} : vector<2x64xf32> to vector<2x32xf32>
    %c0_226 = arith.constant 0 : index
    %c32 = arith.constant 32 : index
    %1515 = vector.load %arg12[%c0_226, %c32] : memref<2x1024xf32, #tpu.memory_space<vmem>>, vector<2x32xf32>
    tpu.vector_store %arg12[%c0_226, %c32], %1514 {strides = array<i32>} : memref<2x1024xf32, #tpu.memory_space<vmem>>, vector<2x32xf32>,
    %c0_227 = arith.constant 0 : index
    %c0_228 = arith.constant 0 : index
    %1516 = vector.load %arg9[%c0_227, %c0_228] : memref<1025x16xf32, #tpu.memory_space<vmem>>, vector<1024x16xf32>
    %c1024 = arith.constant 1024 : index
    %c0_229 = arith.constant 0 : index
    %1517 = vector.load %arg9[%c1024, %c0_229] : memref<1025x16xf32, #tpu.memory_space<vmem>>, vector<1x16xf32>
    %c0_230 = arith.constant 0 : index
    %c0_231 = arith.constant 0 : index
    %1518 = vector.load %arg12[%c0_230, %c0_231] : memref<2x1024xf32, #tpu.memory_space<vmem>>, vector<2x1024xf32>
    %cst_232 = arith.constant dense<0.000000e+00> : vector<2x16xf32>
    %1519 = tpu.matmul %1518, %1516, %cst_232 {dimension_numbers = #tpu.dot_dimension_numbers<[1], [0], [0], [1], [0, 0, 1, 1], [], []>} : vector<2x1024xf32>, vector<1024x16xf32>, vector<2x16xf32> -> vector<2x16xf32>
    %1520 = vector.broadcast %1517 : vector<1x16xf32> to vector<2x16xf32>
    %1521 = arith.addf %1519, %1520 : vector<2x16xf32>
    %c0_233 = arith.constant 0 : index
    %c0_234 = arith.constant 0 : index
    %1522 = vector.load %arg10[%c0_233, %c0_234] : memref<2x16xf32, #tpu.memory_space<vmem>>, vector<2x16xf32>
    tpu.vector_store %arg10[%c0_233, %c0_234], %1521 {strides = array<i32>} : memref<2x16xf32, #tpu.memory_space<vmem>>, vector<2x16xf32>,
    return
  }
}

</mosaic_0001>

<bundles_post_ra>
// kernel: pimoe_forward.1
= control target key start
LH: loop header
LB: loop body
LE: loop exit
PB: predicated region body
PF: predicated region fallthrough
CT: control target
= control target key end

     0   :  { %17 = vsyncpa [#allocation4], 0  ;;  %vm54_vm0 = vcmask 1043456   ;;  %v4177_v2 = vmov 0.0|0.0   ;;  %vm4178_vm1 = vmmov 1   ;;  %vm4179_vm3 = vmmov 0   ;;  %s5815_s0 = inlined_call_operand.vmem [shape: f32[2,8], index: 0, kind: input, shape index: {}]   ;;  %s5816_s1 = inlined_call_operand.vmem [shape: f32[2,12], index: 1, kind: input, shape index: {}]   ;;  %s5817_s2 = inlined_call_operand.vmem [shape: f32[2,16], index: 2, kind: input, shape index: {}]   ;;  %s5818_s3 = inlined_call_operand.vmem [shape: f32[2,16], index: 3, kind: input, shape index: {}]   ;;  %s5819_s4 = inlined_call_operand.vmem [shape: f32[2,16], index: 4, kind: input, shape index: {}]   ;;  %s5820_s5 = inlined_call_operand.vmem [shape: f32[9,64], index: 5, kind: input, shape index: {}]   ;;  %s5821_s6 = inlined_call_operand.vmem [shape: f32[13,4], index: 6, kind: input, shape index: {}]   ;;  %s5822_s7 = inlined_call_operand.vmem [shape: f32[9,256], index: 7, kind: input, shape index: {}]   ;;  %s5823_s8 = inlined_call_operand.vmem [shape: f32[64,256], index: 8, kind: input, shape index: {}]   ;;  %s5824_s9 = inlined_call_operand.vmem [shape: f32[1025,16], index: 9, kind: input, shape index: {}]   ;;  %s5825_s10 = inlined_call_operand.hbm [shape: f32[2,16], index: 10, kind: output, shape index: {0}]   ;;  %s5826_s11 = inlined_call_operand.hbm [shape: f32[2,4], index: 11, kind: output, shape index: {1}]  }
   0x1   :  { %v44_v0 = vld [vmem:[%s5821_s6] sm:$0xff]  ;;  %v45_v1 = vld [vmem:[%s5821_s6 + $0x8] sm:$0x1f]  ;;  %3531 = vmatprep.subr.bf16.mxu0 %v4177_v2  ;;  %vm3533_vm2 = vmpackc.low %vm54_vm0, %vm4178_vm1  ;;  %v5827_v4 = vmov 0.0  }
   0x2   :  { %v3532_v3 = vpack.c.bf16 %v45_v1, %v44_v0  ;;  %3523 = vmatprep.mubr.msk.f32.mxu0 %vm4179_vm3, %v5827_v4  ;;  %660 = vmatprep.mubr.f32.mxu1 %v5827_v4 }
   0x3   :  { %18 = vsyncpa [#allocation6], 0  ;;  %v40_v5 = vld [vmem:[%s5816_s1] sm:$0x3]  ;;  %vm50_vm4 = vcmask 97280   ;;  %v4181_v6 = vmov 1   ;;  %v46_v8 = vlaneseq }
   0x4   :  { %3534 = vmatpush3.bf16.msk.msra.mxu0 %vm3533_vm2, %v3532_v3  ;;  %3931 = vset.pattern.permute.xlu1 %v4181_v6  ;;  %v4182_v7 = vmov 0   ;;  %vm181_vm5 = vcmask 25600   ;;  %v5831_v16 = vmov 2   ;;  %v5829_v17 = vmov 3   ;;  %v218_v57 = vld [vmem:[%s5820_s5] sm:$0xff]  ;;  %s4185_s13 = smov 112  }
   0x5   :  { %3526 = vmatprep.subr.mxu0 %v5827_v4  ;;  %3930 = vset.pattern.permute.xlu0 %v4182_v7  ;;  %v4279_v9 = vshrl.u32 %v46_v8, 7  ;;  %v39_v58 = vld [vmem:[%s5815_s0] sm:$0x3]  ;;  %vm224_vm2 = vcmask 64512   ;;  %s4186_s14 = smov 96   ;;  %s4187_s15 = smov 80  }
   0x6   :  { %v4330_v8 = vld [vmem:[%s5817_s2] sm:$0x3]  ;;  %s4189_s1 = smov 64   ;;  %s4202_s23 = smov [#allocation5]  }
   0x7   :  { %3524 = vmatmul.mubr.msk.f32.vlgmr.msra.gmra.mrb[0].mxu0 %vm50_vm4, %v40_v5  ;;  %5869 = vst [vmem:[#allocation9_spill] sm:$0xff] %v4279_v9  ;;  %v4282_v10 = vsub.s32 4, %v4279_v9  ;;  %vm593_vm4 = vcmask 523264   ;;  %s3331_s24 = sshll.u32 %s4202_s23, 4  ;;  %s3332_s24 = int_to_ptr.vmem [resolvable:$true] %s3331_s24 }
   0x8   :  { %3528 = vmatprep.mubr.msk.f32.mxu0 %vm4179_vm3, %v5827_v4  ;;  %3527 = vmatpush3.msra.mxu0 %v218_v57  ;;  %vm525_vm3 = vcmask 1042176   ;;  %s4129_s0 = scalar_lea.vmem %s3332_s24, 32  ;;  %p4134_p1 = scmp.lt.s32.totalorder %s3332_s24, %s3332_s24 }
   0x9   :  { %v49_v11 = vrot.slane %v45_v1, %v4282_v10  ;;  %p4130_p0 = scmp.ne.s32.totalorder %s3332_s24, %s4129_s0  ;;  %p4135_p2 = scmp.lt.s32.totalorder %s4129_s0, %s4129_s0 }
   0xb   :  { %3529 = vmatmul.mubr.msk.f32.vlgmr.msra.gmra.mrb[2].mxu0 %vm224_vm2, %v39_v58  ;;  %p4136_p3 = por %p4135_p2, %p4134_p1 }
   0xc   :  { %834 = vmatprep.mubr.f32.mxu0 %v5827_v4 }
   0xd   :  { %p4137_p4 = pnand %p4136_p3, %p4130_p0 }
  0xda   :  { %v124_v12 = vpop.f32.mrb[0].mxu0 }
  0xdb   :  { %v4285_v13 = vadd.f32 %v124_v12, %v49_v11  ;;  %v3525_v14 = vpop.f32.mrb[1].mxu0  ;;  %v4337_v11 = vld [vmem:[%s5818_s3] sm:$0x3] }
  0xdc   :  { %v4344_v12 = vld [vmem:[%s5819_s4] sm:$0x3] }
  0xdd   :  { %142 = vperm.xlu1 %3931, %v4285_v13   ;;  %v186_v15 = vsel %vm181_vm5, %v4285_v13, -inf }
  0xde   :  { %187 = vmax.xlane.f32.xlu0 %v186_v15  ;;  %v294_v0 = vpop.f32.mrb[2].mxu0 }
  0xdf   :  { %v3530_v1 = vpop.f32.mrb[3].mxu0 }
  0xe1   :  { %3932 = vset.pattern.permute.xlu1 %v5831_v16 }
  0xe2   :  { %154 = vperm.xlu1 %3932, %v4285_v13  }
  0xe6   :  { %3933 = vset.pattern.permute.xlu1 %v5829_v17 }
  0xe7   :  { %166 = vperm.xlu1 %3933, %v4285_v13  }
  0xeb   :  { %3934 = vset.pattern.permute.xlu1 %v4181_v6 }
  0xf4   :  { %130 = vperm.xlu0 %3930, %v4285_v13  }
 0x15c   :  { %v143_v18 = vpop.permute.xlu1 %142 }
 0x15d   :  { %vm145_vm6 = vcmp.lt.f32.partialorder %v143_v18, %v4285_v13  ;;  %vm149_vm7 = vcmp.le.f32.partialorder %v143_v18, %v4285_v13 }
 0x15e   :  { %v3347_v25 = vsel %vm145_vm6, 1.0, %v5827_v4  ;;  %v3348_v26 = vsel %vm149_vm7, 1.0, %v5827_v4  ;;  %vm687_vm6 = vcmask 779776   ;;  %vm700_vm7 = vcmask 517376  }
 0x161   :  { %v155_v21 = vpop.permute.xlu1 %154 }
 0x162   :  { %vm157_vm8 = vcmp.lt.f32.partialorder %v155_v21, %v4285_v13  ;;  %vm161_vm9 = vcmp.le.f32.partialorder %v155_v21, %v4285_v13 }
 0x163   :  { %v3349_v31 = vsel %vm157_vm8, 1.0, %v5827_v4  ;;  %v3350_v32 = vsel %vm161_vm9, 1.0, %v5827_v4 }
 0x166   :  { %v167_v23 = vpop.permute.xlu1 %166 }
 0x167   :  { %vm169_vm12 = vcmp.lt.f32.partialorder %v167_v23, %v4285_v13  ;;  %vm173_vm13 = vcmp.le.f32.partialorder %v167_v23, %v4285_v13 }
 0x168   :  { %v3351_v35 = vsel %vm169_vm12, 1.0, %v5827_v4  ;;  %v3352_v36 = vsel %vm173_vm13, 1.0, %v5827_v4 }
 0x16b   :  { %v188_v19 = vpop.xlane.xlu0 %187 }
 0x16c   :  { %v189_v20 = vsub.f32 %v4285_v13, %v188_v19 }
 0x16e   :  { %v190_v22 = vmul.f32 1.442695, %v189_v20 }
 0x170   :  { %3984 = vpow2.f32 %v190_v22 }
 0x173   :  { %v131_v24 = vpop.permute.xlu0 %130 }
 0x174   :  { %vm133_vm10 = vcmp.lt.f32.partialorder %v131_v24, %v4285_v13  ;;  %vm137_vm11 = vcmp.le.f32.partialorder %v131_v24, %v4285_v13 }
 0x175   :  { %v3345_v27 = vsel %vm133_vm10, 1.0, %v5827_v4  ;;  %v3346_v28 = vsel %vm137_vm11, 1.0, %v5827_v4 }
 0x176   :  { %v148_v29 = vadd.f32 %v3347_v25, %v3345_v27  ;;  %v152_v30 = vadd.f32 %v3348_v26, %v3346_v28 }
 0x178   :  { %v160_v33 = vadd.f32 %v3349_v31, %v148_v29  ;;  %v164_v34 = vadd.f32 %v3350_v32, %v152_v30  ;;  %v4188_v30 = vmov 15   ;;  %v361_v31 = vsub.s32 0, %v4279_v9  ;;  %v4363_v32 = vld [vmem:[%s5822_s7] sm:$0xff] }
 0x17a   :  { %v3985_v37 = vpop.eup %3984  ;;  %v172_v38 = vadd.f32 %v3351_v35, %v160_v33  ;;  %v176_v39 = vadd.f32 %v3352_v36, %v164_v34  ;;  %v4368_v33 = vld [vmem:[%s5822_s7 + $0x8] sm:$0xff]  ;;  %v4371_v34 = vrot.slane %v4363_v32, %v361_v31  ;;  %v402_v36 = vsub.s32 1, %v4279_v9 }
 0x17b   :  { %v192_v40 = vsel %vm181_vm5, %v3985_v37, 0.0  ;;  %v4374_v35 = vrot.slane %v4368_v33, %v361_v31 }
 0x17c   :  { %193 = vadd.xlane.f32.xlu1 %v192_v40  ;;  %vm177_vm14 = vcmp.le.f32.partialorder %v172_v38, 2.0  ;;  %vm178_vm15 = vcmp.gt.f32.partialorder %v176_v39, 2.0  ;;  %v435_v38 = vsub.s32 2, %v4279_v9  ;;  %v451_v40 = vsub.s32 6, %v4279_v9 }
 0x17d   :  { %vm179_vm0 = vmand %vm177_vm14, %vm178_vm15 }
 0x17e   :  { %v180_v41 = vsel %vm179_vm0, %v4285_v13, -inf }
 0x17f   :  { %v182_v42 = vsel %vm181_vm5, %v180_v41, -inf }
 0x180   :  { %183 = vmax.xlane.f32.xlu0 %v182_v42 }
 0x209   :  { %v194_v43 = vpop.xlane.xlu1 %193 }
 0x20a   :  { %3986 = vrcp.f32 %v194_v43 }
 0x20d   :  { %v184_v51 = vpop.xlane.xlu0 %183 }
 0x20e   :  { %vm185_vm1 = vcmp.lt.f32.partialorder %v4285_v13, %v184_v51  ;;  %v3354_v13 = vld [vmem:[%s5820_s5 + $0x8] ss:$0 sm:$0xff] }
 0x20f   :  { %v295_v14 = vadd.f32 %v3354_v13, %v294_v0 }
 0x214   :  { %v3987_v44 = vpop.eup %3986 }
 0x215   :  { %v196_v45 = vmul.f32 %v3987_v44, %v3985_v37  ;;  %v418_v37 = vsub.s32 5, %v4279_v9  ;;  %v4385_v44 = vld [vmem:[%s5822_s7 + $0x10] ss:$0 sm:$0xff] }
 0x217   :  { %v197_v46 = vadd.f32 1.0, %v196_v45  ;;  %v201_v47 = vmul.f32 1.442695, %v196_v45  ;;  %v4390_v45 = vld [vmem:[%s5822_s7 + $0x18] ss:$0 sm:$0xff]  ;;  %v4410_v51 = vrot.slane %v4368_v33, %v418_v37 }
 0x219   :  { %3988 = vlog2.f32 %v197_v46  ;;  %v4394_v46 = vrot.slane %v4363_v32, %v4282_v10 }
 0x21a   :  { %3990 = vpow2.f32 %v201_v47  ;;  %v4398_v47 = vrot.slane %v4368_v33, %v4282_v10  ;;  %v4417_v10 = vrot.slane %v4368_v33, %v435_v38 }
 0x223   :  { %v3989_v48 = vpop.eup %3988 }
 0x224   :  { %v3991_v49 = vpop.eup %3990  ;;  %v199_v50 = vmul.f32 0.6931472, %v3989_v48  ;;  %v4401_v48 = vrot.slane %v4363_v32, %v402_v36 }
 0x225   :  { %v3353_v52 = vadd.f32 -1.0, %v3991_v49  ;;  %v4404_v49 = vrot.slane %v4368_v33, %v402_v36 }
 0x226   :  { %v200_v53 = vmul.f32 0.5, %v199_v50  ;;  %v4407_v50 = vrot.slane %v4363_v32, %v418_v37 }
 0x227   :  { %v204_v54 = vmul.f32 0.5, %v3353_v52  ;;  %v4413_v52 = vrot.slane %v4363_v32, %v435_v38 }
 0x229   :  { %v205_v55 = vsel %vm185_vm1, %v200_v53, %v204_v54  ;;  %v468_v53 = vsub.s32 3, %v4279_v9  ;;  %v4420_v54 = vrot.slane %v4363_v32, %v451_v40 }
 0x22a   :  { %v206_v56 = vsel %vm181_vm5, %v205_v55, -inf }
 0x22b   :  { %207 = vmax.xlane.f32.xlu1 %v206_v56 }
 0x2b8   :  { %v208_v59 = vpop.xlane.xlu1 %207 }
 0x2b9   :  { %v209_v60 = vsub.f32 %v205_v55, %v208_v59 }
 0x2bb   :  { %v210_v61 = vmul.f32 1.442695, %v209_v60 }
 0x2bd   :  { %3992 = vpow2.f32 %v210_v61 }
 0x2c7   :  { %v3993_v62 = vpop.eup %3992 }
 0x2c8   :  { %v212_v63 = vsel %vm181_vm5, %v3993_v62, 0.0 }
 0x2c9   :  { %213 = vadd.xlane.f32.xlu1 %v212_v63 }
 0x356   :  { %v214_v2 = vpop.xlane.xlu1 %213 }
 0x357   :  { %3994 = vrcp.f32 %v214_v2 }
 0x361   :  { %v3995_v3 = vpop.eup %3994 }
 0x362   :  { %v216_v5 = vmul.f32 %v3995_v3, %v3993_v62 }
 0x364   :  { %300 = vperm.xlu0 %3930, %v216_v5   ;;  %217 = vst.msk [vmem:[#allocation5] sm:$0x3] %vm181_vm5, %v216_v5  ;;  %305 = vperm.xlu1 %3934, %v216_v5   ;;  %vm523_vm5 = vcmask 254976  }
 0x368   :  { %397 = vperm.xlu0 %3930, %v4330_v8   ;;  %3935 = vset.pattern.permute.xlu1 %v5831_v16 }
 0x369   :  { %315 = vperm.xlu1 %3935, %v216_v5  }
 0x36c   :  { %430 = vperm.xlu0 %3930, %v4337_v11  }
 0x36d   :  { %3936 = vset.pattern.permute.xlu1 %v5829_v17 }
 0x36e   :  { %325 = vperm.xlu1 %3936, %v216_v5  }
 0x370   :  { %463 = vperm.xlu0 %3930, %v4344_v12  }
 0x372   :  { %3937 = vset.pattern.permute.xlu1 %v4182_v7 }
 0x374   :  { %3939 = vset.pattern.permute.xlu0 %v4181_v6 }
 0x3e3   :  { %v306_v15 = vpop.permute.xlu1 %305  ;;  %v301_v23 = vpop.permute.xlu0 %300 }
 0x3e4   :  { %v308_v18 = vmul.f32 %v306_v15, %v295_v14  ;;  %v303_v24 = vmul.f32 %v301_v23, %v295_v14  ;;  %v4435_v15 = vrot.slane %v4368_v33, %v451_v40 }
 0x3e6   :  { %310 = vrot.lane.b32.xlu1 %v308_v18, %s4185_s13  ;;  %v4438_v18 = vrot.slane %v4363_v32, %v468_v53 }
 0x3e7   :  { %v398_v41 = vpop.permute.xlu0 %397 }
 0x3e8   :  { %v316_v19 = vpop.permute.xlu1 %315  ;;  %v408_v62 = vmul.f32 %v4401_v48, %v398_v41  ;;  %v409_v63 = vmul.f32 %v4404_v49, %v398_v41  ;;  %v2727_v31 = vmul.f32 %v4410_v51, %v398_v41 }
 0x3e9   :  { %v318_v20 = vmul.f32 %v316_v19, %v295_v14  ;;  %v4441_v19 = vrot.slane %v4368_v33, %v468_v53 }
 0x3eb   :  { %320 = vrot.lane.b32.xlu1 %v318_v20, %s4186_s14  ;;  %v431_v0 = vpop.permute.xlu0 %430  ;;  %v484_v20 = vsub.s32 7, %v4279_v9 }
 0x3ec   :  { %v441_v36 = vmul.f32 %v4413_v52, %v431_v0  ;;  %v442_v37 = vmul.f32 %v4417_v10, %v431_v0 }
 0x3ed   :  { %v326_v21 = vpop.permute.xlu1 %325 }
 0x3ee   :  { %v328_v22 = vmul.f32 %v326_v21, %v295_v14 }
 0x3ef   :  { %v4452_v38 = vpop.permute.xlu0 %463 }
 0x3f0   :  { %330 = vrot.lane.b32.xlu1 %v328_v22, %s4187_s15  ;;  %5870 = vst [vmem:[#allocation10_spill] sm:$0xff] %v4452_v38 }
 0x458   :  { %v311_v7 = vpop.permute.xlu1 %310 }
 0x459   :  { %v313_v26 = vadd.f32 %v311_v7, %v303_v24 }
 0x45d   :  { %v321_v25 = vpop.permute.xlu1 %320 }
 0x45e   :  { %v323_v27 = vadd.f32 %v321_v25, %v313_v26 }
 0x462   :  { %v331_v28 = vpop.permute.xlu1 %330 }
 0x463   :  { %v4352_v29 = vadd.f32 %v331_v28, %v323_v27 }
 0x465   :  { %356 = vperm.xlu1 %3937, %v4352_v29  }
 0x469   :  { %3938 = vset.pattern.permute.xlu1 %v4188_v30  ;;  %v2726_v30 = vmul.f32 %v4407_v50, %v398_v41 }
 0x46a   :  { %380 = vperm.xlu1 %3938, %v4352_v29  }
 0x46e   :  { %413 = vperm.xlu1 %3938, %v4330_v8  }
 0x472   :  { %446 = vperm.xlu1 %3938, %v4337_v11  }
 0x476   :  { %479 = vperm.xlu1 %3938, %v4344_v12  }
 0x4e4   :  { %v357_v39 = vpop.permute.xlu1 %356 }
 0x4e5   :  { %v367_v42 = vmul.f32 %v4371_v34, %v357_v39  ;;  %v368_v43 = vmul.f32 %v4374_v35, %v357_v39  ;;  %v2718_v1 = vmul.f32 %v4394_v46, %v357_v39  ;;  %v2719_v2 = vmul.f32 %v4398_v47, %v357_v39 }
 0x4e7   :  { %v377_v55 = vadd.f32 %v4385_v44, %v367_v42  ;;  %v378_v56 = vadd.f32 %v4390_v45, %v368_v43 }
 0x4e9   :  { %v381_v57 = vpop.permute.xlu1 %380 }
 0x4ea   :  { %v391_v58 = vmul.f32 %v4394_v46, %v381_v57  ;;  %v392_v59 = vmul.f32 %v4398_v47, %v381_v57  ;;  %v2714_v60 = vmul.f32 %v381_v57, %v4371_v34  ;;  %v2715_v61 = vmul.f32 %v381_v57, %v4374_v35 }
 0x4ec   :  { %v393_v3 = vadd.f32 %v391_v58, %v377_v55  ;;  %v394_v5 = vadd.f32 %v392_v59, %v378_v56  ;;  %v2716_v13 = vadd.f32 %v4385_v44, %v2714_v60  ;;  %v2717_v14 = vadd.f32 %v4390_v45, %v2715_v61 }
 0x4ed   :  { %v414_v21 = vpop.permute.xlu1 %413 }
 0x4ee   :  { %v410_v22 = vadd.f32 %v408_v62, %v393_v3  ;;  %v411_v7 = vadd.f32 %v409_v63, %v394_v5  ;;  %v2720_v23 = vadd.f32 %v2718_v1, %v2716_v13  ;;  %v2721_v24 = vadd.f32 %v2719_v2, %v2717_v14 }
 0x4ef   :  { %v424_v25 = vmul.f32 %v4407_v50, %v414_v21  ;;  %v425_v26 = vmul.f32 %v4410_v51, %v414_v21  ;;  %v2722_v27 = vmul.f32 %v414_v21, %v4401_v48  ;;  %v2723_v28 = vmul.f32 %v414_v21, %v4404_v49 }
 0x4f0   :  { %v4459_v62 = vrot.slane %v4363_v32, %v484_v20  ;;  %v2734_v63 = vmul.f32 %v4420_v54, %v431_v0  ;;  %v2735_v1 = vmul.f32 %v4435_v15, %v431_v0  ;;  %v474_v2 = vmul.f32 %v4438_v18, %v4452_v38 }
 0x4f1   :  { %v426_v39 = vadd.f32 %v424_v25, %v410_v22  ;;  %v427_v40 = vadd.f32 %v425_v26, %v411_v7  ;;  %v2724_v42 = vadd.f32 %v2722_v27, %v2720_v23  ;;  %v2725_v43 = vadd.f32 %v2723_v28, %v2721_v24  ;;  %v447_v53 = vpop.permute.xlu1 %446 }
 0x4f2   :  { %v457_v55 = vmul.f32 %v4420_v54, %v447_v53  ;;  %v458_v56 = vmul.f32 %v4435_v15, %v447_v53  ;;  %v2730_v57 = vmul.f32 %v447_v53, %v4413_v52  ;;  %v2731_v58 = vmul.f32 %v447_v53, %v4417_v10 }
 0x4f3   :  { %v443_v41 = vadd.f32 %v441_v36, %v426_v39  ;;  %v444_v59 = vadd.f32 %v442_v37, %v427_v40  ;;  %v2728_v60 = vadd.f32 %v2726_v30, %v2724_v42  ;;  %v2729_v61 = vadd.f32 %v2727_v31, %v2725_v43  ;;  %v339_v40 = vld [vmem:[%s5823_s8 + $0x8] sm:$0xff]  ;;  %v341_v42 = vld [vmem:[%s5823_s8 + $0x18] sm:$0xff]  ;;  %v338_v43 = vld [vmem:[%s5823_s8] sm:$0xff] }
 0x4f4   :  { %v4468_v22 = vrot.slane %v4368_v33, %v484_v20  ;;  %v475_v7 = vmul.f32 %v4441_v19, %v4452_v38  ;;  %v4190_v39 = vmov 14   ;;  %v4496_v53 = vpack.c.bf16 %v341_v42, %v339_v40 }
 0x4f5   :  { %v459_v3 = vadd.f32 %v457_v55, %v443_v41  ;;  %v460_v5 = vadd.f32 %v458_v56, %v444_v59  ;;  %v4465_v13 = vpop.permute.xlu1 %479  ;;  %v2732_v14 = vadd.f32 %v2730_v57, %v2728_v60  ;;  %v2733_v21 = vadd.f32 %v2731_v58, %v2729_v61  ;;  %3940 = vset.pattern.permute.xlu1 %v4190_v39  ;;  %v340_v55 = vld [vmem:[%s5823_s8 + $0x10] sm:$0xff]  ;;  %v343_v56 = vld [vmem:[%s5823_s8 + $0x28] sm:$0xff]  ;;  %v345_v57 = vld [vmem:[%s5823_s8 + $0x38] sm:$0xff] }
 0x4f6   :  { %5871 = vst [vmem:[#allocation11_spill] sm:$0xff] %v4465_v13  ;;  %v490_v32 = vmul.f32 %v4459_v62, %v4465_v13  ;;  %v491_v26 = vmul.f32 %v4468_v22, %v4465_v13  ;;  %v4507_v58 = vpack.c.bf16 %v340_v55, %v338_v43  ;;  %v4509_v41 = vpack.c.bf16 %v345_v57, %v343_v56  ;;  %v342_v59 = vld [vmem:[%s5823_s8 + $0x20] sm:$0xff]  ;;  %v344_v60 = vld [vmem:[%s5823_s8 + $0x30] sm:$0xff]  ;;  %v347_v61 = vld [vmem:[%s5823_s8 + $0x48] sm:$0xff] }
 0x4f7   :  { %v476_v23 = vadd.f32 %v474_v2, %v459_v3  ;;  %v4474_v0 = vadd.f32 %v2734_v63, %v2732_v14  ;;  %v4476_v24 = vadd.f32 %v2735_v1, %v2733_v21  ;;  %v477_v25 = vadd.f32 %v475_v7, %v460_v5  ;;  %3536 = vmatprep.subr.bf16.mxu1 %v4496_v53  ;;  %v349_v63 = vld [vmem:[%s5823_s8 + $0x58] sm:$0xff]  ;;  %v346_v3 = vld [vmem:[%s5823_s8 + $0x40] sm:$0xff]  ;;  %v348_v5 = vld [vmem:[%s5823_s8 + $0x50] sm:$0xff] }
 0x4f8   :  { %3552 = vmatprep.subr.bf16.mxu0 %v4496_v53  ;;  %3538 = vmatpush1.bf16.msra.mxu1 %v4507_v58  ;;  %v4526_v1 = vpack.c.bf16 %v344_v60, %v342_v59  ;;  %v4530_v2 = vpack.c.bf16 %v349_v63, %v347_v61  ;;  %v351_v14 = vld [vmem:[%s5823_s8 + $0x68] sm:$0xff]  ;;  %v353_v21 = vld [vmem:[%s5823_s8 + $0x78] sm:$0xff] }
 0x4f9   :  { %5872 = vst [vmem:[#allocation12_spill] sm:$0xff] %v4474_v0  ;;  %5873 = vst [vmem:[#allocation13_spill] sm:$0xff] %v4476_v24  ;;  %v492_v27 = vadd.f32 %v490_v32, %v476_v23  ;;  %v493_v30 = vadd.f32 %v491_v26, %v477_v25  ;;  %3554 = vmatpush1.bf16.msra.mxu0 %v4507_v58  ;;  %3540 = vmatprep.subr.bf16.mxu1 %v4509_v41  ;;  %v350_v23 = vld [vmem:[%s5823_s8 + $0x60] sm:$0xff]  ;;  %v352_v25 = vld [vmem:[%s5823_s8 + $0x70] sm:$0xff] }
 0x4fa   :  { %3556 = vmatprep.subr.bf16.mxu0 %v4509_v41  ;;  %v4546_v32 = vpack.c.bf16 %v348_v5, %v346_v3  ;;  %v4550_v7 = vpack.c.bf16 %v353_v21, %v351_v14  ;;  %v4560_v26 = vpack.c.bf16 %v352_v25, %v350_v23 }
 0x4fb   :  { %v494_v28 = vmul.f32 0.5, %v492_v27  ;;  %v499_v27 = vmul.f32 0.5, %v493_v30 }
 0x4fc   :  { %3542 = vmatpush1.bf16.msra.mxu1 %v4526_v1 }
 0x4fd   :  { %3996 = vtanh.f32 %v494_v28  ;;  %3558 = vmatpush1.bf16.msra.mxu0 %v4526_v1  ;;  %3544 = vmatprep.subr.bf16.mxu1 %v4530_v2 }
 0x4fe   :  { %3998 = vtanh.f32 %v493_v30  ;;  %3560 = vmatprep.subr.bf16.mxu0 %v4530_v2 }
 0x4ff   :  { %4000 = vtanh.f32 %v499_v27 }
 0x500   :  { %3546 = vmatpush1.bf16.msra.mxu1 %v4546_v32 }
 0x501   :  { %3562 = vmatpush1.bf16.msra.mxu0 %v4546_v32  ;;  %3548 = vmatprep.subr.bf16.mxu1 %v4550_v7 }
 0x502   :  { %3564 = vmatprep.subr.bf16.mxu0 %v4550_v7 }
 0x504   :  { %3550 = vmatpush1.bf16.msra.mxu1 %v4560_v26 }
 0x505   :  { %3566 = vmatpush1.bf16.msra.mxu0 %v4560_v26  ;;  %3568 = vmatprep.subr.bf16.mxu1 %v4496_v53 }
 0x506   :  { %3584 = vmatprep.subr.bf16.mxu0 %v4496_v53 }
 0x507   :  { %v3997_v33 = vpop.eup %3996 }
 0x508   :  { %v496_v20 = vmul.f32 0.5, %v3997_v33  ;;  %v3999_v36 = vpop.eup %3998 }
 0x50a   :  { %v497_v31 = vadd.f32 0.5, %v496_v20 }
 0x50c   :  { %v504_v37 = vmul.f32 %v3999_v36, %v497_v31  ;;  %v503_v28 = vmul.f32 0.0, %v497_v31  ;;  %v4001_v36 = vpop.eup %4000 }
 0x50e   :  { %506 = vrot.lane.b32.xlu0 %v504_v37, %s4189_s1  ;;  %v501_v37 = vmul.f32 0.5, %v4001_v36 }
 0x510   :  { %v502_v40 = vadd.f32 0.5, %v501_v37 }
 0x512   :  { %528 = vperm.xlu0 %3939, %v4352_v29  }
 0x516   :  { %3942 = vset.pattern.permute.xlu0 %v4190_v39 }
 0x517   :  { %552 = vperm.xlu0 %3942, %v4330_v8  }
 0x51b   :  { %3944 = vset.pattern.permute.xlu0 %v4181_v6 }
 0x51c   :  { %576 = vperm.xlu0 %3944, %v4344_v12  }
 0x580   :  { %v507_v33 = vpop.permute.xlu0 %506 }
 0x581   :  { %v4569_v20 = vadd.f32 %v507_v33, %v503_v28 }
 0x583   :  { %4002 = vtanh.f32 %v4569_v20 }
 0x58d   :  { %v4003_v42 = vpop.eup %4002 }
 0x58e   :  { %v4572_v43 = vmul.f32 %v4003_v42, %v502_v40 }
 0x590   :  { %5874 = vst [vmem:[#allocation14_spill] sm:$0xff] %v4572_v43  ;;  %591 = vrot.lane.b32.xlu1 %v4572_v43, %s4189_s1  ;;  %526 = vst.msk [vmem:[#allocation2 + $0xe] sm:$0x3] %vm525_vm3, %v4572_v43 }
 0x594   :  { %536 = vperm.xlu1 %3940, %v4352_v29  }
 0x598   :  { %3941 = vset.pattern.permute.xlu1 %v4181_v6  ;;  %v529_v6 = vpop.permute.xlu0 %528 }
 0x599   :  { %544 = vperm.xlu1 %3941, %v4330_v8   ;;  %v2578_v57 = vmul.f32 %v529_v6, %v4394_v46  ;;  %v2579_v59 = vmul.f32 %v529_v6, %v4398_v47  ;;  %v531_v27 = vmul.f32 %v529_v6, %v4371_v34  ;;  %v532_v33 = vmul.f32 %v529_v6, %v4374_v35 }
 0x59b   :  { %v533_v36 = vadd.f32 %v4385_v44, %v531_v27 }
 0x59d   :  { %560 = vperm.xlu1 %3941, %v4337_v11  }
 0x5a1   :  { %3943 = vset.pattern.permute.xlu1 %v4190_v39  ;;  %v553_v39 = vpop.permute.xlu0 %552 }
 0x5a2   :  { %568 = vperm.xlu1 %3943, %v4337_v11   ;;  %v2582_v63 = vmul.f32 %v553_v39, %v4401_v48  ;;  %v2583_v3 = vmul.f32 %v553_v39, %v4404_v49 }
 0x5a6   :  { %584 = vperm.xlu1 %3943, %v4344_v12  }
 0x5aa   :  { %3945 = vset.pattern.permute.xlu1 %v5831_v16 }
 0x602   :  { %v592_v30 = vpop.permute.xlu1 %591 }
 0x603   :  { %3358 = vmatmul.mubr.msk.f32.vlgmr.msra.gmra.mrb[0].mxu1 %vm593_vm4, %v592_v30 }
 0x604   :  { %3570 = vmatpush1.bf16.msra.mxu1 %v4507_v58  ;;  %1006 = vmatprep.mubr.f32.mxu1 %v5827_v4 }
 0x605   :  { %3572 = vmatprep.subr.bf16.mxu1 %v4509_v41 }
 0x608   :  { %3574 = vmatpush1.bf16.msra.mxu1 %v4526_v1 }
 0x609   :  { %3576 = vmatprep.subr.bf16.mxu1 %v4530_v2 }
 0x60c   :  { %3578 = vmatpush1.bf16.msra.mxu1 %v4546_v32 }
 0x60d   :  { %3580 = vmatprep.subr.bf16.mxu1 %v4550_v7 }
 0x610   :  { %3582 = vmatpush1.bf16.msra.mxu1 %v4560_v26 }
 0x611   :  { %3600 = vmatprep.subr.bf16.mxu1 %v4496_v53 }
 0x613   :  { %v537_v31 = vpop.permute.xlu1 %536 }
 0x614   :  { %v2574_v55 = vmul.f32 %v537_v31, %v4371_v34  ;;  %v2575_v56 = vmul.f32 %v537_v31, %v4374_v35  ;;  %v539_v28 = vmul.f32 %v537_v31, %v4394_v46  ;;  %v540_v42 = vmul.f32 %v537_v31, %v4398_v47 }
 0x616   :  { %v2576_v60 = vadd.f32 %v4385_v44, %v2574_v55  ;;  %v2577_v61 = vadd.f32 %v4390_v45, %v2575_v56  ;;  %v541_v30 = vadd.f32 %v539_v28, %v533_v36  ;;  %v534_v55 = vadd.f32 %v4390_v45, %v532_v33 }
 0x617   :  { %v555_v56 = vmul.f32 %v553_v39, %v4407_v50 }
 0x618   :  { %v2580_v5 = vadd.f32 %v2578_v57, %v2576_v60  ;;  %v2581_v14 = vadd.f32 %v2579_v59, %v2577_v61  ;;  %v4608_v25 = vpop.permute.xlu1 %544  ;;  %v542_v60 = vadd.f32 %v540_v42, %v534_v55  ;;  %v556_v61 = vmul.f32 %v553_v39, %v4410_v51 }
 0x619   :  { %5877 = vst [vmem:[#allocation17_spill] sm:$0xff] %v4608_v25  ;;  %v547_v37 = vmul.f32 %v4608_v25, %v4401_v48  ;;  %v548_v57 = vmul.f32 %v4608_v25, %v4404_v49 }
 0x61a   :  { %v4604_v21 = vadd.f32 %v2582_v63, %v2580_v5  ;;  %v4606_v23 = vadd.f32 %v2583_v3, %v2581_v14  ;;  %v4630_v14 = vpop.permute.xlu0 %576 }
 0x61b   :  { %v549_v59 = vadd.f32 %v547_v37, %v541_v30  ;;  %v550_v63 = vadd.f32 %v548_v57, %v542_v60  ;;  %5880 = vst [vmem:[#allocation20_spill] sm:$0xff] %v4630_v14  ;;  %v579_v36 = vmul.f32 %v4630_v14, %v4438_v18  ;;  %v580_v55 = vmul.f32 %v4630_v14, %v4441_v19 }
 0x61c   :  { %5875 = vst [vmem:[#allocation15_spill] sm:$0xff] %v4604_v21  ;;  %5876 = vst [vmem:[#allocation16_spill] sm:$0xff] %v4606_v23  ;;  %v4616_v40 = vpop.permute.xlu1 %560 }
 0x61d   :  { %5878 = vst [vmem:[#allocation18_spill] sm:$0xff] %v4616_v40  ;;  %v563_v3 = vmul.f32 %v4616_v40, %v4413_v52  ;;  %v557_v5 = vadd.f32 %v555_v56, %v549_v59  ;;  %v564_v27 = vmul.f32 %v4616_v40, %v4417_v10  ;;  %v558_v33 = vadd.f32 %v556_v61, %v550_v63 }
 0x61f   :  { %v565_v28 = vadd.f32 %v563_v3, %v557_v5  ;;  %v566_v30 = vadd.f32 %v564_v27, %v558_v33 }
 0x621   :  { %v4623_v6 = vpop.permute.xlu1 %568 }
 0x622   :  { %5879 = vst [vmem:[#allocation19_spill] sm:$0xff] %v4623_v6  ;;  %v571_v31 = vmul.f32 %v4623_v6, %v4420_v54  ;;  %v572_v39 = vmul.f32 %v4623_v6, %v4435_v15 }
 0x624   :  { %v573_v37 = vadd.f32 %v571_v31, %v565_v28  ;;  %v574_v59 = vadd.f32 %v572_v39, %v566_v30  ;;  %v4191_v39 = vmov 13  }
 0x625   :  { %v4638_v42 = vpop.permute.xlu1 %584  ;;  %3946 = vset.pattern.permute.xlu0 %v4191_v39 }
 0x626   :  { %5881 = vst [vmem:[#allocation21_spill] sm:$0xff] %v4638_v42  ;;  %v581_v56 = vadd.f32 %v579_v36, %v573_v37  ;;  %v587_v57 = vmul.f32 %v4638_v42, %v4459_v62  ;;  %v582_v61 = vadd.f32 %v580_v55, %v574_v59  ;;  %v588_v63 = vmul.f32 %v4638_v42, %v4468_v22 }
 0x628   :  { %v589_v60 = vadd.f32 %v587_v57, %v581_v56  ;;  %v590_v4 = vadd.f32 %v588_v63, %v582_v61 }
 0x6d6   :  { %v662_v3 = vpop.f32.mrb[0].mxu1 }
 0x6d7   :  { %v667_v5 = vadd.f32 %v662_v3, %v589_v60  ;;  %v664_v31 = vpop.f32.mrb[1].mxu1  ;;  %v5885_v3 = vmov 0.0  }
 0x6d8   :  { %v668_v27 = vadd.f32 %v664_v31, %v590_v4  ;;  %v5882_v4 = vmov 2  }
 0x6d9   :  { %v669_v28 = vmul.f32 0.5, %v667_v5 }
 0x6db   :  { %4004 = vtanh.f32 %v669_v28 }
 0x6dc   :  { %4006 = vtanh.f32 %v668_v27 }
 0x6e5   :  { %v4005_v33 = vpop.eup %4004 }
 0x6e6   :  { %v671_v17 = vmul.f32 0.5, %v4005_v33  ;;  %v4007_v37 = vpop.eup %4006 }
 0x6e8   :  { %v672_v36 = vadd.f32 0.5, %v671_v17  ;;  %v674_v17 = vmul.f32 0.5, %v668_v27 }
 0x6ea   :  { %v679_v16 = vmul.f32 %v4007_v37, %v672_v36  ;;  %4008 = vtanh.f32 %v674_v17  ;;  %v678_v30 = vmul.f32 %v672_v36, %v4569_v20  ;;  %v5884_v20 = vmov 3  }
 0x6ec   :  { %681 = vrot.lane.b32.xlu1 %v679_v16, %s4189_s1 }
 0x6f0   :  { %703 = vperm.xlu1 %3945, %v4352_v29  }
 0x6f4   :  { %719 = vperm.xlu1 %3945, %v4330_v8   ;;  %v4009_v56 = vpop.eup %4008 }
 0x6f5   :  { %v676_v57 = vmul.f32 0.5, %v4009_v56 }
 0x6f7   :  { %v677_v59 = vadd.f32 0.5, %v676_v57 }
 0x6f8   :  { %3947 = vset.pattern.permute.xlu1 %v4191_v39 }
 0x6f9   :  { %727 = vperm.xlu1 %3947, %v4330_v8  }
 0x6fd   :  { %743 = vperm.xlu1 %3947, %v4337_v11  }
 0x701   :  { %3949 = vset.pattern.permute.xlu1 %v5882_v4 }
 0x702   :  { %751 = vperm.xlu1 %3949, %v4344_v12  }
 0x75e   :  { %v682_v16 = vpop.permute.xlu1 %681 }
 0x75f   :  { %v4654_v55 = vadd.f32 %v682_v16, %v678_v30 }
 0x761   :  { %4010 = vtanh.f32 %v4654_v55 }
 0x76b   :  { %v4011_v60 = vpop.eup %4010 }
 0x76c   :  { %v4657_v61 = vmul.f32 %v4011_v60, %v677_v59 }
 0x76e   :  { %5883 = vst [vmem:[#allocation22_spill] sm:$0xff] %v4657_v61  ;;  %766 = vrot.lane.b32.xlu0 %v4657_v61, %s4189_s1 }
 0x76f   :  { %v704_v5 = vpop.permute.xlu1 %703 }
 0x770   :  { %v2438_v37 = vmul.f32 %v704_v5, %v4394_v46 }
 0x772   :  { %711 = vperm.xlu0 %3946, %v4352_v29  }
 0x773   :  { %v720_v31 = vpop.permute.xlu1 %719 }
 0x774   :  { %v2446_v56 = vmul.f32 %v720_v31, %v4407_v50  ;;  %v2447_v57 = vmul.f32 %v720_v31, %v4410_v51 }
 0x776   :  { %3948 = vset.pattern.permute.xlu0 %v5882_v4 }
 0x777   :  { %735 = vperm.xlu0 %3948, %v4337_v11  }
 0x778   :  { %v728_v36 = vpop.permute.xlu1 %727 }
 0x779   :  { %v2442_v30 = vmul.f32 %v728_v36, %v4401_v48  ;;  %v2443_v16 = vmul.f32 %v728_v36, %v4404_v49 }
 0x77b   :  { %3950 = vset.pattern.permute.xlu0 %v4191_v39  ;;  %v2439_v39 = vmul.f32 %v704_v5, %v4398_v47 }
 0x77c   :  { %759 = vperm.xlu0 %3950, %v4344_v12   ;;  %v744_v0 = vpop.permute.xlu1 %743 }
 0x77d   :  { %v2450_v13 = vmul.f32 %v744_v0, %v4413_v52 }
 0x780   :  { %3951 = vset.pattern.permute.xlu0 %v5884_v20 }
 0x781   :  { %875 = vperm.xlu0 %3951, %v4352_v29  }
 0x7e0   :  { %v767_v63 = vpop.permute.xlu0 %766 }
 0x7e1   :  { %3359 = vmatmul.mubr.msk.f32.vlgmr.msra.gmra.mrb[4].mxu0 %vm593_vm4, %v767_v63 }
 0x7e2   :  { %3586 = vmatpush1.bf16.msra.mxu0 %v4507_v58  ;;  %1178 = vmatprep.mubr.f32.mxu0 %v5885_v3 }
 0x7e3   :  { %3588 = vmatprep.subr.bf16.mxu0 %v4509_v41 }
 0x7e6   :  { %3590 = vmatpush1.bf16.msra.mxu0 %v4526_v1 }
 0x7e7   :  { %3592 = vmatprep.subr.bf16.mxu0 %v4530_v2 }
 0x7ea   :  { %3594 = vmatpush1.bf16.msra.mxu0 %v4546_v32 }
 0x7eb   :  { %3596 = vmatprep.subr.bf16.mxu0 %v4550_v7 }
 0x7ee   :  { %3598 = vmatpush1.bf16.msra.mxu0 %v4560_v26 }
 0x7ef   :  { %3616 = vmatprep.subr.bf16.mxu0 %v4496_v53 }
 0x7f1   :  { %v712_v28 = vpop.permute.xlu0 %711 }
 0x7f2   :  { %v2434_v27 = vmul.f32 %v712_v28, %v4371_v34  ;;  %v2435_v33 = vmul.f32 %v712_v28, %v4374_v35 }
 0x7f4   :  { %v2436_v4 = vadd.f32 %v4385_v44, %v2434_v27  ;;  %v2437_v17 = vadd.f32 %v4390_v45, %v2435_v33  ;;  %v2451_v27 = vmul.f32 %v744_v0, %v4417_v10 }
 0x7f6   :  { %v2440_v59 = vadd.f32 %v2438_v37, %v2436_v4  ;;  %v2441_v60 = vadd.f32 %v2439_v39, %v2437_v17  ;;  %v736_v63 = vpop.permute.xlu0 %735 }
 0x7f7   :  { %v2454_v43 = vmul.f32 %v736_v63, %v4420_v54  ;;  %v2455_v9 = vmul.f32 %v736_v63, %v4435_v15 }
 0x7f8   :  { %v2444_v38 = vadd.f32 %v2442_v30, %v2440_v59  ;;  %v2445_v24 = vadd.f32 %v2443_v16, %v2441_v60  ;;  %v730_v60 = vmul.f32 %v728_v36, %v4407_v50 }
 0x7fa   :  { %v2448_v61 = vadd.f32 %v2446_v56, %v2444_v38  ;;  %v2449_v33 = vadd.f32 %v2447_v57, %v2445_v24  ;;  %v706_v38 = vmul.f32 %v704_v5, %v4371_v34  ;;  %v714_v24 = vmul.f32 %v712_v28, %v4394_v46 }
 0x7fb   :  { %v760_v14 = vpop.permute.xlu0 %759  ;;  %v707_v56 = vmul.f32 %v704_v5, %v4374_v35  ;;  %v738_v5 = vmul.f32 %v736_v63, %v4413_v52 }
 0x7fc   :  { %v2452_v42 = vadd.f32 %v2450_v13, %v2448_v61  ;;  %v2453_v40 = vadd.f32 %v2451_v27, %v2449_v33  ;;  %v2458_v37 = vmul.f32 %v760_v14, %v4438_v18  ;;  %v2459_v39 = vmul.f32 %v760_v14, %v4441_v19 }
 0x7fd   :  { %v708_v57 = vadd.f32 %v4385_v44, %v706_v38  ;;  %v722_v13 = vmul.f32 %v720_v31, %v4401_v48  ;;  %v715_v61 = vmul.f32 %v712_v28, %v4398_v47  ;;  %v731_v33 = vmul.f32 %v728_v36, %v4410_v51  ;;  %v4710_v38 = vpop.permute.xlu1 %751 }
 0x7fe   :  { %v2456_v4 = vadd.f32 %v2454_v43, %v2452_v42  ;;  %v2457_v17 = vadd.f32 %v2455_v9, %v2453_v40  ;;  %v709_v43 = vadd.f32 %v4390_v45, %v707_v56  ;;  %v723_v9 = vmul.f32 %v720_v31, %v4404_v49  ;;  %5888 = vst [vmem:[#allocation25_spill] sm:$0xff] %v4710_v38 }
 0x7ff   :  { %v716_v59 = vadd.f32 %v714_v24, %v708_v57  ;;  %v746_v28 = vmul.f32 %v744_v0, %v4420_v54  ;;  %v754_v56 = vmul.f32 %v4710_v38, %v4438_v18  ;;  %v747_v57 = vmul.f32 %v744_v0, %v4435_v15 }
 0x800   :  { %v4693_v30 = vadd.f32 %v2458_v37, %v2456_v4  ;;  %v4695_v16 = vadd.f32 %v2459_v39, %v2457_v17  ;;  %v717_v40 = vadd.f32 %v715_v61, %v709_v43  ;;  %v739_v4 = vmul.f32 %v736_v63, %v4417_v10 }
 0x801   :  { %v724_v42 = vadd.f32 %v722_v13, %v716_v59  ;;  %v762_v36 = vmul.f32 %v760_v14, %v4459_v62  ;;  %v755_v59 = vmul.f32 %v4710_v38, %v4441_v19 }
 0x802   :  { %5886 = vst [vmem:[#allocation23_spill] sm:$0xff] %v4693_v30  ;;  %5887 = vst [vmem:[#allocation24_spill] sm:$0xff] %v4695_v16  ;;  %v725_v27 = vadd.f32 %v723_v9, %v717_v40  ;;  %v763_v9 = vmul.f32 %v760_v14, %v4468_v22 }
 0x803   :  { %v732_v37 = vadd.f32 %v730_v60, %v724_v42 }
 0x804   :  { %v733_v39 = vadd.f32 %v731_v33, %v725_v27 }
 0x805   :  { %v740_v17 = vadd.f32 %v738_v5, %v732_v37 }
 0x806   :  { %v741_v24 = vadd.f32 %v739_v4, %v733_v39 }
 0x807   :  { %v748_v31 = vadd.f32 %v746_v28, %v740_v17  ;;  %v4192_v28 = vmov 12  }
 0x808   :  { %v749_v61 = vadd.f32 %v747_v57, %v741_v24  ;;  %3952 = vset.pattern.permute.xlu1 %v4192_v28  ;;  %3954 = vset.pattern.permute.xlu0 %v4192_v28 }
 0x809   :  { %v756_v13 = vadd.f32 %v754_v56, %v748_v31  ;;  %899 = vperm.xlu0 %3954, %v4330_v8  }
 0x80a   :  { %v757_v43 = vadd.f32 %v755_v59, %v749_v61 }
 0x80b   :  { %v764_v63 = vadd.f32 %v762_v36, %v756_v13 }
 0x80c   :  { %v765_v33 = vadd.f32 %v763_v9, %v757_v43 }
 0x80d   :  { %3956 = vset.pattern.permute.xlu0 %v5884_v20 }
 0x80e   :  { %923 = vperm.xlu0 %3956, %v4344_v12  }
 0x8b4   :  { %v836_v40 = vpop.f32.mrb[4].mxu0 }
 0x8b5   :  { %v841_v42 = vadd.f32 %v836_v40, %v764_v63  ;;  %v838_v60 = vpop.f32.mrb[5].mxu0 }
 0x8b6   :  { %v842_v37 = vadd.f32 %v838_v60, %v765_v33 }
 0x8b7   :  { %v843_v27 = vmul.f32 0.5, %v841_v42 }
 0x8b8   :  { %v848_v14 = vmul.f32 0.5, %v842_v37 }
 0x8b9   :  { %4012 = vtanh.f32 %v843_v27 }
 0x8ba   :  { %4014 = vtanh.f32 %v842_v37 }
 0x8bb   :  { %4016 = vtanh.f32 %v848_v14 }
 0x8c3   :  { %v4013_v0 = vpop.eup %4012 }
 0x8c4   :  { %v845_v5 = vmul.f32 0.5, %v4013_v0  ;;  %v4015_v4 = vpop.eup %4014 }
 0x8c5   :  { %v4017_v57 = vpop.eup %4016 }
 0x8c6   :  { %v846_v39 = vadd.f32 0.5, %v845_v5  ;;  %v850_v13 = vmul.f32 0.5, %v4017_v57 }
 0x8c8   :  { %v853_v17 = vmul.f32 %v4015_v4, %v846_v39  ;;  %v852_v24 = vmul.f32 %v846_v39, %v4654_v55  ;;  %v851_v36 = vadd.f32 0.5, %v850_v13 }
 0x8ca   :  { %855 = vrot.lane.b32.xlu1 %v853_v17, %s4189_s1 }
 0x93c   :  { %v856_v31 = vpop.permute.xlu1 %855 }
 0x93d   :  { %v4724_v56 = vadd.f32 %v856_v31, %v852_v24 }
 0x93f   :  { %4018 = vtanh.f32 %v4724_v56 }
 0x949   :  { %v4019_v61 = vpop.eup %4018 }
 0x94a   :  { %v4727_v59 = vmul.f32 %v4019_v61, %v851_v36 }
 0x94c   :  { %5889 = vst [vmem:[#allocation26_spill] sm:$0xff] %v4727_v59  ;;  %938 = vrot.lane.b32.xlu1 %v4727_v59, %s4189_s1  ;;  %873 = vst.msk [vmem:[#allocation2 + $0xc] sm:$0x3] %vm525_vm3, %v4727_v59 }
 0x950   :  { %883 = vperm.xlu1 %3952, %v4352_v29  }
 0x954   :  { %3953 = vset.pattern.permute.xlu1 %v5884_v20 }
 0x955   :  { %891 = vperm.xlu1 %3953, %v4330_v8   ;;  %v876_v8 = vpop.permute.xlu0 %875 }
 0x956   :  { %v2298_v43 = vmul.f32 %v876_v8, %v4394_v46  ;;  %v2299_v9 = vmul.f32 %v876_v8, %v4398_v47 }
 0x959   :  { %907 = vperm.xlu1 %3953, %v4337_v11  }
 0x95d   :  { %3955 = vset.pattern.permute.xlu1 %v4192_v28 }
 0x95e   :  { %915 = vperm.xlu1 %3955, %v4337_v11  }
 0x962   :  { %931 = vperm.xlu1 %3955, %v4344_v12   ;;  %v900_v12 = vpop.permute.xlu0 %899 }
 0x963   :  { %v2302_v60 = vmul.f32 %v900_v12, %v4401_v48  ;;  %v2303_v27 = vmul.f32 %v900_v12, %v4404_v49 }
 0x9be   :  { %v939_v55 = vpop.permute.xlu1 %938 }
 0x9bf   :  { %3360 = vmatmul.mubr.msk.f32.vlgmr.msra.gmra.mrb[2].mxu1 %vm593_vm4, %v939_v55 }
 0x9c0   :  { %3602 = vmatpush1.bf16.msra.mxu1 %v4507_v58  ;;  %1350 = vmatprep.mubr.f32.mxu1 %v5885_v3 }
 0x9c1   :  { %3604 = vmatprep.subr.bf16.mxu1 %v4509_v41 }
 0x9c4   :  { %3606 = vmatpush1.bf16.msra.mxu1 %v4526_v1 }
 0x9c5   :  { %3608 = vmatprep.subr.bf16.mxu1 %v4530_v2 }
 0x9c8   :  { %3610 = vmatpush1.bf16.msra.mxu1 %v4546_v32 }
 0x9c9   :  { %3612 = vmatprep.subr.bf16.mxu1 %v4550_v7 }
 0x9cc   :  { %3614 = vmatpush1.bf16.msra.mxu1 %v4560_v26 }
 0x9cd   :  { %3632 = vmatprep.subr.bf16.mxu1 %v4496_v53 }
 0x9cf   :  { %v884_v11 = vpop.permute.xlu1 %883 }
 0x9d0   :  { %v2294_v20 = vmul.f32 %v884_v11, %v4371_v34  ;;  %v2295_v63 = vmul.f32 %v884_v11, %v4374_v35 }
 0x9d2   :  { %v2296_v40 = vadd.f32 %v4385_v44, %v2294_v20  ;;  %v2297_v42 = vadd.f32 %v4390_v45, %v2295_v63 }
 0x9d4   :  { %v2300_v33 = vadd.f32 %v2298_v43, %v2296_v40  ;;  %v2301_v37 = vadd.f32 %v2299_v9, %v2297_v42  ;;  %v892_v0 = vpop.permute.xlu1 %891  ;;  %v4193_v9 = vmov 4   ;;  %v878_v40 = vmul.f32 %v876_v8, %v4371_v34 }
 0x9d5   :  { %v2306_v5 = vmul.f32 %v892_v0, %v4407_v50  ;;  %v2307_v39 = vmul.f32 %v892_v0, %v4410_v51  ;;  %3957 = vset.pattern.permute.xlu1 %v4193_v9  ;;  %v886_v42 = vmul.f32 %v884_v11, %v4394_v46 }
 0x9d6   :  { %v2304_v4 = vadd.f32 %v2302_v60, %v2300_v33  ;;  %v2305_v17 = vadd.f32 %v2303_v27, %v2301_v37  ;;  %v879_v60 = vmul.f32 %v876_v8, %v4374_v35  ;;  %v880_v27 = vadd.f32 %v4385_v44, %v878_v40 }
 0x9d7   :  { %v894_v33 = vmul.f32 %v892_v0, %v4401_v48  ;;  %v887_v37 = vmul.f32 %v884_v11, %v4398_v47 }
 0x9d8   :  { %v2308_v28 = vadd.f32 %v2306_v5, %v2304_v4  ;;  %v2309_v14 = vadd.f32 %v2307_v39, %v2305_v17  ;;  %v908_v24 = vpop.permute.xlu1 %907  ;;  %v888_v5 = vadd.f32 %v886_v42, %v880_v27  ;;  %v881_v39 = vadd.f32 %v4390_v45, %v879_v60 }
 0x9d9   :  { %v2314_v36 = vmul.f32 %v908_v24, %v4420_v54  ;;  %v2315_v61 = vmul.f32 %v908_v24, %v4435_v15  ;;  %v902_v4 = vmul.f32 %v900_v12, %v4407_v50  ;;  %v895_v17 = vmul.f32 %v892_v0, %v4404_v49 }
 0x9da   :  { %v910_v8 = vmul.f32 %v908_v24, %v4413_v52 }
 0x9dd   :  { %v916_v31 = vpop.permute.xlu1 %915 }
 0x9de   :  { %v2310_v57 = vmul.f32 %v916_v31, %v4413_v52  ;;  %v2311_v13 = vmul.f32 %v916_v31, %v4417_v10  ;;  %v918_v44 = vmul.f32 %v916_v31, %v4420_v54 }
 0x9e0   :  { %v2312_v55 = vadd.f32 %v2310_v57, %v2308_v28  ;;  %v2313_v20 = vadd.f32 %v2311_v13, %v2309_v14  ;;  %v896_v28 = vadd.f32 %v894_v33, %v888_v5  ;;  %v889_v14 = vadd.f32 %v887_v37, %v881_v39 }
 0x9e1   :  { %v903_v57 = vmul.f32 %v900_v12, %v4410_v51  ;;  %v4786_v42 = vpop.permute.xlu1 %931 }
 0x9e2   :  { %v4763_v63 = vadd.f32 %v2314_v36, %v2312_v55  ;;  %v4765_v43 = vadd.f32 %v2315_v61, %v2313_v20  ;;  %v897_v13 = vadd.f32 %v895_v17, %v889_v14  ;;  %v904_v36 = vadd.f32 %v902_v4, %v896_v28  ;;  %v4780_v61 = vpop.permute.xlu0 %923  ;;  %5893 = vst [vmem:[#allocation30_spill] sm:$0xff] %v4786_v42 }
 0x9e3   :  { %5892 = vst [vmem:[#allocation29_spill] sm:$0xff] %v4780_v61  ;;  %v911_v55 = vmul.f32 %v908_v24, %v4417_v10  ;;  %v919_v20 = vmul.f32 %v916_v31, %v4435_v15  ;;  %v926_v0 = vmul.f32 %v4780_v61, %v4438_v18  ;;  %v927_v60 = vmul.f32 %v4780_v61, %v4441_v19 }
 0x9e4   :  { %5890 = vst [vmem:[#allocation27_spill] sm:$0xff] %v4763_v63  ;;  %5891 = vst [vmem:[#allocation28_spill] sm:$0xff] %v4765_v43  ;;  %v905_v11 = vadd.f32 %v903_v57, %v897_v13  ;;  %v912_v45 = vadd.f32 %v910_v8, %v904_v36  ;;  %v934_v33 = vmul.f32 %v4786_v42, %v4459_v62 }
 0x9e5   :  { %v935_v31 = vmul.f32 %v4786_v42, %v4468_v22 }
 0x9e6   :  { %v920_v40 = vadd.f32 %v918_v44, %v912_v45  ;;  %v913_v12 = vadd.f32 %v911_v55, %v905_v11  ;;  %v4194_v55 = vmov 11   ;;  %v4799_v45 = vld [vmem:[%s5817_s2] sm:$0x3] }
 0x9e7   :  { %3958 = vset.pattern.permute.xlu0 %v4194_v55 }
 0x9e8   :  { %v928_v27 = vadd.f32 %v926_v0, %v920_v40  ;;  %v921_v37 = vadd.f32 %v919_v20, %v913_v12  ;;  %v4806_v20 = vld [vmem:[%s5818_s3] sm:$0x3] }
 0x9e9   :  { %v4813_v0 = vld [vmem:[%s5819_s4] sm:$0x3] }
 0x9ea   :  { %v936_v5 = vadd.f32 %v934_v33, %v928_v27  ;;  %v929_v24 = vadd.f32 %v927_v60, %v921_v37 }
 0x9ec   :  { %v937_v14 = vadd.f32 %v935_v31, %v929_v24 }
 0xa92   :  { %v1008_v39 = vpop.f32.mrb[2].mxu1 }
 0xa93   :  { %v1013_v4 = vadd.f32 %v1008_v39, %v936_v5  ;;  %v1010_v17 = vpop.f32.mrb[3].mxu1 }
 0xa94   :  { %v1014_v57 = vadd.f32 %v1010_v17, %v937_v14 }
 0xa95   :  { %v1015_v28 = vmul.f32 0.5, %v1013_v4 }
 0xa96   :  { %v1020_v40 = vmul.f32 0.5, %v1014_v57 }
 0xa97   :  { %4020 = vtanh.f32 %v1015_v28 }
 0xa98   :  { %4022 = vtanh.f32 %v1014_v57 }
 0xa99   :  { %4024 = vtanh.f32 %v1020_v40 }
 0xaa1   :  { %v4021_v13 = vpop.eup %4020 }
 0xaa2   :  { %v1017_v36 = vmul.f32 0.5, %v4021_v13  ;;  %v4023_v44 = vpop.eup %4022 }
 0xaa3   :  { %v4025_v33 = vpop.eup %4024 }
 0xaa4   :  { %v1018_v8 = vadd.f32 0.5, %v1017_v36  ;;  %v1022_v37 = vmul.f32 0.5, %v4025_v33 }
 0xaa6   :  { %v1025_v11 = vmul.f32 %v4023_v44, %v1018_v8  ;;  %v1024_v12 = vmul.f32 %v1018_v8, %v4724_v56  ;;  %v1023_v5 = vadd.f32 0.5, %v1022_v37  ;;  %v5847_v56 = vmov 5   ;;  %v4847_v8 = vld [vmem:[%s5822_s7 + $0x10] ss:$0 sm:$0xff] }
 0xaa8   :  { %1027 = vrot.lane.b32.xlu1 %v1025_v11, %s4189_s1  ;;  %v4853_v11 = vld [vmem:[%s5822_s7 + $0x18] ss:$0 sm:$0xff] }
 0xaac   :  { %1047 = vperm.xlu1 %3957, %v4352_v29  }
 0xab0   :  { %1063 = vperm.xlu1 %3957, %v4799_v45  }
 0xab4   :  { %3959 = vset.pattern.permute.xlu1 %v4194_v55 }
 0xab5   :  { %1071 = vperm.xlu1 %3959, %v4799_v45  }
 0xab9   :  { %1087 = vperm.xlu1 %3959, %v4806_v20  }
 0xabd   :  { %3961 = vset.pattern.permute.xlu1 %v4193_v9 }
 0xabe   :  { %1095 = vperm.xlu1 %3961, %v4813_v0  }
 0xb1a   :  { %v1028_v60 = vpop.permute.xlu1 %1027 }
 0xb1b   :  { %v4817_v27 = vadd.f32 %v1028_v60, %v1024_v12 }
 0xb1d   :  { %4026 = vtanh.f32 %v4817_v27 }
 0xb27   :  { %v4027_v24 = vpop.eup %4026 }
 0xb28   :  { %v4820_v31 = vmul.f32 %v4027_v24, %v1023_v5 }
 0xb2a   :  { %5894 = vst [vmem:[#allocation31_spill] sm:$0xff] %v4820_v31  ;;  %1110 = vrot.lane.b32.xlu0 %v4820_v31, %s4189_s1 }
 0xb2e   :  { %1055 = vperm.xlu0 %3958, %v4352_v29  }
 0xb32   :  { %3960 = vset.pattern.permute.xlu0 %v4193_v9  ;;  %v1048_v9 = vpop.permute.xlu1 %1047 }
 0xb33   :  { %1079 = vperm.xlu0 %3960, %v4806_v20   ;;  %v2158_v13 = vmul.f32 %v1048_v9, %v4394_v46  ;;  %v2159_v36 = vmul.f32 %v1048_v9, %v4398_v47 }
 0xb36   :  { %v1064_v4 = vpop.permute.xlu1 %1063 }
 0xb37   :  { %3962 = vset.pattern.permute.xlu0 %v4194_v55  ;;  %v2166_v60 = vmul.f32 %v1064_v4, %v4407_v50  ;;  %v2167_v33 = vmul.f32 %v1064_v4, %v4410_v51 }
 0xb38   :  { %1103 = vperm.xlu0 %3962, %v4813_v0  }
 0xb3a   :  { %v1072_v28 = vpop.permute.xlu1 %1071 }
 0xb3b   :  { %v2162_v40 = vmul.f32 %v1072_v28, %v4401_v48  ;;  %v2163_v12 = vmul.f32 %v1072_v28, %v4404_v49 }
 0xb3c   :  { %3963 = vset.pattern.permute.xlu0 %v5847_v56 }
 0xb3d   :  { %1219 = vperm.xlu0 %3963, %v4352_v29  }
 0xb9c   :  { %v1111_v39 = vpop.permute.xlu0 %1110 }
 0xb9d   :  { %3361 = vmatmul.mubr.msk.f32.vlgmr.msra.gmra.mrb[6].mxu0 %vm593_vm4, %v1111_v39  ;;  %v1088_v39 = vpop.permute.xlu1 %1087 }
 0xb9e   :  { %3618 = vmatpush1.bf16.msra.mxu0 %v4507_v58  ;;  %1522 = vmatprep.mubr.f32.mxu0 %v5885_v3  ;;  %v2170_v31 = vmul.f32 %v1088_v39, %v4413_v52  ;;  %v2171_v59 = vmul.f32 %v1088_v39, %v4417_v10 }
 0xb9f   :  { %3620 = vmatprep.subr.bf16.mxu0 %v4509_v41 }
 0xba2   :  { %3622 = vmatpush1.bf16.msra.mxu0 %v4526_v1 }
 0xba3   :  { %3624 = vmatprep.subr.bf16.mxu0 %v4530_v2 }
 0xba6   :  { %3626 = vmatpush1.bf16.msra.mxu0 %v4546_v32 }
 0xba7   :  { %3628 = vmatprep.subr.bf16.mxu0 %v4550_v7 }
 0xbaa   :  { %3630 = vmatpush1.bf16.msra.mxu0 %v4560_v26 }
 0xbab   :  { %3648 = vmatprep.subr.bf16.mxu0 %v4496_v53 }
 0xbad   :  { %v1056_v17 = vpop.permute.xlu0 %1055 }
 0xbae   :  { %v2154_v14 = vmul.f32 %v1056_v17, %v4371_v34  ;;  %v2155_v57 = vmul.f32 %v1056_v17, %v4374_v35 }
 0xbb0   :  { %v2156_v44 = vadd.f32 %v4847_v8, %v2154_v14  ;;  %v2157_v55 = vadd.f32 %v4853_v11, %v2155_v57 }
 0xbb2   :  { %v2160_v37 = vadd.f32 %v2158_v13, %v2156_v44  ;;  %v2161_v5 = vadd.f32 %v2159_v36, %v2157_v55  ;;  %v1080_v24 = vpop.permute.xlu0 %1079 }
 0xbb3   :  { %v2174_v21 = vmul.f32 %v1080_v24, %v4420_v54  ;;  %v2175_v6 = vmul.f32 %v1080_v24, %v4435_v15 }
 0xbb4   :  { %v2164_v14 = vadd.f32 %v2162_v40, %v2160_v37  ;;  %v2165_v56 = vadd.f32 %v2163_v12, %v2161_v5  ;;  %v1074_v5 = vmul.f32 %v1072_v28, %v4407_v50 }
 0xbb6   :  { %v2168_v23 = vadd.f32 %v2166_v60, %v2164_v14  ;;  %v2169_v57 = vadd.f32 %v2167_v33, %v2165_v56  ;;  %v1050_v60 = vmul.f32 %v1048_v9, %v4371_v34  ;;  %v1058_v56 = vmul.f32 %v1056_v17, %v4394_v46 }
 0xbb7   :  { %v1104_v25 = vpop.permute.xlu0 %1103  ;;  %v1051_v33 = vmul.f32 %v1048_v9, %v4374_v35  ;;  %v1082_v9 = vmul.f32 %v1080_v24, %v4413_v52 }
 0xbb8   :  { %v2172_v16 = vadd.f32 %v2170_v31, %v2168_v23  ;;  %v2173_v30 = vadd.f32 %v2171_v59, %v2169_v57  ;;  %v2178_v13 = vmul.f32 %v1104_v25, %v4438_v18  ;;  %v2179_v36 = vmul.f32 %v1104_v25, %v4441_v19 }
 0xbb9   :  { %v1052_v37 = vadd.f32 %v4847_v8, %v1050_v60  ;;  %v1066_v23 = vmul.f32 %v1064_v4, %v4401_v48  ;;  %v1059_v59 = vmul.f32 %v1056_v17, %v4398_v47  ;;  %v1075_v57 = vmul.f32 %v1072_v28, %v4410_v51  ;;  %v4883_v60 = vpop.permute.xlu1 %1095 }
 0xbba   :  { %v2176_v44 = vadd.f32 %v2174_v21, %v2172_v16  ;;  %v2177_v55 = vadd.f32 %v2175_v6, %v2173_v30  ;;  %v1053_v21 = vadd.f32 %v4853_v11, %v1051_v33  ;;  %v1067_v6 = vmul.f32 %v1064_v4, %v4404_v49 }
 0xbbb   :  { %v1060_v31 = vadd.f32 %v1058_v56, %v1052_v37  ;;  %v1083_v17 = vmul.f32 %v1080_v24, %v4417_v10  ;;  %v1091_v4 = vmul.f32 %v1088_v39, %v4435_v15  ;;  %v1098_v33 = vmul.f32 %v4883_v60, %v4438_v18 }
 0xbbc   :  { %v4866_v40 = vadd.f32 %v2178_v13, %v2176_v44  ;;  %v4868_v12 = vadd.f32 %v2179_v36, %v2177_v55  ;;  %v1061_v30 = vadd.f32 %v1059_v59, %v1053_v21  ;;  %v1090_v44 = vmul.f32 %v1088_v39, %v4420_v54 }
 0xbbd   :  { %v1068_v16 = vadd.f32 %v1066_v23, %v1060_v31  ;;  %v1099_v28 = vmul.f32 %v4883_v60, %v4441_v19  ;;  %v1106_v59 = vmul.f32 %v1104_v25, %v4459_v62  ;;  %v1107_v24 = vmul.f32 %v1104_v25, %v4468_v22 }
 0xbbe   :  { %5895 = vst [vmem:[#allocation32_spill] sm:$0xff] %v4866_v40  ;;  %5896 = vst [vmem:[#allocation33_spill] sm:$0xff] %v4868_v12  ;;  %v1069_v14 = vadd.f32 %v1067_v6, %v1061_v30  ;;  %v5897_v25 = vmov 5  }
 0xbbf   :  { %v1076_v13 = vadd.f32 %v1074_v5, %v1068_v16 }
 0xbc0   :  { %v1077_v36 = vadd.f32 %v1075_v57, %v1069_v14 }
 0xbc1   :  { %v1084_v55 = vadd.f32 %v1082_v9, %v1076_v13 }
 0xbc2   :  { %v1085_v56 = vadd.f32 %v1083_v17, %v1077_v36 }
 0xbc3   :  { %v1092_v37 = vadd.f32 %v1090_v44, %v1084_v55  ;;  %v4196_v55 = vmov 10  }
 0xbc4   :  { %v1093_v31 = vadd.f32 %v1091_v4, %v1085_v56  ;;  %3964 = vset.pattern.permute.xlu1 %v4196_v55  ;;  %3966 = vset.pattern.permute.xlu0 %v4196_v55 }
 0xbc5   :  { %v1100_v23 = vadd.f32 %v1098_v33, %v1092_v37  ;;  %1243 = vperm.xlu0 %3966, %v4799_v45  }
 0xbc6   :  { %v1101_v6 = vadd.f32 %v1099_v28, %v1093_v31 }
 0xbc7   :  { %v1108_v21 = vadd.f32 %v1106_v59, %v1100_v23 }
 0xbc8   :  { %v1109_v14 = vadd.f32 %v1107_v24, %v1101_v6  ;;  %v1220_v6 = vpop.permute.xlu0 %1219 }
 0xbc9   :  { %3968 = vset.pattern.permute.xlu0 %v5897_v25 }
 0xbca   :  { %1267 = vperm.xlu0 %3968, %v4813_v0  }
 0xc70   :  { %v1180_v30 = vpop.f32.mrb[6].mxu0 }
 0xc71   :  { %v1185_v16 = vadd.f32 %v1180_v30, %v1108_v21  ;;  %v1182_v5 = vpop.f32.mrb[7].mxu0  ;;  %v1244_v30 = vpop.permute.xlu0 %1243 }
 0xc72   :  { %v1186_v57 = vadd.f32 %v1182_v5, %v1109_v14  ;;  %v2019_v14 = vmul.f32 %v1220_v6, %v4398_v47 }
 0xc73   :  { %v1187_v39 = vmul.f32 0.5, %v1185_v16 }
 0xc74   :  { %v1192_v4 = vmul.f32 0.5, %v1186_v57 }
 0xc75   :  { %4028 = vtanh.f32 %v1187_v39  ;;  %v2018_v39 = vmul.f32 %v1220_v6, %v4394_v46 }
 0xc76   :  { %4030 = vtanh.f32 %v1186_v57 }
 0xc77   :  { %4032 = vtanh.f32 %v1192_v4 }
 0xc7f   :  { %v4029_v13 = vpop.eup %4028 }
 0xc80   :  { %v1189_v9 = vmul.f32 0.5, %v4029_v13  ;;  %v4031_v44 = vpop.eup %4030 }
 0xc81   :  { %v4033_v28 = vpop.eup %4032 }
 0xc82   :  { %v1190_v36 = vadd.f32 0.5, %v1189_v9  ;;  %v1194_v23 = vmul.f32 0.5, %v4033_v28  ;;  %v2022_v9 = vmul.f32 %v1244_v30, %v4401_v48 }
 0xc84   :  { %v1197_v17 = vmul.f32 %v4031_v44, %v1190_v36  ;;  %v1196_v56 = vmul.f32 %v1190_v36, %v4817_v27  ;;  %v1195_v59 = vadd.f32 0.5, %v1194_v23  ;;  %v2023_v36 = vmul.f32 %v1244_v30, %v4404_v49 }
 0xc86   :  { %1199 = vrot.lane.b32.xlu1 %v1197_v17, %s4189_s1 }
 0xcf8   :  { %v1200_v33 = vpop.permute.xlu1 %1199 }
 0xcf9   :  { %v4897_v37 = vadd.f32 %v1200_v33, %v1196_v56 }
 0xcfb   :  { %4034 = vtanh.f32 %v4897_v37 }
 0xd05   :  { %v4035_v31 = vpop.eup %4034 }
 0xd06   :  { %v4900_v21 = vmul.f32 %v4035_v31, %v1195_v59 }
 0xd08   :  { %5898 = vst [vmem:[#allocation34_spill] sm:$0xff] %v4900_v21  ;;  %1282 = vrot.lane.b32.xlu1 %v4900_v21, %s4189_s1  ;;  %1217 = vst.msk [vmem:[#allocation2 + $0xa] sm:$0x3] %vm525_vm3, %v4900_v21 }
 0xd0c   :  { %1227 = vperm.xlu1 %3964, %v4352_v29  }
 0xd10   :  { %3965 = vset.pattern.permute.xlu1 %v5897_v25 }
 0xd11   :  { %1235 = vperm.xlu1 %3965, %v4799_v45  }
 0xd15   :  { %1251 = vperm.xlu1 %3965, %v4806_v20  }
 0xd19   :  { %3967 = vset.pattern.permute.xlu1 %v4196_v55 }
 0xd1a   :  { %1259 = vperm.xlu1 %3967, %v4806_v20  }
 0xd1e   :  { %1275 = vperm.xlu1 %3967, %v4813_v0  }
 0xd7a   :  { %v1283_v27 = vpop.permute.xlu1 %1282 }
 0xd7b   :  { %3362 = vmatmul.mubr.msk.f32.vlgmr.msra.gmra.mrb[4].mxu1 %vm593_vm4, %v1283_v27 }
 0xd7c   :  { %3634 = vmatpush1.bf16.msra.mxu1 %v4507_v58  ;;  %1694 = vmatprep.mubr.f32.mxu1 %v5885_v3 }
 0xd7d   :  { %3636 = vmatprep.subr.bf16.mxu1 %v4509_v41 }
 0xd80   :  { %3638 = vmatpush1.bf16.msra.mxu1 %v4526_v1 }
 0xd81   :  { %3640 = vmatprep.subr.bf16.mxu1 %v4530_v2 }
 0xd84   :  { %3642 = vmatpush1.bf16.msra.mxu1 %v4546_v32 }
 0xd85   :  { %3644 = vmatprep.subr.bf16.mxu1 %v4550_v7 }
 0xd88   :  { %3646 = vmatpush1.bf16.msra.mxu1 %v4560_v26 }
 0xd89   :  { %3664 = vmatprep.subr.bf16.mxu1 %v4496_v53 }
 0xd8b   :  { %v1228_v24 = vpop.permute.xlu1 %1227 }
 0xd8c   :  { %v2014_v16 = vmul.f32 %v1228_v24, %v4371_v34  ;;  %v2015_v5 = vmul.f32 %v1228_v24, %v4374_v35 }
 0xd8e   :  { %v2016_v57 = vadd.f32 %v4847_v8, %v2014_v16  ;;  %v2017_v13 = vadd.f32 %v4853_v11, %v2015_v5 }
 0xd90   :  { %v2020_v44 = vadd.f32 %v2018_v39, %v2016_v57  ;;  %v2021_v17 = vadd.f32 %v2019_v14, %v2017_v13  ;;  %v1236_v55 = vpop.permute.xlu1 %1235 }
 0xd91   :  { %v2026_v25 = vmul.f32 %v1236_v55, %v4407_v50  ;;  %v2027_v4 = vmul.f32 %v1236_v55, %v4410_v51 }
 0xd92   :  { %v2024_v56 = vadd.f32 %v2022_v9, %v2020_v44  ;;  %v2025_v33 = vadd.f32 %v2023_v36, %v2021_v17  ;;  %v5857_v9 = vmov 6   ;;  %v1222_v36 = vmul.f32 %v1220_v6, %v4371_v34 }
 0xd93   :  { %3969 = vset.pattern.permute.xlu1 %v5857_v9  ;;  %v1230_v44 = vmul.f32 %v1228_v24, %v4394_v46  ;;  %v1223_v17 = vmul.f32 %v1220_v6, %v4374_v35  ;;  %v4953_v9 = vpop.permute.xlu0 %1267 }
 0xd94   :  { %v2028_v28 = vadd.f32 %v2026_v25, %v2024_v56  ;;  %v2029_v23 = vadd.f32 %v2027_v4, %v2025_v33  ;;  %v1252_v59 = vpop.permute.xlu1 %1251  ;;  %v1224_v25 = vadd.f32 %v4847_v8, %v1222_v36  ;;  %v1238_v4 = vmul.f32 %v1236_v55, %v4401_v48 }
 0xd95   :  { %v2034_v5 = vmul.f32 %v1252_v59, %v4420_v54  ;;  %v2035_v39 = vmul.f32 %v1252_v59, %v4435_v15  ;;  %v1231_v56 = vmul.f32 %v1228_v24, %v4398_v47  ;;  %v1254_v6 = vmul.f32 %v1252_v59, %v4413_v52 }
 0xd96   :  { %v1232_v33 = vadd.f32 %v1230_v44, %v1224_v25  ;;  %v1255_v44 = vmul.f32 %v1252_v59, %v4417_v10 }
 0xd99   :  { %v1260_v31 = vpop.permute.xlu1 %1259 }
 0xd9a   :  { %v2030_v27 = vmul.f32 %v1260_v31, %v4413_v52  ;;  %v2031_v16 = vmul.f32 %v1260_v31, %v4417_v10  ;;  %v1262_v36 = vmul.f32 %v1260_v31, %v4420_v54  ;;  %v1263_v25 = vmul.f32 %v1260_v31, %v4435_v15 }
 0xd9c   :  { %v2032_v14 = vadd.f32 %v2030_v27, %v2028_v28  ;;  %v2033_v57 = vadd.f32 %v2031_v16, %v2029_v23  ;;  %v1225_v28 = vadd.f32 %v4853_v11, %v1223_v17  ;;  %v1246_v23 = vmul.f32 %v1244_v30, %v4407_v50 }
 0xd9d   :  { %v1239_v27 = vmul.f32 %v1236_v55, %v4404_v49  ;;  %v1240_v16 = vadd.f32 %v1238_v4, %v1232_v33  ;;  %v1270_v55 = vmul.f32 %v4953_v9, %v4438_v18  ;;  %v1271_v33 = vmul.f32 %v4953_v9, %v4441_v19 }
 0xd9e   :  { %v4936_v13 = vadd.f32 %v2034_v5, %v2032_v14  ;;  %v4938_v21 = vadd.f32 %v2035_v39, %v2033_v57  ;;  %v1233_v5 = vadd.f32 %v1231_v56, %v1225_v28  ;;  %v1247_v39 = vmul.f32 %v1244_v30, %v4410_v51  ;;  %v4959_v56 = vpop.permute.xlu1 %1275 }
 0xd9f   :  { %v1248_v57 = vadd.f32 %v1246_v23, %v1240_v16  ;;  %v1278_v23 = vmul.f32 %v4959_v56, %v4459_v62  ;;  %v1279_v31 = vmul.f32 %v4959_v56, %v4468_v22 }
 0xda0   :  { %v1241_v14 = vadd.f32 %v1239_v27, %v1233_v5 }
 0xda1   :  { %v1256_v17 = vadd.f32 %v1254_v6, %v1248_v57 }
 0xda2   :  { %v1249_v24 = vadd.f32 %v1247_v39, %v1241_v14 }
 0xda3   :  { %v1264_v4 = vadd.f32 %v1262_v36, %v1256_v17 }
 0xda4   :  { %v1257_v30 = vadd.f32 %v1255_v44, %v1249_v24 }
 0xda5   :  { %v1272_v28 = vadd.f32 %v1270_v55, %v1264_v4 }
 0xda6   :  { %v1265_v27 = vadd.f32 %v1263_v25, %v1257_v30  ;;  %v4198_v25 = vmov 9   ;;  %v5899_v30 = vmov 6  }
 0xda7   :  { %v1280_v16 = vadd.f32 %v1278_v23, %v1272_v28  ;;  %3970 = vset.pattern.permute.xlu0 %v4198_v25 }
 0xda8   :  { %v1273_v59 = vadd.f32 %v1271_v33, %v1265_v27 }
 0xdaa   :  { %v1281_v6 = vadd.f32 %v1279_v31, %v1273_v59 }
 0xe4e   :  { %v1352_v5 = vpop.f32.mrb[4].mxu1 }
 0xe4f   :  { %v1357_v39 = vadd.f32 %v1352_v5, %v1280_v16  ;;  %v1354_v14 = vpop.f32.mrb[5].mxu1 }
 0xe50   :  { %v1358_v36 = vadd.f32 %v1354_v14, %v1281_v6 }
 0xe51   :  { %v1359_v57 = vmul.f32 0.5, %v1357_v39 }
 0xe52   :  { %v1364_v33 = vmul.f32 0.5, %v1358_v36 }
 0xe53   :  { %4036 = vtanh.f32 %v1359_v57 }
 0xe54   :  { %4038 = vtanh.f32 %v1358_v36 }
 0xe55   :  { %4040 = vtanh.f32 %v1364_v33 }
 0xe5d   :  { %v4037_v24 = vpop.eup %4036 }
 0xe5e   :  { %v1361_v44 = vmul.f32 0.5, %v4037_v24  ;;  %v4039_v55 = vpop.eup %4038 }
 0xe5f   :  { %v4041_v16 = vpop.eup %4040 }
 0xe60   :  { %v1362_v17 = vadd.f32 0.5, %v1361_v44  ;;  %v1366_v59 = vmul.f32 0.5, %v4041_v16 }
 0xe62   :  { %v1369_v4 = vmul.f32 %v4039_v55, %v1362_v17  ;;  %v1368_v28 = vmul.f32 %v1362_v17, %v4897_v37  ;;  %v1367_v31 = vadd.f32 0.5, %v1366_v59  ;;  %v5859_v37 = vmov 7  }
 0xe64   :  { %1371 = vrot.lane.b32.xlu1 %v1369_v4, %s4189_s1 }
 0xe68   :  { %1391 = vperm.xlu1 %3969, %v4352_v29  }
 0xe6c   :  { %1407 = vperm.xlu1 %3969, %v4799_v45  }
 0xe70   :  { %3971 = vset.pattern.permute.xlu1 %v4198_v25 }
 0xe71   :  { %1415 = vperm.xlu1 %3971, %v4799_v45  }
 0xe75   :  { %1431 = vperm.xlu1 %3971, %v4806_v20  }
 0xe79   :  { %3973 = vset.pattern.permute.xlu1 %v5899_v30 }
 0xe7a   :  { %1439 = vperm.xlu1 %3973, %v4813_v0  }
 0xed6   :  { %v1372_v23 = vpop.permute.xlu1 %1371 }
 0xed7   :  { %v4975_v27 = vadd.f32 %v1372_v23, %v1368_v28 }
 0xed9   :  { %4042 = vtanh.f32 %v4975_v27 }
 0xee3   :  { %v4043_v5 = vpop.eup %4042 }
 0xee4   :  { %v4978_v39 = vmul.f32 %v4043_v5, %v1367_v31 }
 0xee6   :  { %5900 = vst [vmem:[#allocation35_spill] sm:$0xff] %v4978_v39  ;;  %1454 = vrot.lane.b32.xlu0 %v4978_v39, %s4189_s1 }
 0xee7   :  { %v1392_v57 = vpop.permute.xlu1 %1391 }
 0xee8   :  { %v1878_v55 = vmul.f32 %v1392_v57, %v4394_v46  ;;  %v1879_v4 = vmul.f32 %v1392_v57, %v4398_v47 }
 0xeea   :  { %1399 = vperm.xlu0 %3970, %v4352_v29  }
 0xeeb   :  { %v1408_v6 = vpop.permute.xlu1 %1407 }
 0xeec   :  { %v1886_v23 = vmul.f32 %v1408_v6, %v4407_v50  ;;  %v1887_v16 = vmul.f32 %v1408_v6, %v4410_v51 }
 0xeee   :  { %3972 = vset.pattern.permute.xlu0 %v5899_v30 }
 0xeef   :  { %1423 = vperm.xlu0 %3972, %v4806_v20  }
 0xef0   :  { %v1416_v24 = vpop.permute.xlu1 %1415 }
 0xef1   :  { %v1882_v33 = vmul.f32 %v1416_v24, %v4401_v48  ;;  %v1883_v28 = vmul.f32 %v1416_v24, %v4404_v49 }
 0xef3   :  { %3974 = vset.pattern.permute.xlu0 %v4198_v25 }
 0xef4   :  { %1447 = vperm.xlu0 %3974, %v4813_v0  }
 0xef8   :  { %3975 = vset.pattern.permute.xlu0 %v5859_v37 }
 0xef9   :  { %1563 = vperm.xlu0 %3975, %v4352_v29  }
 0xf58   :  { %v1455_v14 = vpop.permute.xlu0 %1454 }
 0xf59   :  { %3363 = vmatmul.mubr.msk.f32.vlgmr.msra.gmra.mrb[8].mxu0 %vm593_vm4, %v1455_v14  ;;  %v1432_v14 = vpop.permute.xlu1 %1431 }
 0xf5a   :  { %3650 = vmatpush1.bf16.msra.mxu0 %v4507_v58  ;;  %1834 = vmatprep.mubr.f32.mxu0 %v5885_v3  ;;  %v1890_v38 = vmul.f32 %v1432_v14, %v4413_v52 }
 0xf5b   :  { %3652 = vmatprep.subr.bf16.mxu0 %v4509_v41 }
 0xf5e   :  { %3654 = vmatpush1.bf16.msra.mxu0 %v4526_v1 }
 0xf5f   :  { %3656 = vmatprep.subr.bf16.mxu0 %v4530_v2 }
 0xf62   :  { %3658 = vmatpush1.bf16.msra.mxu0 %v4546_v32 }
 0xf63   :  { %3660 = vmatprep.subr.bf16.mxu0 %v4550_v7 }
 0xf66   :  { %3662 = vmatpush1.bf16.msra.mxu0 %v4560_v26 }
 0xf67   :  { %3680 = vmatprep.subr.bf16.mxu0 %v4496_v53 }
 0xf69   :  { %v1400_v36 = vpop.permute.xlu0 %1399 }
 0xf6a   :  { %v1874_v44 = vmul.f32 %v1400_v36, %v4371_v34  ;;  %v1875_v17 = vmul.f32 %v1400_v36, %v4374_v35 }
 0xf6c   :  { %v1876_v25 = vadd.f32 %v4847_v8, %v1874_v44  ;;  %v1877_v30 = vadd.f32 %v4853_v11, %v1875_v17  ;;  %v1891_v44 = vmul.f32 %v1432_v14, %v4417_v10 }
 0xf6e   :  { %v1880_v59 = vadd.f32 %v1878_v55, %v1876_v25  ;;  %v1881_v31 = vadd.f32 %v1879_v4, %v1877_v30  ;;  %v1424_v5 = vpop.permute.xlu0 %1423 }
 0xf6f   :  { %v1894_v61 = vmul.f32 %v1424_v5, %v4420_v54  ;;  %v1895_v63 = vmul.f32 %v1424_v5, %v4435_v15 }
 0xf70   :  { %v1884_v37 = vadd.f32 %v1882_v33, %v1880_v59  ;;  %v1885_v39 = vadd.f32 %v1883_v28, %v1881_v31  ;;  %v1418_v31 = vmul.f32 %v1416_v24, %v4407_v50 }
 0xf72   :  { %v1888_v43 = vadd.f32 %v1886_v23, %v1884_v37  ;;  %v1889_v17 = vadd.f32 %v1887_v16, %v1885_v39  ;;  %v1394_v37 = vmul.f32 %v1392_v57, %v4371_v34  ;;  %v1402_v39 = vmul.f32 %v1400_v36, %v4394_v46 }
 0xf73   :  { %v1448_v42 = vpop.permute.xlu0 %1447  ;;  %v1395_v23 = vmul.f32 %v1392_v57, %v4374_v35  ;;  %v1426_v57 = vmul.f32 %v1424_v5, %v4413_v52 }
 0xf74   :  { %v1892_v12 = vadd.f32 %v1890_v38, %v1888_v43  ;;  %v1893_v40 = vadd.f32 %v1891_v44, %v1889_v17  ;;  %v1898_v55 = vmul.f32 %v1448_v42, %v4438_v18  ;;  %v1899_v4 = vmul.f32 %v1448_v42, %v4441_v19 }
 0xf75   :  { %v1396_v16 = vadd.f32 %v4847_v8, %v1394_v37  ;;  %v1410_v38 = vmul.f32 %v1408_v6, %v4401_v48  ;;  %v1403_v43 = vmul.f32 %v1400_v36, %v4398_v47  ;;  %v1419_v17 = vmul.f32 %v1416_v24, %v4410_v51  ;;  %v5031_v37 = vpop.permute.xlu1 %1439 }
 0xf76   :  { %v1896_v25 = vadd.f32 %v1894_v61, %v1892_v12  ;;  %v1897_v30 = vadd.f32 %v1895_v63, %v1893_v40  ;;  %v1397_v61 = vadd.f32 %v4853_v11, %v1395_v23  ;;  %v1411_v63 = vmul.f32 %v1408_v6, %v4404_v49 }
 0xf77   :  { %v1404_v59 = vadd.f32 %v1402_v39, %v1396_v16  ;;  %v1427_v36 = vmul.f32 %v1424_v5, %v4417_v10  ;;  %v1435_v6 = vmul.f32 %v1432_v14, %v4435_v15  ;;  %v1442_v23 = vmul.f32 %v5031_v37, %v4438_v18 }
 0xf78   :  { %v5014_v33 = vadd.f32 %v1898_v55, %v1896_v25  ;;  %v5016_v28 = vadd.f32 %v1899_v4, %v1897_v30  ;;  %v1405_v40 = vadd.f32 %v1403_v43, %v1397_v61  ;;  %v1434_v25 = vmul.f32 %v1432_v14, %v4420_v54 }
 0xf79   :  { %v1412_v12 = vadd.f32 %v1410_v38, %v1404_v59  ;;  %v1443_v24 = vmul.f32 %v5031_v37, %v4441_v19  ;;  %v1450_v43 = vmul.f32 %v1448_v42, %v4459_v62  ;;  %v1451_v5 = vmul.f32 %v1448_v42, %v4468_v22 }
 0xf7a   :  { %v1413_v44 = vadd.f32 %v1411_v63, %v1405_v40  ;;  %v5901_v42 = vmov 7  }
 0xf7b   :  { %v1420_v55 = vadd.f32 %v1418_v31, %v1412_v12 }
 0xf7c   :  { %v1421_v4 = vadd.f32 %v1419_v17, %v1413_v44 }
 0xf7d   :  { %v1428_v30 = vadd.f32 %v1426_v57, %v1420_v55 }
 0xf7e   :  { %v1429_v39 = vadd.f32 %v1427_v36, %v1421_v4 }
 0xf7f   :  { %v1436_v16 = vadd.f32 %v1434_v25, %v1428_v30  ;;  %v4200_v30 = vmov 8  }
 0xf80   :  { %v1437_v59 = vadd.f32 %v1435_v6, %v1429_v39  ;;  %3976 = vset.pattern.permute.xlu1 %v4200_v30  ;;  %3978 = vset.pattern.permute.xlu0 %v4200_v30 }
 0xf81   :  { %v1444_v38 = vadd.f32 %v1442_v23, %v1436_v16  ;;  %1587 = vperm.xlu0 %3978, %v4799_v45  }
 0xf82   :  { %v1445_v63 = vadd.f32 %v1443_v24, %v1437_v59 }
 0xf83   :  { %v1452_v61 = vadd.f32 %v1450_v43, %v1444_v38 }
 0xf84   :  { %v1453_v44 = vadd.f32 %v1451_v5, %v1445_v63 }
 0xf85   :  { %3980 = vset.pattern.permute.xlu0 %v5901_v42 }
 0xf86   :  { %1611 = vperm.xlu0 %3980, %v4813_v0  }
 0xf8a   :  { %3981 = vset.pattern.permute.xlu0 %v4200_v30 }
0x102c   :  { %v1524_v40 = vpop.f32.mrb[8].mxu0 }
0x102d   :  { %v1529_v12 = vadd.f32 %v1524_v40, %v1452_v61  ;;  %v1526_v31 = vpop.f32.mrb[9].mxu0 }
0x102e   :  { %v1530_v17 = vadd.f32 %v1526_v31, %v1453_v44 }
0x102f   :  { %v1531_v14 = vmul.f32 0.5, %v1529_v12 }
0x1030   :  { %v1536_v6 = vmul.f32 0.5, %v1530_v17 }
0x1031   :  { %4044 = vtanh.f32 %v1531_v14 }
0x1032   :  { %4046 = vtanh.f32 %v1530_v17 }
0x1033   :  { %4048 = vtanh.f32 %v1536_v6 }
0x103b   :  { %v4045_v55 = vpop.eup %4044 }
0x103c   :  { %v1533_v57 = vmul.f32 0.5, %v4045_v55  ;;  %v4047_v25 = vpop.eup %4046 }
0x103d   :  { %v4049_v24 = vpop.eup %4048 }
0x103e   :  { %v1534_v4 = vadd.f32 0.5, %v1533_v57  ;;  %v1538_v38 = vmul.f32 0.5, %v4049_v24 }
0x1040   :  { %v1541_v36 = vmul.f32 %v4047_v25, %v1534_v4  ;;  %v1540_v39 = vmul.f32 %v1534_v4, %v4975_v27  ;;  %v1539_v43 = vadd.f32 0.5, %v1538_v38 }
0x1042   :  { %1543 = vrot.lane.b32.xlu1 %v1541_v36, %s4189_s1 }
0x10b4   :  { %v1544_v23 = vpop.permute.xlu1 %1543 }
0x10b5   :  { %v5045_v16 = vadd.f32 %v1544_v23, %v1540_v39 }
0x10b7   :  { %4050 = vtanh.f32 %v5045_v16 }
0x10c1   :  { %v4051_v59 = vpop.eup %4050 }
0x10c2   :  { %v5048_v61 = vmul.f32 %v4051_v59, %v1539_v43 }
0x10c4   :  { %1626 = vrot.lane.b32.xlu1 %v5048_v61, %s4189_s1  ;;  %1561 = vst.msk [vmem:[#allocation2 + $0x8] sm:$0x3] %vm525_vm3, %v5048_v61 }
0x10c8   :  { %1571 = vperm.xlu1 %3976, %v4352_v29   ;;  %v1564_v29 = vpop.permute.xlu0 %1563 }
0x10c9   :  { %v1738_v5 = vmul.f32 %v1564_v29, %v4394_v46  ;;  %v1739_v40 = vmul.f32 %v1564_v29, %v4398_v47 }
0x10cc   :  { %3977 = vset.pattern.permute.xlu1 %v5901_v42 }
0x10cd   :  { %1579 = vperm.xlu1 %3977, %v4799_v45  }
0x10d1   :  { %1595 = vperm.xlu1 %3977, %v4806_v20  }
0x10d5   :  { %3979 = vset.pattern.permute.xlu1 %v4200_v30 }
0x10d6   :  { %1603 = vperm.xlu1 %3979, %v4806_v20   ;;  %v1588_v20 = vpop.permute.xlu0 %1587 }
0x10d7   :  { %v1742_v14 = vmul.f32 %v1588_v20, %v4401_v48  ;;  %v1743_v44 = vmul.f32 %v1588_v20, %v4404_v49 }
0x10da   :  { %1619 = vperm.xlu1 %3979, %v4813_v0  }
0x1136   :  { %v1627_v27 = vpop.permute.xlu1 %1626 }
0x1137   :  { %3364 = vmatmul.mubr.msk.f32.vlgmr.msra.gmra.mrb[6].mxu1 %vm593_vm4, %v1627_v27 }
0x1138   :  { %3666 = vmatpush1.bf16.msra.mxu1 %v4507_v58  ;;  %1974 = vmatprep.mubr.f32.mxu1 %v5885_v3 }
0x1139   :  { %3668 = vmatprep.subr.bf16.mxu1 %v4509_v41 }
0x113c   :  { %3670 = vmatpush1.bf16.msra.mxu1 %v4526_v1 }
0x113d   :  { %3672 = vmatprep.subr.bf16.mxu1 %v4530_v2 }
0x1140   :  { %3674 = vmatpush1.bf16.msra.mxu1 %v4546_v32 }
0x1141   :  { %3676 = vmatprep.subr.bf16.mxu1 %v4550_v7 }
0x1144   :  { %3678 = vmatpush1.bf16.msra.mxu1 %v4560_v26 }
0x1145   :  { %3696 = vmatprep.subr.bf16.mxu1 %v4496_v53 }
0x1147   :  { %v1572_v45 = vpop.permute.xlu1 %1571 }
0x1148   :  { %v1734_v0 = vmul.f32 %v1572_v45, %v4371_v34  ;;  %v1735_v63 = vmul.f32 %v1572_v45, %v4374_v35 }
0x114a   :  { %v1736_v12 = vadd.f32 %v4847_v8, %v1734_v0  ;;  %v1737_v31 = vadd.f32 %v4853_v11, %v1735_v63 }
0x114c   :  { %v1740_v17 = vadd.f32 %v1738_v5, %v1736_v12  ;;  %v1741_v55 = vadd.f32 %v1739_v40, %v1737_v31  ;;  %v1580_v57 = vpop.permute.xlu1 %1579  ;;  %v1566_v40 = vmul.f32 %v1564_v29, %v4371_v34  ;;  %v1574_v12 = vmul.f32 %v1572_v45, %v4394_v46 }
0x114d   :  { %v1746_v4 = vmul.f32 %v1580_v57, %v4407_v50  ;;  %v1747_v25 = vmul.f32 %v1580_v57, %v4410_v51  ;;  %v1567_v31 = vmul.f32 %v1564_v29, %v4374_v35  ;;  %v1591_v34 = vmul.f32 %v1588_v20, %v4410_v51 }
0x114e   :  { %v1744_v36 = vadd.f32 %v1742_v14, %v1740_v17  ;;  %v1745_v30 = vadd.f32 %v1743_v44, %v1741_v55  ;;  %v1568_v14 = vadd.f32 %v4847_v8, %v1566_v40  ;;  %v1582_v44 = vmul.f32 %v1580_v57, %v4401_v48  ;;  %v1612_v48 = vpop.permute.xlu0 %1611 }
0x114f   :  { %v1575_v17 = vmul.f32 %v1572_v45, %v4398_v47 }
0x1150   :  { %v1748_v42 = vadd.f32 %v1746_v4, %v1744_v36  ;;  %v1749_v6 = vadd.f32 %v1747_v25, %v1745_v30  ;;  %v1596_v39 = vpop.permute.xlu1 %1595  ;;  %v1576_v55 = vadd.f32 %v1574_v12, %v1568_v14  ;;  %v1569_v4 = vadd.f32 %v4853_v11, %v1567_v31 }
0x1151   :  { %v1754_v43 = vmul.f32 %v1596_v39, %v4420_v54  ;;  %v1755_v59 = vmul.f32 %v1596_v39, %v4435_v15  ;;  %v1590_v25 = vmul.f32 %v1588_v20, %v4407_v50  ;;  %v1583_v36 = vmul.f32 %v1580_v57, %v4404_v49 }
0x1152   :  { %v1584_v30 = vadd.f32 %v1582_v44, %v1576_v55  ;;  %v1598_v35 = vmul.f32 %v1596_v39, %v4413_v52  ;;  %v1599_v47 = vmul.f32 %v1596_v39, %v4417_v10  ;;  %v1615_v20 = vmul.f32 %v1612_v48, %v4441_v19 }
0x1155   :  { %v1604_v23 = vpop.permute.xlu1 %1603 }
0x1156   :  { %v1750_v24 = vmul.f32 %v1604_v23, %v4413_v52  ;;  %v1751_v38 = vmul.f32 %v1604_v23, %v4417_v10  ;;  %v1606_v8 = vmul.f32 %v1604_v23, %v4420_v54  ;;  %v1607_v11 = vmul.f32 %v1604_v23, %v4435_v15 }
0x1158   :  { %v1752_v27 = vadd.f32 %v1750_v24, %v1748_v42  ;;  %v1753_v0 = vadd.f32 %v1751_v38, %v1749_v6  ;;  %v1577_v42 = vadd.f32 %v1575_v17, %v1569_v4  ;;  %v1592_v6 = vadd.f32 %v1590_v25, %v1584_v30 }
0x1159   :  { %v1614_v24 = vmul.f32 %v1612_v48, %v4438_v18  ;;  %v1620_v57 = vpop.permute.xlu1 %1619 }
0x115a   :  { %v5084_v63 = vadd.f32 %v1754_v43, %v1752_v27  ;;  %v5086_v5 = vadd.f32 %v1755_v59, %v1753_v0  ;;  %v1585_v46 = vadd.f32 %v1583_v36, %v1577_v42  ;;  %v1600_v45 = vadd.f32 %v1598_v35, %v1592_v6 }
0x115b   :  { %v1622_v59 = vmul.f32 %v1620_v57, %v4459_v62  ;;  %v1623_v12 = vmul.f32 %v1620_v57, %v4468_v22 }
0x115c   :  { %v1593_v29 = vadd.f32 %v1591_v34, %v1585_v46  ;;  %v1608_v49 = vadd.f32 %v1606_v8, %v1600_v45 }
0x115e   :  { %v1601_v38 = vadd.f32 %v1599_v47, %v1593_v29  ;;  %v1616_v43 = vadd.f32 %v1614_v24, %v1608_v49  ;;  %v1759_v24 = vmul.f32 %v1620_v57, %v4441_v19 }
0x1160   :  { %v1609_v27 = vadd.f32 %v1607_v11, %v1601_v38  ;;  %v1624_v0 = vadd.f32 %v1622_v59, %v1616_v43  ;;  %v1762_v38 = vmul.f32 %v1612_v48, %v4459_v62  ;;  %v1763_v43 = vmul.f32 %v1612_v48, %v4468_v22 }
0x1162   :  { %v1617_v40 = vadd.f32 %v1615_v20, %v1609_v27  ;;  %v1761_v20 = vadd.f32 %v1759_v24, %v5086_v5 }
0x1164   :  { %v1625_v23 = vadd.f32 %v1623_v12, %v1617_v40 }
0x120a   :  { %v1696_v31 = vpop.f32.mrb[6].mxu1 }
0x120b   :  { %v1701_v39 = vadd.f32 %v1696_v31, %v1624_v0  ;;  %v1698_v14 = vpop.f32.mrb[7].mxu1  ;;  %v1765_v0 = vadd.f32 %v1763_v43, %v1761_v20 }
0x120c   :  { %v1702_v17 = vadd.f32 %v1698_v14, %v1625_v23 }
0x120d   :  { %v1703_v44 = vmul.f32 0.5, %v1701_v39 }
0x120e   :  { %v1708_v42 = vmul.f32 0.5, %v1702_v17 }
0x120f   :  { %4052 = vtanh.f32 %v1703_v44 }
0x1210   :  { %4054 = vtanh.f32 %v1702_v17 }
0x1211   :  { %4056 = vtanh.f32 %v1708_v42 }
0x1219   :  { %v4053_v55 = vpop.eup %4052 }
0x121a   :  { %v1705_v4 = vmul.f32 0.5, %v4053_v55  ;;  %v4055_v36 = vpop.eup %4054 }
0x121b   :  { %v4057_v35 = vpop.eup %4056 }
0x121c   :  { %v1706_v25 = vadd.f32 0.5, %v1705_v4  ;;  %v1710_v8 = vmul.f32 0.5, %v4057_v35 }
0x121e   :  { %v1713_v30 = vmul.f32 %v4055_v36, %v1706_v25  ;;  %v1712_v34 = vmul.f32 %v1706_v25, %v5045_v16  ;;  %v1711_v29 = vadd.f32 0.5, %v1710_v8  ;;  %v1758_v16 = vmul.f32 %v1620_v57, %v4438_v18 }
0x1220   :  { %1715 = vrot.lane.b32.xlu1 %v1713_v30, %s4189_s1  ;;  %v1760_v49 = vadd.f32 %v1758_v16, %v5084_v63 }
0x1222   :  { %v1764_v59 = vadd.f32 %v1762_v38, %v1760_v49 }
0x1292   :  { %v1716_v46 = vpop.permute.xlu1 %1715 }
0x1293   :  { %v1718_v6 = vadd.f32 %v1716_v46, %v1712_v34  ;;  %v1902_v46 = vmul.f32 %v5031_v37, %v4459_v62 }
0x1295   :  { %4058 = vtanh.f32 %v1718_v6  ;;  %v1904_v35 = vadd.f32 %v1902_v46, %v5014_v33 }
0x129f   :  { %v4059_v47 = vpop.eup %4058 }
0x12a0   :  { %v5108_v45 = vmul.f32 %v4059_v47, %v1711_v29 }
0x12a2   :  { %1766 = vrot.lane.b32.xlu0 %v5108_v45, %s4189_s1 }
0x1314   :  { %v1767_v11 = vpop.permute.xlu0 %1766 }
0x1315   :  { %3365 = vmatmul.mubr.msk.f32.vlgmr.msra.gmra.mrb[10].mxu0 %vm593_vm4, %v1767_v11 }
0x1316   :  { %3682 = vmatpush1.bf16.msra.mxu0 %v4507_v58  ;;  %2114 = vmatprep.mubr.f32.mxu0 %v5885_v3 }
0x1317   :  { %3684 = vmatprep.subr.bf16.mxu0 %v4509_v41 }
0x131a   :  { %3686 = vmatpush1.bf16.msra.mxu0 %v4526_v1 }
0x131b   :  { %3688 = vmatprep.subr.bf16.mxu0 %v4530_v2 }
0x131e   :  { %3690 = vmatpush1.bf16.msra.mxu0 %v4546_v32 }
0x131f   :  { %3692 = vmatprep.subr.bf16.mxu0 %v4550_v7 }
0x1322   :  { %3694 = vmatpush1.bf16.msra.mxu0 %v4560_v26 }
0x1323   :  { %3712 = vmatprep.subr.bf16.mxu0 %v4496_v53 }
0x13e8   :  { %v1836_v27 = vpop.f32.mrb[10].mxu0 }
0x13e9   :  { %v1841_v40 = vadd.f32 %v1836_v27, %v1764_v59  ;;  %v1838_v12 = vpop.f32.mrb[11].mxu0 }
0x13ea   :  { %v1842_v31 = vadd.f32 %v1838_v12, %v1765_v0 }
0x13eb   :  { %v1843_v39 = vmul.f32 0.5, %v1841_v40 }
0x13ec   :  { %v1848_v17 = vmul.f32 0.5, %v1842_v31 }
0x13ed   :  { %4060 = vtanh.f32 %v1843_v39 }
0x13ee   :  { %4062 = vtanh.f32 %v1842_v31 }
0x13ef   :  { %4064 = vtanh.f32 %v1848_v17 }
0x13f7   :  { %v4061_v14 = vpop.eup %4060 }
0x13f8   :  { %v1845_v44 = vmul.f32 0.5, %v4061_v14  ;;  %v4063_v23 = vpop.eup %4062 }
0x13f9   :  { %v4065_v4 = vpop.eup %4064 }
0x13fa   :  { %v1846_v57 = vadd.f32 0.5, %v1845_v44  ;;  %v1850_v25 = vmul.f32 0.5, %v4065_v4  ;;  %v2038_v44 = vmul.f32 %v4959_v56, %v4438_v18 }
0x13fc   :  { %v1853_v63 = vmul.f32 %v4063_v23, %v1846_v57  ;;  %v1852_v5 = vmul.f32 %v1846_v57, %v1718_v6  ;;  %v1851_v36 = vadd.f32 0.5, %v1850_v25  ;;  %v1903_v6 = vmul.f32 %v5031_v37, %v4468_v22 }
0x13fd   :  { %v2039_v57 = vmul.f32 %v4959_v56, %v4441_v19  ;;  %v2040_v23 = vadd.f32 %v2038_v44, %v4936_v13 }
0x13fe   :  { %1855 = vrot.lane.b32.xlu1 %v1853_v63, %s4189_s1  ;;  %v1905_v29 = vadd.f32 %v1903_v6, %v5016_v28  ;;  %v2042_v63 = vmul.f32 %v4953_v9, %v4459_v62 }
0x13ff   :  { %v2041_v17 = vadd.f32 %v2039_v57, %v4938_v21 }
0x1470   :  { %v1856_v48 = vpop.permute.xlu1 %1855 }
0x1471   :  { %v1858_v55 = vadd.f32 %v1856_v48, %v1852_v5  ;;  %v2043_v5 = vmul.f32 %v4953_v9, %v4468_v22  ;;  %v2044_v48 = vadd.f32 %v2042_v63, %v2040_v23 }
0x1473   :  { %4066 = vtanh.f32 %v1858_v55  ;;  %v2045_v4 = vadd.f32 %v2043_v5, %v2041_v17 }
0x147d   :  { %v4067_v30 = vpop.eup %4066 }
0x147e   :  { %v5129_v42 = vmul.f32 %v4067_v30, %v1851_v36 }
0x1480   :  { %1906 = vrot.lane.b32.xlu0 %v5129_v42, %s4189_s1 }
0x14f2   :  { %v1907_v34 = vpop.permute.xlu0 %1906 }
0x14f3   :  { %3366 = vmatmul.mubr.msk.f32.vlgmr.msra.gmra.mrb[8].mxu1 %vm593_vm4, %v1907_v34 }
0x14f4   :  { %3698 = vmatpush1.bf16.msra.mxu1 %v4507_v58  ;;  %2254 = vmatprep.mubr.f32.mxu1 %v5885_v3 }
0x14f5   :  { %3700 = vmatprep.subr.bf16.mxu1 %v4509_v41 }
0x14f8   :  { %3702 = vmatpush1.bf16.msra.mxu1 %v4526_v1 }
0x14f9   :  { %3704 = vmatprep.subr.bf16.mxu1 %v4530_v2 }
0x14fc   :  { %3706 = vmatpush1.bf16.msra.mxu1 %v4546_v32 }
0x14fd   :  { %3708 = vmatprep.subr.bf16.mxu1 %v4550_v7 }
0x1500   :  { %3710 = vmatpush1.bf16.msra.mxu1 %v4560_v26 }
0x1501   :  { %3728 = vmatprep.subr.bf16.mxu1 %v4496_v53 }
0x15c6   :  { %v1976_v8 = vpop.f32.mrb[8].mxu1 }
0x15c7   :  { %v1981_v47 = vadd.f32 %v1976_v8, %v1904_v35  ;;  %v1978_v11 = vpop.f32.mrb[9].mxu1 }
0x15c8   :  { %v1982_v16 = vadd.f32 %v1978_v11, %v1905_v29 }
0x15c9   :  { %v1983_v24 = vmul.f32 0.5, %v1981_v47 }
0x15ca   :  { %v1988_v27 = vmul.f32 0.5, %v1982_v16 }
0x15cb   :  { %4068 = vtanh.f32 %v1983_v24 }
0x15cc   :  { %4070 = vtanh.f32 %v1982_v16 }
0x15cd   :  { %4072 = vtanh.f32 %v1988_v27 }
0x15d5   :  { %v4069_v49 = vpop.eup %4068 }
0x15d6   :  { %v1985_v38 = vmul.f32 0.5, %v4069_v49  ;;  %v4071_v43 = vpop.eup %4070 }
0x15d7   :  { %v4073_v28 = vpop.eup %4072 }
0x15d8   :  { %v1986_v20 = vadd.f32 0.5, %v1985_v38  ;;  %v1990_v40 = vmul.f32 0.5, %v4073_v28 }
0x15da   :  { %v1993_v59 = vmul.f32 %v4071_v43, %v1986_v20  ;;  %v1992_v37 = vmul.f32 %v1986_v20, %v1858_v55  ;;  %v1991_v12 = vadd.f32 0.5, %v1990_v40  ;;  %v2182_v20 = vmul.f32 %v4883_v60, %v4459_v62 }
0x15db   :  { %v2183_v43 = vmul.f32 %v4883_v60, %v4468_v22 }
0x15dc   :  { %1995 = vrot.lane.b32.xlu1 %v1993_v59, %s4189_s1  ;;  %v5902_v59 = vld [vmem:[#allocation32_spill] sm:$0xff] }
0x15dd   :  { %v2184_v27 = vadd.f32 %v2182_v20, %v5902_v59 }
0x164e   :  { %v1996_v33 = vpop.permute.xlu1 %1995 }
0x164f   :  { %v1998_v0 = vadd.f32 %v1996_v33, %v1992_v37  ;;  %v5903_v33 = vld [vmem:[#allocation33_spill] sm:$0xff] }
0x1651   :  { %4074 = vtanh.f32 %v1998_v0 }
0x165b   :  { %v4075_v31 = vpop.eup %4074 }
0x165c   :  { %v5150_v39 = vmul.f32 %v4075_v31, %v1991_v12 }
0x165e   :  { %2046 = vrot.lane.b32.xlu0 %v5150_v39, %s4189_s1 }
0x16d0   :  { %v2047_v14 = vpop.permute.xlu0 %2046 }
0x16d1   :  { %3367 = vmatmul.mubr.msk.f32.vlgmr.msra.gmra.mrb[12].mxu0 %vm593_vm4, %v2047_v14 }
0x16d2   :  { %3714 = vmatpush1.bf16.msra.mxu0 %v4507_v58  ;;  %2394 = vmatprep.mubr.f32.mxu0 %v5885_v3 }
0x16d3   :  { %3716 = vmatprep.subr.bf16.mxu0 %v4509_v41 }
0x16d6   :  { %3718 = vmatpush1.bf16.msra.mxu0 %v4526_v1 }
0x16d7   :  { %3720 = vmatprep.subr.bf16.mxu0 %v4530_v2 }
0x16da   :  { %3722 = vmatpush1.bf16.msra.mxu0 %v4546_v32 }
0x16db   :  { %3724 = vmatprep.subr.bf16.mxu0 %v4550_v7 }
0x16de   :  { %3726 = vmatpush1.bf16.msra.mxu0 %v4560_v26 }
0x16df   :  { %3744 = vmatprep.subr.bf16.mxu0 %v4496_v53 }
0x17a4   :  { %v2116_v55 = vpop.f32.mrb[12].mxu0 }
0x17a5   :  { %v2121_v25 = vadd.f32 %v2116_v55, %v2044_v48  ;;  %v2118_v36 = vpop.f32.mrb[13].mxu0 }
0x17a6   :  { %v2122_v30 = vadd.f32 %v2118_v36, %v2045_v4 }
0x17a7   :  { %v2123_v34 = vmul.f32 0.5, %v2121_v25 }
0x17a8   :  { %v2128_v21 = vmul.f32 0.5, %v2122_v30 }
0x17a9   :  { %4076 = vtanh.f32 %v2123_v34  ;;  %v5904_v34 = vld [vmem:[#allocation30_spill] sm:$0xff] }
0x17aa   :  { %4078 = vtanh.f32 %v2122_v30 }
0x17ab   :  { %4080 = vtanh.f32 %v2128_v21 }
0x17b3   :  { %v4077_v56 = vpop.eup %4076 }
0x17b4   :  { %v2125_v46 = vmul.f32 0.5, %v4077_v56  ;;  %v4079_v6 = vpop.eup %4078  ;;  %v2318_v56 = vmul.f32 %v5904_v34, %v4438_v18 }
0x17b5   :  { %v4081_v47 = vpop.eup %4080 }
0x17b6   :  { %v2126_v13 = vadd.f32 0.5, %v2125_v46  ;;  %v2130_v11 = vmul.f32 0.5, %v4081_v47  ;;  %v2319_v46 = vmul.f32 %v5904_v34, %v4441_v19 }
0x17b8   :  { %v2133_v35 = vmul.f32 %v4079_v6, %v2126_v13  ;;  %v2132_v8 = vmul.f32 %v2126_v13, %v1998_v0  ;;  %v2131_v16 = vadd.f32 0.5, %v2130_v11  ;;  %v2185_v0 = vadd.f32 %v2183_v43, %v5903_v33  ;;  %v5905_v13 = vld [vmem:[#allocation27_spill] sm:$0xff] }
0x17b9   :  { %v2320_v6 = vadd.f32 %v2318_v56, %v5905_v13 }
0x17ba   :  { %2135 = vrot.lane.b32.xlu1 %v2133_v35, %s4189_s1  ;;  %v5906_v35 = vld [vmem:[#allocation29_spill] sm:$0xff] }
0x17bb   :  { %v2322_v21 = vmul.f32 %v5906_v35, %v4459_v62 }
0x17bd   :  { %v2324_v47 = vadd.f32 %v2322_v21, %v2320_v6 }
0x182c   :  { %v2136_v9 = vpop.permute.xlu1 %2135 }
0x182d   :  { %v2138_v29 = vadd.f32 %v2136_v9, %v2132_v8  ;;  %v5907_v8 = vld [vmem:[#allocation28_spill] sm:$0xff] }
0x182e   :  { %v2321_v9 = vadd.f32 %v2319_v46, %v5907_v8 }
0x182f   :  { %4082 = vtanh.f32 %v2138_v29 }
0x1839   :  { %v4083_v24 = vpop.eup %4082 }
0x183a   :  { %v5175_v49 = vmul.f32 %v4083_v24, %v2131_v16 }
0x183c   :  { %2186 = vrot.lane.b32.xlu0 %v5175_v49, %s4189_s1 }
0x18ae   :  { %v2187_v38 = vpop.permute.xlu0 %2186 }
0x18af   :  { %3368 = vmatmul.mubr.msk.f32.vlgmr.msra.gmra.mrb[10].mxu1 %vm593_vm4, %v2187_v38 }
0x18b0   :  { %3730 = vmatpush1.bf16.msra.mxu1 %v4507_v58  ;;  %2534 = vmatprep.mubr.f32.mxu1 %v5885_v3 }
0x18b1   :  { %3732 = vmatprep.subr.bf16.mxu1 %v4509_v41 }
0x18b4   :  { %3734 = vmatpush1.bf16.msra.mxu1 %v4526_v1 }
0x18b5   :  { %3736 = vmatprep.subr.bf16.mxu1 %v4530_v2 }
0x18b8   :  { %3738 = vmatpush1.bf16.msra.mxu1 %v4546_v32 }
0x18b9   :  { %3740 = vmatprep.subr.bf16.mxu1 %v4550_v7 }
0x18bc   :  { %3742 = vmatpush1.bf16.msra.mxu1 %v4560_v26 }
0x18bd   :  { %3760 = vmatprep.subr.bf16.mxu1 %v4496_v53 }
0x1982   :  { %v2256_v37 = vpop.f32.mrb[10].mxu1 }
0x1983   :  { %v2261_v28 = vadd.f32 %v2256_v37, %v2184_v27  ;;  %v2258_v40 = vpop.f32.mrb[11].mxu1 }
0x1984   :  { %v2262_v12 = vadd.f32 %v2258_v40, %v2185_v0 }
0x1985   :  { %v2263_v31 = vmul.f32 0.5, %v2261_v28 }
0x1986   :  { %v2268_v63 = vmul.f32 0.5, %v2262_v12 }
0x1987   :  { %4084 = vtanh.f32 %v2263_v31 }
0x1988   :  { %4086 = vtanh.f32 %v2262_v12 }
0x1989   :  { %4088 = vtanh.f32 %v2268_v63 }
0x1991   :  { %v4085_v14 = vpop.eup %4084 }
0x1992   :  { %v2265_v44 = vmul.f32 0.5, %v4085_v14  ;;  %v4087_v57 = vpop.eup %4086 }
0x1993   :  { %v4089_v48 = vpop.eup %4088 }
0x1994   :  { %v2266_v53 = vadd.f32 0.5, %v2265_v44  ;;  %v2270_v55 = vmul.f32 0.5, %v4089_v48 }
0x1996   :  { %v2273_v23 = vmul.f32 %v4087_v57, %v2266_v53  ;;  %v2272_v60 = vmul.f32 %v2266_v53, %v2138_v29  ;;  %v2271_v4 = vadd.f32 0.5, %v2270_v55  ;;  %v2323_v29 = vmul.f32 %v5906_v35, %v4468_v22 }
0x1998   :  { %2275 = vrot.lane.b32.xlu1 %v2273_v23, %s4189_s1  ;;  %v2325_v16 = vadd.f32 %v2323_v29, %v2321_v9 }
0x1a0a   :  { %v2276_v17 = vpop.permute.xlu1 %2275 }
0x1a0b   :  { %v2278_v5 = vadd.f32 %v2276_v17, %v2272_v60  ;;  %v5908_v60 = vld [vmem:[#allocation25_spill] sm:$0xff] }
0x1a0c   :  { %v2462_v17 = vmul.f32 %v5908_v60, %v4459_v62 }
0x1a0d   :  { %4090 = vtanh.f32 %v2278_v5 }
0x1a17   :  { %v4091_v25 = vpop.eup %4090 }
0x1a18   :  { %v5196_v36 = vmul.f32 %v4091_v25, %v2271_v4 }
0x1a1a   :  { %2326 = vrot.lane.b32.xlu0 %v5196_v36, %s4189_s1 }
0x1a8c   :  { %v2327_v30 = vpop.permute.xlu0 %2326 }
0x1a8d   :  { %3369 = vmatmul.mubr.msk.f32.vlgmr.msra.gmra.mrb[14].mxu0 %vm593_vm4, %v2327_v30 }
0x1a8e   :  { %3746 = vmatpush1.bf16.msra.mxu0 %v4507_v58  ;;  %2674 = vmatprep.mubr.f32.mxu0 %v5885_v3 }
0x1a8f   :  { %3748 = vmatprep.subr.bf16.mxu0 %v4509_v41 }
0x1a92   :  { %3750 = vmatpush1.bf16.msra.mxu0 %v4526_v1 }
0x1a93   :  { %3752 = vmatprep.subr.bf16.mxu0 %v4530_v2 }
0x1a96   :  { %3754 = vmatpush1.bf16.msra.mxu0 %v4546_v32 }
0x1a97   :  { %3756 = vmatprep.subr.bf16.mxu0 %v4550_v7 }
0x1a9a   :  { %3758 = vmatpush1.bf16.msra.mxu0 %v4560_v26 }
0x1b60   :  { %v2396_v11 = vpop.f32.mrb[14].mxu0 }
0x1b61   :  { %v2401_v24 = vadd.f32 %v2396_v11, %v2324_v47  ;;  %v2398_v38 = vpop.f32.mrb[15].mxu0  ;;  %v5911_v11 = vld [vmem:[#allocation17_spill] sm:$0xff] }
0x1b62   :  { %v2402_v20 = vadd.f32 %v2398_v38, %v2325_v16  ;;  %v2586_v16 = vmul.f32 %v5911_v11, %v4407_v50  ;;  %v5912_v38 = vld [vmem:[#allocation19_spill] sm:$0xff] }
0x1b63   :  { %v2403_v43 = vmul.f32 0.5, %v2401_v24  ;;  %v2587_v24 = vmul.f32 %v5911_v11, %v4410_v51  ;;  %v5916_v51 = vld [vmem:[#allocation21_spill] sm:$0xff] }
0x1b64   :  { %v2408_v28 = vmul.f32 0.5, %v2402_v20 }
0x1b65   :  { %4092 = vtanh.f32 %v2403_v43  ;;  %v2591_v43 = vmul.f32 %v5912_v38, %v4417_v10  ;;  %v2599_v10 = vmul.f32 %v5916_v51, %v4441_v19 }
0x1b66   :  { %4094 = vtanh.f32 %v2402_v20  ;;  %v2590_v20 = vmul.f32 %v5912_v38, %v4413_v52 }
0x1b67   :  { %4096 = vtanh.f32 %v2408_v28  ;;  %v5915_v28 = vld [vmem:[#allocation18_spill] sm:$0xff] }
0x1b68   :  { %v2595_v50 = vmul.f32 %v5915_v28, %v4435_v15 }
0x1b6f   :  { %v4093_v59 = vpop.eup %4092 }
0x1b70   :  { %v2405_v27 = vmul.f32 0.5, %v4093_v59  ;;  %v4095_v33 = vpop.eup %4094  ;;  %v5913_v59 = vld [vmem:[#allocation15_spill] sm:$0xff] }
0x1b71   :  { %v4097_v14 = vpop.eup %4096 }
0x1b72   :  { %v2406_v37 = vadd.f32 0.5, %v2405_v27  ;;  %v2410_v44 = vmul.f32 0.5, %v4097_v14  ;;  %v2588_v27 = vadd.f32 %v2586_v16, %v5913_v59  ;;  %v2598_v14 = vmul.f32 %v5916_v51, %v4438_v18  ;;  %v5920_v16 = vld [vmem:[#allocation34_spill] sm:$0xff] }
0x1b74   :  { %v2413_v0 = vmul.f32 %v4095_v33, %v2406_v37  ;;  %v2412_v40 = vmul.f32 %v2406_v37, %v2278_v5  ;;  %v2411_v53 = vadd.f32 0.5, %v2410_v44  ;;  %v5909_v5 = vld [vmem:[#allocation23_spill] sm:$0xff]  ;;  %v5914_v37 = vld [vmem:[#allocation16_spill] sm:$0xff] }
0x1b75   :  { %v2589_v33 = vadd.f32 %v2587_v24, %v5914_v37 }
0x1b76   :  { %2415 = vrot.lane.b32.xlu1 %v2413_v0, %s4189_s1  ;;  %v2592_v0 = vadd.f32 %v2590_v20, %v2588_v27  ;;  %v5922_v27 = vld [vmem:[#allocation35_spill] sm:$0xff] }
0x1be8   :  { %v2416_v12 = vpop.permute.xlu1 %2415 }
0x1be9   :  { %v2418_v31 = vadd.f32 %v2416_v12, %v2412_v40  ;;  %v2594_v40 = vmul.f32 %v5915_v28, %v4420_v54  ;;  %v2593_v12 = vadd.f32 %v2591_v43, %v2589_v33  ;;  %v5921_v43 = vld [vmem:[#allocation22_spill] sm:$0xff] }
0x1beb   :  { %4098 = vtanh.f32 %v2418_v31  ;;  %v2597_v52 = vadd.f32 %v2595_v50, %v2593_v12 }
0x1bf5   :  { %v4099_v57 = vpop.eup %4098 }
0x1bf6   :  { %v5220_v23 = vmul.f32 %v4099_v57, %v2411_v53  ;;  %v5917_v53 = vld [vmem:[#allocation20_spill] sm:$0xff] }
0x1bf7   :  { %v2602_v57 = vmul.f32 %v5917_v53, %v4459_v62  ;;  %v2603_v54 = vmul.f32 %v5917_v53, %v4468_v22  ;;  %v5924_v53 = vld [vmem:[#allocation12_spill] sm:$0xff] }
0x1bf8   :  { %2466 = vrot.lane.b32.xlu0 %v5220_v23, %s4189_s1 }
0x1c6a   :  { %v2467_v63 = vpop.permute.xlu0 %2466 }
0x1c6b   :  { %3370 = vmatmul.mubr.msk.f32.vlgmr.msra.gmra.mrb[12].mxu1 %vm593_vm4, %v2467_v63  ;;  %v2601_v63 = vadd.f32 %v2599_v10, %v2597_v52  ;;  %v5923_v52 = vld [vmem:[#allocation11_spill] sm:$0xff] }
0x1c6c   :  { %3762 = vmatpush1.bf16.msra.mxu1 %v4507_v58  ;;  %2814 = vmatprep.mubr.f32.mxu1 %v5885_v3  ;;  %v2463_v58 = vmul.f32 %v5908_v60, %v4468_v22  ;;  %v2464_v3 = vadd.f32 %v2462_v17, %v5909_v5  ;;  %v2738_v10 = vmul.f32 %v5923_v52, %v4438_v18 }
0x1c6d   :  { %3764 = vmatprep.subr.bf16.mxu1 %v4509_v41  ;;  %v5910_v41 = vld [vmem:[#allocation24_spill] sm:$0xff] }
0x1c6e   :  { %v2465_v55 = vadd.f32 %v2463_v58, %v5910_v41  ;;  %v2605_v58 = vadd.f32 %v2603_v54, %v2601_v63  ;;  %v5925_v63 = vld [vmem:[#allocation13_spill] sm:$0xff] }
0x1c70   :  { %3766 = vmatpush1.bf16.msra.mxu1 %v4526_v1 }
0x1c71   :  { %3768 = vmatprep.subr.bf16.mxu1 %v4530_v2 }
0x1c74   :  { %3770 = vmatpush1.bf16.msra.mxu1 %v4546_v32 }
0x1c75   :  { %3772 = vmatprep.subr.bf16.mxu1 %v4550_v7 }
0x1c78   :  { %3774 = vmatpush1.bf16.msra.mxu1 %v4560_v26 }
0x1d3e   :  { %v2536_v48 = vpop.f32.mrb[12].mxu1 }
0x1d3f   :  { %v2541_v1 = vadd.f32 %v2536_v48, %v2464_v3  ;;  %v2538_v4 = vpop.f32.mrb[13].mxu1 }
0x1d40   :  { %v2542_v2 = vadd.f32 %v2538_v4, %v2465_v55 }
0x1d41   :  { %v2543_v25 = vmul.f32 0.5, %v2541_v1 }
0x1d42   :  { %v2548_v56 = vmul.f32 0.5, %v2542_v2 }
0x1d43   :  { %4100 = vtanh.f32 %v2543_v25 }
0x1d44   :  { %4102 = vtanh.f32 %v2542_v2 }
0x1d45   :  { %4104 = vtanh.f32 %v2548_v56 }
0x1d4d   :  { %v4101_v32 = vpop.eup %4100 }
0x1d4e   :  { %v2545_v7 = vmul.f32 0.5, %v4101_v32  ;;  %v4103_v30 = vpop.eup %4102 }
0x1d4f   :  { %v4105_v35 = vpop.eup %4104 }
0x1d50   :  { %v2546_v26 = vadd.f32 0.5, %v2545_v7  ;;  %v2550_v21 = vmul.f32 0.5, %v4105_v35 }
0x1d52   :  { %v2553_v34 = vmul.f32 %v4103_v30, %v2546_v26  ;;  %v2552_v46 = vmul.f32 %v2546_v26, %v2418_v31  ;;  %v2551_v8 = vadd.f32 0.5, %v2550_v21  ;;  %v2596_v31 = vadd.f32 %v2594_v40, %v2592_v0 }
0x1d54   :  { %2555 = vrot.lane.b32.xlu1 %v2553_v34, %s4189_s1  ;;  %v2600_v44 = vadd.f32 %v2598_v14, %v2596_v31  ;;  %v4201_v34 = vmov 1983009808  }
0x1d55   :  { %v514_v56 = vunpack.c.l.s4 %v4201_v34  ;;  %v2871_v34 = vld [vmem:[%s5824_s9 + $0x88] sm:$0xff] }
0x1d56   :  { %v2604_v60 = vadd.f32 %v2602_v57, %v2600_v44  ;;  %v2739_v44 = vmul.f32 %v5923_v52, %v4441_v19  ;;  %v2740_v57 = vadd.f32 %v2738_v10, %v5924_v53  ;;  %v2858_v10 = vld [vmem:[%s5824_s9 + $0x20] sm:$0xff] }
0x1d57   :  { %v2906_v53 = vld [vmem:[%s5824_s9 + $0x1a0] sm:$0xff] }
0x1d58   :  { %v2741_v54 = vadd.f32 %v2739_v44, %v5925_v63  ;;  %v2859_v44 = vld [vmem:[%s5824_s9 + $0x28] sm:$0xff]  ;;  %v2890_v63 = vld [vmem:[%s5824_s9 + $0x120] sm:$0xff] }
0x1dc6   :  { %v2556_v13 = vpop.permute.xlu1 %2555 }
0x1dc7   :  { %v2558_v6 = vadd.f32 %v2556_v13, %v2552_v46  ;;  %v515_v13 = vunpack.c.0.s8 %v514_v56  ;;  %v2854_v56 = vld [vmem:[%s5824_s9] sm:$0xff] }
0x1dc9   :  { %4106 = vtanh.f32 %v2558_v6 }
0x1dd3   :  { %v4107_v9 = vpop.eup %4106 }
0x1dd4   :  { %v5240_v29 = vmul.f32 %v4107_v9, %v2551_v8  ;;  %v5918_v8 = vld [vmem:[#allocation9_spill] sm:$0xff] }
0x1dd5   :  { %v5272_v9 = vsub.s32 %v515_v13, %v5918_v8  ;;  %v2902_v13 = vld [vmem:[%s5824_s9 + $0x180] sm:$0xff] }
0x1dd6   :  { %2606 = vrot.lane.b32.xlu0 %v5240_v29, %s4189_s1 }
0x1dd7   :  { %v1212_v24 = vrot.slane %v5920_v16, %v5272_v9  ;;  %v2009_v38 = vrot.slane %v5150_v39, %v5272_v9  ;;  %v2569_v20 = vrot.slane %v5240_v29, %v5272_v9  ;;  %v696_v59 = vrot.slane %v5921_v43, %v5272_v9  ;;  %v2872_v16 = vld [vmem:[%s5824_s9 + $0x90] sm:$0xff] }
0x1dd8   :  { %v1385_v37 = vrot.slane %v5922_v27, %v5272_v9  ;;  %v1868_v33 = vrot.slane %v5129_v42, %v5272_v9  ;;  %v2428_v0 = vrot.slane %v5220_v23, %v5272_v9 }
0x1e48   :  { %v2607_v47 = vpop.permute.xlu0 %2606 }
0x1e49   :  { %3371 = vmatmul.mubr.msk.f32.vlgmr.msra.gmra.mrb[16].mxu0 %vm593_vm4, %v2607_v47 }
0x1f1c   :  { %v2676_v17 = vpop.f32.mrb[16].mxu0 }
0x1f1d   :  { %v2681_v15 = vadd.f32 %v2676_v17, %v2604_v60  ;;  %v2678_v5 = vpop.f32.mrb[17].mxu0  ;;  %v5926_v60 = vld [vmem:[#allocation10_spill] sm:$0xff] }
0x1f1e   :  { %v2682_v3 = vadd.f32 %v2678_v5, %v2605_v58  ;;  %v2742_v17 = vmul.f32 %v4459_v62, %v5926_v60  ;;  %v2743_v58 = vmul.f32 %v4468_v22, %v5926_v60  ;;  %v5927_v22 = vld [vmem:[#allocation26_spill] sm:$0xff]  ;;  %v3785_v60 = vpack.c.bf16 %v2859_v44, %v2858_v10 }
0x1f1f   :  { %v2683_v48 = vmul.f32 0.5, %v2681_v15  ;;  %v2882_v44 = vld [vmem:[%s5824_s9 + $0xe0] sm:$0xff] }
0x1f20   :  { %v2688_v25 = vmul.f32 0.5, %v2682_v3  ;;  %v2744_v15 = vadd.f32 %v2742_v17, %v2740_v57  ;;  %v2907_v57 = vld [vmem:[%s5824_s9 + $0x1a8] sm:$0xff] }
0x1f21   :  { %4108 = vtanh.f32 %v2683_v48  ;;  %v3815_v17 = vpack.c.bf16 %v2907_v57, %v2906_v53  ;;  %v2883_v53 = vld [vmem:[%s5824_s9 + $0xe8] sm:$0xff]  ;;  %v2866_v57 = vld [vmem:[%s5824_s9 + $0x60] sm:$0xff] }
0x1f22   :  { %4110 = vtanh.f32 %v2682_v3  ;;  %v2745_v3 = vadd.f32 %v2743_v58, %v2741_v54  ;;  %v2891_v54 = vld [vmem:[%s5824_s9 + $0x128] sm:$0xff]  ;;  %v2876_v58 = vld [vmem:[%s5824_s9 + $0xb0] sm:$0xff] }
0x1f23   :  { %4112 = vtanh.f32 %v2688_v25  ;;  %v868_v25 = vrot.slane %v5927_v22, %v5272_v9  ;;  %v2878_v22 = vld [vmem:[%s5824_s9 + $0xc0] sm:$0xff] }
0x1f2b   :  { %v4109_v41 = vpop.eup %4108 }
0x1f2c   :  { %v2685_v55 = vmul.f32 0.5, %v4109_v41  ;;  %v4111_v4 = vpop.eup %4110 }
0x1f2d   :  { %v4113_v30 = vpop.eup %4112 }
0x1f2e   :  { %v2686_v1 = vadd.f32 0.5, %v2685_v55  ;;  %v2690_v46 = vmul.f32 0.5, %v4113_v30  ;;  %v2870_v30 = vld [vmem:[%s5824_s9 + $0x80] sm:$0xff] }
0x1f30   :  { %v2693_v2 = vmul.f32 %v4111_v4, %v2686_v1  ;;  %v2692_v32 = vmul.f32 %v2686_v1, %v2558_v6  ;;  %v2691_v35 = vadd.f32 0.5, %v2690_v46  ;;  %v5919_v6 = vld [vmem:[#allocation14_spill] sm:$0xff]  ;;  %v2855_v46 = vld [vmem:[%s5824_s9 + $0x8] sm:$0xff] }
0x1f31   :  { %v519_v11 = vrot.slane %v5919_v6, %v5272_v9  ;;  %v2886_v6 = vld [vmem:[%s5824_s9 + $0x100] sm:$0xff] }
0x1f32   :  { %2695 = vrot.lane.b32.xlu1 %v2693_v2, %s4189_s1 }
0x1fa4   :  { %v2696_v7 = vpop.permute.xlu1 %2695 }
0x1fa5   :  { %v5268_v26 = vadd.f32 %v2696_v7, %v2692_v32  ;;  %v1556_v32 = vrot.slane %v5048_v61, %v5272_v9  ;;  %v2289_v7 = vrot.slane %v5196_v36, %v5272_v9  ;;  %v3775_v61 = vpack.c.bf16 %v2871_v34, %v2870_v30  ;;  %v2911_v30 = vld [vmem:[%s5824_s9 + $0x1c8] sm:$0xff] }
0x1fa7   :  { %4114 = vtanh.f32 %v5268_v26  ;;  %3776 = vmatprep.subr.bf16.mxu0 %v3775_v61  ;;  %v2862_v61 = vld [vmem:[%s5824_s9 + $0x40] sm:$0xff] }
0x1fb1   :  { %v4115_v21 = vpop.eup %4114 }
0x1fb2   :  { %v5274_v47 = vmul.f32 %v4115_v21, %v2691_v35  ;;  %v2903_v35 = vld [vmem:[%s5824_s9 + $0x188] sm:$0xff]  ;;  %v3777_v21 = vpack.c.bf16 %v2855_v46, %v2854_v56 }
0x1fb3   :  { %v3807_v8 = vpack.c.bf16 %v2903_v35, %v2902_v13  ;;  %v2863_v46 = vld [vmem:[%s5824_s9 + $0x48] sm:$0xff]  ;;  %v2894_v35 = vld [vmem:[%s5824_s9 + $0x140] sm:$0xff] }
0x1fb4   :  { %2746 = vrot.lane.b32.xlu0 %v5274_v47, %s4189_s1  ;;  %3778 = vmatpush3.bf16.msra.mxu0 %v3777_v21  ;;  %v2895_v21 = vld [vmem:[%s5824_s9 + $0x148] sm:$0xff] }
0x1fb5   :  { %3808 = vmatprep.subr.bf16.mxu1 %v3807_v8  ;;  %v3793_v8 = vpack.c.bf16 %v2863_v46, %v2862_v61  ;;  %v2934_v61 = vld [vmem:[%s5824_s9 + $0x280] sm:$0xff]  ;;  %v2935_v46 = vld [vmem:[%s5824_s9 + $0x288] sm:$0xff] }
0x1fb8   :  { %520 = vrot.lane.b32.xlu0 %v519_v11, %s4189_s1  ;;  %v2887_v11 = vld [vmem:[%s5824_s9 + $0x108] sm:$0xff] }
0x1fbc   :  { %1213 = vrot.lane.b32.xlu0 %v1212_v24, %s4189_s1  ;;  %v3809_v24 = vpack.c.bf16 %v2887_v11, %v2886_v6  ;;  %v3825_v6 = vpack.c.bf16 %v2895_v21, %v2894_v35  ;;  %v2966_v35 = vld [vmem:[%s5824_s9 + $0x380] sm:$0xff]  ;;  %v2967_v21 = vld [vmem:[%s5824_s9 + $0x388] sm:$0xff] }
0x1fc0   :  { %2010 = vrot.lane.b32.xlu0 %v2009_v38, %s4189_s1  ;;  %v2873_v38 = vld [vmem:[%s5824_s9 + $0x98] sm:$0xff] }
0x1fc4   :  { %2570 = vrot.lane.b32.xlu0 %v2569_v20, %s4189_s1  ;;  %v2856_v20 = vld [vmem:[%s5824_s9 + $0x10] sm:$0xff] }
0x1fc8   :  { %697 = vrot.lane.b32.xlu0 %v696_v59, %s4189_s1  ;;  %v3779_v59 = vpack.c.bf16 %v2873_v38, %v2872_v16 }
0x1fca   :  { %3780 = vmatprep.subr.bf16.mxu0 %v3779_v59  ;;  %v2881_v59 = vld [vmem:[%s5824_s9 + $0xd8] sm:$0xff] }
0x1fcc   :  { %1386 = vrot.lane.b32.xlu0 %v1385_v37, %s4189_s1  ;;  %v2904_v37 = vld [vmem:[%s5824_s9 + $0x190] sm:$0xff] }
0x1fd0   :  { %1869 = vrot.lane.b32.xlu0 %v1868_v33, %s4189_s1  ;;  %v2905_v33 = vld [vmem:[%s5824_s9 + $0x198] sm:$0xff] }
0x1fd4   :  { %2429 = vrot.lane.b32.xlu0 %v2428_v0, %s4189_s1  ;;  %v2888_v0 = vld [vmem:[%s5824_s9 + $0x110] sm:$0xff] }
0x2026   :  { %v2747_v28 = vpop.permute.xlu0 %2746 }
0x2027   :  { %3372 = vmatmul.mubr.msk.f32.vlgmr.msra.gmra.mrb[14].mxu1 %vm593_vm4, %v2747_v28  ;;  %v3811_v28 = vpack.c.bf16 %v2905_v33, %v2904_v37  ;;  %v2912_v37 = vld [vmem:[%s5824_s9 + $0x1d0] sm:$0xff]  ;;  %v5928_v33 = vld [vmem:[#allocation31_spill] sm:$0xff] }
0x2028   :  { %3810 = vmatpush3.bf16.msra.mxu1 %v3809_v24 }
0x2029   :  { %3812 = vmatprep.subr.bf16.mxu1 %v3811_v28  ;;  %v2913_v28 = vld [vmem:[%s5824_s9 + $0x1d8] sm:$0xff] }
0x202a   :  { %v521_v40 = vpop.permute.xlu0 %520 }
0x202b   :  { %524 = vst.msk [vmem:[#allocation2] sm:$0x3] %vm523_vm5, %v521_v40  ;;  %v2889_v40 = vld [vmem:[%s5824_s9 + $0x118] sm:$0xff] }
0x202c   :  { %688 = vst.msk [vmem:[#allocation2] sm:$0x3] %vm687_vm6, %v5921_v43  ;;  %v2857_v43 = vld [vmem:[%s5824_s9 + $0x18] sm:$0xff] }
0x202d   :  { %2713 = vst.msk [vmem:[#allocation2] sm:$0x3] %vm525_vm3, %v5274_v47 }
0x202e   :  { %v1214_v12 = vpop.permute.xlu0 %1213 }
0x202f   :  { %1216 = vst.msk [vmem:[#allocation2 + $0x4] sm:$0x3] %vm523_vm5, %v1214_v12  ;;  %v2874_v12 = vld [vmem:[%s5824_s9 + $0xa0] sm:$0xff] }
0x2030   :  { %1377 = vst.msk [vmem:[#allocation2 + $0x4] sm:$0x3] %vm687_vm6, %v5922_v27  ;;  %v3781_v27 = vpack.c.bf16 %v2857_v43, %v2856_v20  ;;  %v2880_v43 = vld [vmem:[%s5824_s9 + $0xd0] sm:$0xff] }
0x2031   :  { %2153 = vst.msk [vmem:[#allocation2 + $0x4] sm:$0x3] %vm525_vm3, %v5175_v49 }
0x2032   :  { %v5313_v50 = vpop.permute.xlu0 %2010  ;;  %3782 = vmatpush3.bf16.msra.mxu0 %v3781_v27 }
0x2036   :  { %v5315_v31 = vpop.permute.xlu0 %2570 }
0x203a   :  { %v698_v51 = vpop.permute.xlu0 %697 }
0x203b   :  { %701 = vst.msk [vmem:[#allocation2 + $0xe] sm:$0x3] %vm700_vm7, %v698_v51  ;;  %v2875_v51 = vld [vmem:[%s5824_s9 + $0xa8] sm:$0xff] }
0x203c   :  { %v3783_v52 = vpack.c.bf16 %v2875_v51, %v2874_v12  ;;  %v2897_v12 = vld [vmem:[%s5824_s9 + $0x158] sm:$0xff]  ;;  %v3827_v51 = vpack.c.bf16 %v2913_v28, %v2912_v37  ;;  %v2950_v37 = vld [vmem:[%s5824_s9 + $0x300] sm:$0xff] }
0x203e   :  { %v1387_v14 = vpop.permute.xlu0 %1386  ;;  %3784 = vmatprep.subr.bf16.mxu0 %v3783_v52 }
0x203f   :  { %1389 = vst.msk [vmem:[#allocation2 + $0xa] sm:$0x3] %vm700_vm7, %v1387_v14  ;;  %v3813_v14 = vpack.c.bf16 %v2889_v40, %v2888_v0  ;;  %3786 = vmatpush3.bf16.msra.mxu0 %v3785_v60  ;;  %v2896_v40 = vld [vmem:[%s5824_s9 + $0x150] sm:$0xff]  ;;  %v2915_v60 = vld [vmem:[%s5824_s9 + $0x1e8] sm:$0xff] }
0x2041   :  { %3814 = vmatpush3.bf16.msra.mxu1 %v3813_v14  ;;  %v3829_v14 = vpack.c.bf16 %v2897_v12, %v2896_v40  ;;  %v2968_v12 = vld [vmem:[%s5824_s9 + $0x390] sm:$0xff] }
0x2042   :  { %3816 = vmatprep.subr.bf16.mxu1 %v3815_v17 }
0x20fa   :  { %v2816_v5 = vpop.f32.mrb[14].mxu1 }
0x20fb   :  { %v2821_v48 = vadd.f32 %v2816_v5, %v2744_v15  ;;  %v2818_v41 = vpop.f32.mrb[15].mxu1  ;;  %v2877_v15 = vld [vmem:[%s5824_s9 + $0xb8] sm:$0xff]  ;;  %v2860_v5 = vld [vmem:[%s5824_s9 + $0x30] sm:$0xff] }
0x20fc   :  { %v5329_v55 = vadd.f32 %v2818_v41, %v2745_v3  ;;  %v3817_v3 = vpack.c.bf16 %v2891_v54, %v2890_v63  ;;  %v2861_v41 = vld [vmem:[%s5824_s9 + $0x38] sm:$0xff]  ;;  %v2914_v54 = vld [vmem:[%s5824_s9 + $0x1e0] sm:$0xff] }
0x20fd   :  { %v2823_v18 = vmul.f32 0.5, %v2821_v48  ;;  %v3787_v48 = vpack.c.bf16 %v2877_v15, %v2876_v58  ;;  %v3831_v17 = vpack.c.bf16 %v2915_v60, %v2914_v54  ;;  %v2898_v58 = vld [vmem:[%s5824_s9 + $0x160] sm:$0xff]  ;;  %v2899_v15 = vld [vmem:[%s5824_s9 + $0x168] sm:$0xff]  ;;  %v2953_v54 = vld [vmem:[%s5824_s9 + $0x318] sm:$0xff] }
0x20fe   :  { %3818 = vmatpush3.bf16.msra.mxu1 %v3817_v3  ;;  %v2828_v11 = vmul.f32 0.5, %v5329_v55 }
0x20ff   :  { %4116 = vtanh.f32 %v2823_v18  ;;  %v2908_v18 = vld [vmem:[%s5824_s9 + $0x1b0] sm:$0xff]  ;;  %3788 = vmatprep.subr.bf16.mxu0 %v3787_v48  ;;  %v3833_v48 = vpack.c.bf16 %v2899_v15, %v2898_v58 }
0x2100   :  { %4118 = vtanh.f32 %v5329_v55  ;;  %v3795_v55 = vpack.c.bf16 %v2881_v59, %v2880_v43 }
0x2101   :  { %4120 = vtanh.f32 %v2828_v11  ;;  %v1729_v11 = vrot.slane %v5108_v45, %v5272_v9 }
0x2109   :  { %v4117_v19 = vpop.eup %4116 }
0x210a   :  { %v2825_v1 = vmul.f32 0.5, %v4117_v19  ;;  %v4119_v2 = vpop.eup %4118  ;;  %v2909_v19 = vld [vmem:[%s5824_s9 + $0x1b8] sm:$0xff] }
0x210b   :  { %v4121_v27 = vpop.eup %4120 }
0x210c   :  { %v5332_v4 = vadd.f32 0.5, %v2825_v1  ;;  %v3819_v1 = vpack.c.bf16 %v2909_v19, %v2908_v18  ;;  %v2830_v52 = vmul.f32 0.5, %v4121_v27  ;;  %v2919_v27 = vld [vmem:[%s5824_s9 + $0x208] sm:$0xff] }
0x210e   :  { %v2833_v62 = vmul.f32 %v4119_v2, %v5332_v4  ;;  %v2892_v2 = vld [vmem:[%s5824_s9 + $0x130] sm:$0xff]  ;;  %3820 = vmatprep.subr.bf16.mxu1 %v3819_v1  ;;  %v2832_v16 = vmul.f32 %v5332_v4, %v5268_v26  ;;  %v2865_v4 = vld [vmem:[%s5824_s9 + $0x58] sm:$0xff] }
0x210f   :  { %v2864_v26 = vld [vmem:[%s5824_s9 + $0x50] sm:$0xff]  ;;  %v2869_v1 = vld [vmem:[%s5824_s9 + $0x78] sm:$0xff] }
0x2110   :  { %2835 = vrot.lane.b32.xlu1 %v2833_v62, %s4189_s1  ;;  %v2893_v62 = vld [vmem:[%s5824_s9 + $0x138] sm:$0xff]  ;;  %v3797_v0 = vpack.c.bf16 %v2865_v4, %v2864_v26  ;;  %v2936_v4 = vld [vmem:[%s5824_s9 + $0x290] sm:$0xff] }
0x2111   :  { %v3821_v34 = vpack.c.bf16 %v2893_v62, %v2892_v2 }
0x2113   :  { %3822 = vmatpush3.bf16.msra.mxu1 %v3821_v34 }
0x2114   :  { %869 = vrot.lane.b32.xlu1 %v868_v25, %s4189_s1  ;;  %v2879_v25 = vld [vmem:[%s5824_s9 + $0xc8] sm:$0xff] }
0x2115   :  { %v3791_v56 = vpack.c.bf16 %v2879_v25, %v2878_v22  ;;  %v2916_v22 = vld [vmem:[%s5824_s9 + $0x1f0] sm:$0xff]  ;;  %v2917_v25 = vld [vmem:[%s5824_s9 + $0x1f8] sm:$0xff] }
0x2118   :  { %1557 = vrot.lane.b32.xlu1 %v1556_v32, %s4189_s1  ;;  %v3789_v32 = vpack.c.bf16 %v2861_v41, %v2860_v5  ;;  %v2831_v5 = vadd.f32 0.5, %v2830_v52  ;;  %v2885_v41 = vld [vmem:[%s5824_s9 + $0xf8] sm:$0xff] }
0x211a   :  { %3790 = vmatpush3.bf16.msra.mxu0 %v3789_v32  ;;  %v3835_v32 = vpack.c.bf16 %v2917_v25, %v2916_v22  ;;  %v2924_v25 = vld [vmem:[%s5824_s9 + $0x230] sm:$0xff] }
0x211b   :  { %3792 = vmatprep.subr.bf16.mxu0 %v3791_v56 }
0x211c   :  { %2290 = vrot.lane.b32.xlu1 %v2289_v7, %s4189_s1  ;;  %v2910_v7 = vld [vmem:[%s5824_s9 + $0x1c0] sm:$0xff] }
0x211d   :  { %v3823_v13 = vpack.c.bf16 %v2911_v30, %v2910_v7  ;;  %v2900_v7 = vld [vmem:[%s5824_s9 + $0x170] sm:$0xff]  ;;  %v2901_v30 = vld [vmem:[%s5824_s9 + $0x178] sm:$0xff] }
0x211e   :  { %3794 = vmatpush3.bf16.msra.mxu0 %v3793_v8  ;;  %v3837_v56 = vpack.c.bf16 %v2901_v30, %v2900_v7  ;;  %v3871_v8 = vpack.c.bf16 %v2967_v21, %v2966_v35  ;;  %v2942_v30 = vld [vmem:[%s5824_s9 + $0x2c0] sm:$0xff]  ;;  %v2975_v21 = vld [vmem:[%s5824_s9 + $0x3c8] sm:$0xff] }
0x211f   :  { %3824 = vmatprep.subr.bf16.mxu1 %v3823_v13  ;;  %3796 = vmatprep.subr.bf16.mxu0 %v3795_v55  ;;  %v3839_v13 = vpack.c.bf16 %v2935_v46, %v2934_v61  ;;  %v2956_v61 = vld [vmem:[%s5824_s9 + $0x330] sm:$0xff]  ;;  %v2957_v46 = vld [vmem:[%s5824_s9 + $0x338] sm:$0xff]  ;;  %v2974_v35 = vld [vmem:[%s5824_s9 + $0x3c0] sm:$0xff] }
0x2120   :  { %3826 = vmatpush3.bf16.msra.mxu1 %v3825_v6  ;;  %v1041_v6 = vrot.slane %v5928_v33, %v5272_v9 }
0x2121   :  { %3828 = vmatprep.subr.bf16.mxu1 %v3827_v51  ;;  %v2969_v51 = vld [vmem:[%s5824_s9 + $0x398] sm:$0xff] }
0x2122   :  { %3798 = vmatpush3.bf16.msra.mxu0 %v3797_v0 }
0x2124   :  { %3830 = vmatpush3.bf16.msra.mxu1 %v3829_v14 }
0x2125   :  { %3832 = vmatprep.subr.bf16.mxu1 %v3831_v17  ;;  %v2970_v17 = vld [vmem:[%s5824_s9 + $0x3a0] sm:$0xff] }
0x2128   :  { %3834 = vmatpush3.bf16.msra.mxu1 %v3833_v48 }
0x2129   :  { %3836 = vmatprep.subr.bf16.mxu1 %v3835_v32  ;;  %v2925_v32 = vld [vmem:[%s5824_s9 + $0x238] sm:$0xff] }
0x212c   :  { %3838 = vmatpush3.bf16.msra.mxu1 %v3837_v56 }
0x212d   :  { %3872 = vmatprep.subr.bf16.mxu1 %v3871_v8 }
0x2182   :  { %v2836_v24 = vpop.permute.xlu1 %2835 }
0x2183   :  { %v2838_v38 = vadd.f32 %v2836_v24, %v2832_v16  ;;  %v2148_v16 = vrot.slane %v5175_v49, %v5272_v9  ;;  %v2708_v24 = vrot.slane %v5274_v47, %v5272_v9  ;;  %v2918_v47 = vld [vmem:[%s5824_s9 + $0x200] sm:$0xff] }
0x2184   :  { %v3841_v28 = vpack.c.bf16 %v2919_v27, %v2918_v47 }
0x2185   :  { %4122 = vtanh.f32 %v2838_v38  ;;  %v1870_v38 = vpop.permute.xlu0 %1869 }
0x2186   :  { %v870_v20 = vpop.permute.xlu1 %869 }
0x2187   :  { %872 = vst.msk [vmem:[#allocation2 + $0x2] sm:$0x3] %vm523_vm5, %v870_v20 }
0x2188   :  { %1033 = vst.msk [vmem:[#allocation2 + $0x2] sm:$0x3] %vm687_vm6, %v5928_v33  ;;  %v2951_v33 = vld [vmem:[%s5824_s9 + $0x308] sm:$0xff] }
0x2189   :  { %2433 = vst.msk [vmem:[#allocation2 + $0x2] sm:$0x3] %vm525_vm3, %v5220_v23  ;;  %v3799_v23 = vpack.c.bf16 %v2883_v53, %v2882_v44  ;;  %v2430_v59 = vpop.permute.xlu0 %2429  ;;  %v3873_v53 = vpack.c.bf16 %v2951_v33, %v2950_v37  ;;  %v2928_v33 = vld [vmem:[%s5824_s9 + $0x250] sm:$0xff] }
0x218a   :  { %2573 = vst.msk [vmem:[#allocation2 + $0x2] sm:$0x3] %vm700_vm7, %v5315_v31  ;;  %v1558_v10 = vpop.permute.xlu1 %1557  ;;  %v2867_v31 = vld [vmem:[%s5824_s9 + $0x68] sm:$0xff] }
0x218b   :  { %1560 = vst.msk [vmem:[#allocation2 + $0x6] sm:$0x3] %vm523_vm5, %v1558_v10  ;;  %v3801_v63 = vpack.c.bf16 %v2867_v31, %v2866_v57  ;;  %3800 = vmatprep.subr.bf16.mxu0 %v3799_v23  ;;  %v2920_v10 = vld [vmem:[%s5824_s9 + $0x210] sm:$0xff]  ;;  %v2938_v23 = vld [vmem:[%s5824_s9 + $0x2a0] sm:$0xff]  ;;  %v2939_v57 = vld [vmem:[%s5824_s9 + $0x2a8] sm:$0xff]  ;;  %v3875_v31 = vpack.c.bf16 %v2969_v51, %v2968_v12 }
0x218c   :  { %1721 = vst.msk [vmem:[#allocation2 + $0x6] sm:$0x3] %vm687_vm6, %v5108_v45  ;;  %v3847_v15 = vpack.c.bf16 %v2939_v57, %v2938_v23  ;;  %v2947_v12 = vld [vmem:[%s5824_s9 + $0x2e8] sm:$0xff]  ;;  %v2930_v23 = vld [vmem:[%s5824_s9 + $0x260] sm:$0xff] }
0x218d   :  { %1873 = vst.msk [vmem:[#allocation2 + $0x6] sm:$0x3] %vm525_vm3, %v5129_v42  ;;  %3802 = vmatpush3.bf16.msra.mxu0 %v3801_v63  ;;  %v2884_v42 = vld [vmem:[%s5824_s9 + $0xf0] sm:$0xff]  ;;  %v2931_v57 = vld [vmem:[%s5824_s9 + $0x268] sm:$0xff] }
0x218e   :  { %2013 = vst.msk [vmem:[#allocation2 + $0x6] sm:$0x3] %vm700_vm7, %v5313_v50  ;;  %v2291_v3 = vpop.permute.xlu1 %2290  ;;  %v3803_v19 = vpack.c.bf16 %v2885_v41, %v2884_v42  ;;  %v2868_v50 = vld [vmem:[%s5824_s9 + $0x70] sm:$0xff]  ;;  %v2941_v41 = vld [vmem:[%s5824_s9 + $0x2b8] sm:$0xff] }
0x218f   :  { %v4123_v18 = vpop.eup %4122  ;;  %2293 = vst.msk [vmem:[#allocation2 + $0x4] sm:$0x3] %vm700_vm7, %v2291_v3  ;;  %v3805_v62 = vpack.c.bf16 %v2869_v1, %v2868_v50  ;;  %v2952_v63 = vld [vmem:[%s5824_s9 + $0x310] sm:$0xff]  ;;  %v2923_v3 = vld [vmem:[%s5824_s9 + $0x228] sm:$0xff] }
0x2190   :  { %v5543_v2 = vmul.f32 %v4123_v18, %v2831_v5  ;;  %3804 = vmatprep.subr.bf16.mxu0 %v3803_v19  ;;  %v2922_v5 = vld [vmem:[%s5824_s9 + $0x220] sm:$0xff]  ;;  %v3877_v48 = vpack.c.bf16 %v2953_v54, %v2952_v63  ;;  %v2940_v42 = vld [vmem:[%s5824_s9 + $0x2b0] sm:$0xff]  ;;  %v2955_v50 = vld [vmem:[%s5824_s9 + $0x328] sm:$0xff] }
0x2191   :  { %3806 = vmatpush3.bf16.msra.mxu0 %v3805_v62  ;;  %v2954_v19 = vld [vmem:[%s5824_s9 + $0x320] sm:$0xff]  ;;  %v3849_v1 = vpack.c.bf16 %v2923_v3, %v2922_v5  ;;  %v2972_v62 = vld [vmem:[%s5824_s9 + $0x3b0] sm:$0xff]  ;;  %v3851_v22 = vpack.c.bf16 %v2941_v41, %v2940_v42  ;;  %v2949_v54 = vld [vmem:[%s5824_s9 + $0x2f8] sm:$0xff] }
0x2192   :  { %v2849_v34 = vrot.slane %v5543_v2, %v5272_v9  ;;  %3840 = vmatprep.subr.bf16.mxu0 %v3839_v13  ;;  %v3881_v7 = vpack.c.bf16 %v2955_v50, %v2954_v19  ;;  %v3853_v13 = vpack.c.bf16 %v2925_v32, %v2924_v25  ;;  %v2948_v63 = vld [vmem:[%s5824_s9 + $0x2f0] sm:$0xff]  ;;  %v2981_v5 = vld [vmem:[%s5824_s9 + $0x3f8] sm:$0xff] }
0x2193   :  { %v3867_v3 = vpack.c.bf16 %v2949_v54, %v2948_v63  ;;  %v2933_v42 = vld [vmem:[%s5824_s9 + $0x278] sm:$0xff]  ;;  %v2964_v19 = vld [vmem:[%s5824_s9 + $0x370] sm:$0xff] }
0x2194   :  { %2850 = vrot.lane.b32.xlu1 %v2849_v34, %s4189_s1  ;;  %v2943_v34 = vld [vmem:[%s5824_s9 + $0x2c8] sm:$0xff]  ;;  %v2965_v50 = vld [vmem:[%s5824_s9 + $0x378] sm:$0xff] }
0x2195   :  { %v3855_v8 = vpack.c.bf16 %v2943_v34, %v2942_v30 }
0x2198   :  { %1042 = vrot.lane.b32.xlu1 %v1041_v6, %s4189_s1  ;;  %v2926_v6 = vld [vmem:[%s5824_s9 + $0x240] sm:$0xff] }
0x219c   :  { %1730 = vrot.lane.b32.xlu1 %v1729_v11, %s4189_s1  ;;  %v2927_v11 = vld [vmem:[%s5824_s9 + $0x248] sm:$0xff] }
0x219d   :  { %v3857_v27 = vpack.c.bf16 %v2927_v11, %v2926_v6 }
0x21a0   :  { %2149 = vrot.lane.b32.xlu1 %v2148_v16, %s4189_s1  ;;  %v3885_v16 = vpack.c.bf16 %v2957_v46, %v2956_v61 }
0x21a4   :  { %2709 = vrot.lane.b32.xlu1 %v2708_v24, %s4189_s1 }
0x2206   :  { %v2851_v20 = vpop.permute.xlu1 %2850 }
0x2207   :  { %2853 = vst.msk [vmem:[#allocation2] sm:$0x3] %vm700_vm7, %v2851_v20  ;;  %v2945_v20 = vld [vmem:[%s5824_s9 + $0x2d8] sm:$0xff] }
0x220a   :  { %v1043_v43 = vpop.permute.xlu1 %1042 }
0x220b   :  { %1045 = vst.msk [vmem:[#allocation2 + $0xc] sm:$0x3] %vm700_vm7, %v1043_v43 }
0x220c   :  { %2432 = vst.msk [vmem:[#allocation2 + $0xc] sm:$0x3] %vm523_vm5, %v2430_v59  ;;  %v3887_v59 = vpack.c.bf16 %v2975_v21, %v2974_v35 }
0x220d   :  { %2561 = vst.msk [vmem:[#allocation2 + $0xc] sm:$0x3] %vm687_vm6, %v5240_v29  ;;  %v2937_v29 = vld [vmem:[%s5824_s9 + $0x298] sm:$0xff] }
0x220e   :  { %v1731_v45 = vpop.permute.xlu1 %1730  ;;  %v2983_v49 = vld [vmem:[#allocation2] sm:$0xff]  ;;  %v3843_v52 = vpack.c.bf16 %v2937_v29, %v2936_v4 }
0x220f   :  { %1733 = vst.msk [vmem:[#allocation2 + $0x8] sm:$0x3] %vm700_vm7, %v1731_v45  ;;  %v2998_v55 = vrot.slane %v2983_v49, %v5272_v9  ;;  %v2991_v26 = vcombine.high %v2983_v49, %v2983_v49  ;;  %v2958_v45 = vld [vmem:[%s5824_s9 + $0x340] sm:$0xff]  ;;  %v2959_v49 = vld [vmem:[%s5824_s9 + $0x348] sm:$0xff] }
0x2210   :  { %1872 = vst.msk [vmem:[#allocation2 + $0x8] sm:$0x3] %vm523_vm5, %v1870_v38  ;;  %v2944_v38 = vld [vmem:[%s5824_s9 + $0x2d0] sm:$0xff] }
0x2211   :  { %2001 = vst.msk [vmem:[#allocation2 + $0x8] sm:$0x3] %vm687_vm6, %v5150_v39  ;;  %v3006_v0 = vcombine.high %v2998_v55, %v2998_v55  ;;  %v3005_v40 = vrot.slane %v2991_v26, %v5272_v9  ;;  %v2921_v39 = vld [vmem:[%s5824_s9 + $0x218] sm:$0xff]  ;;  %v3859_v37 = vpack.c.bf16 %v2945_v20, %v2944_v38 }
0x2212   :  { %v2150_v14 = vpop.permute.xlu1 %2149  ;;  %v3845_v60 = vpack.c.bf16 %v2921_v39, %v2920_v10  ;;  %v2977_v26 = vld [vmem:[%s5824_s9 + $0x3d8] sm:$0xff]  ;;  %v2978_v39 = vld [vmem:[%s5824_s9 + $0x3e0] sm:$0xff] }
0x2213   :  { %2152 = vst.msk [vmem:[#allocation2 + $0xa] sm:$0x3] %vm523_vm5, %v2150_v14  ;;  %3097 = vmatprep.mubr.f32.mxu0 %v3006_v0  ;;  %v3007_v44 = vcombine.high %v3005_v40, %v3005_v40  ;;  %v2929_v0 = vld [vmem:[%s5824_s9 + $0x258] sm:$0xff]  ;;  %v2960_v14 = vld [vmem:[%s5824_s9 + $0x350] sm:$0xff] }
0x2214   :  { %2281 = vst.msk [vmem:[#allocation2 + $0xa] sm:$0x3] %vm687_vm6, %v5196_v36  ;;  %3098 = vmatmul.mubr.f32.vlgmr.msra.gmra.mrb[18].mxu0 %v2998_v55  ;;  %v2971_v36 = vld [vmem:[%s5824_s9 + $0x3a8] sm:$0xff]  ;;  %v2976_v55 = vld [vmem:[%s5824_s9 + $0x3d0] sm:$0xff]  ;;  %v3861_v10 = vpack.c.bf16 %v2929_v0, %v2928_v33 }
0x2215   :  { %3842 = vmatpush3.bf16.msra.mxu0 %v3841_v28  ;;  %3167 = vmatprep.mubr.f32.mxu1 %v3007_v44  ;;  %v3879_v18 = vpack.c.bf16 %v2971_v36, %v2970_v17  ;;  %v3889_v28 = vpack.c.bf16 %v2959_v49, %v2958_v45  ;;  %v3891_v51 = vpack.c.bf16 %v2977_v26, %v2976_v55  ;;  %v2979_v44 = vld [vmem:[%s5824_s9 + $0x3e8] sm:$0xff]  ;;  %v2962_v17 = vld [vmem:[%s5824_s9 + $0x360] sm:$0xff] }
0x2216   :  { %3168 = vmatmul.mubr.f32.vlgmr.msra.gmra.mrb[16].mxu1 %v3005_v40  ;;  %v2710_v58 = vpop.permute.xlu1 %2709  ;;  %3844 = vmatprep.subr.bf16.mxu0 %v3843_v52  ;;  %v2946_v40 = vld [vmem:[%s5824_s9 + $0x2e0] sm:$0xff]  ;;  %v2961_v52 = vld [vmem:[%s5824_s9 + $0x358] sm:$0xff]  ;;  %v2963_v36 = vld [vmem:[%s5824_s9 + $0x368] sm:$0xff] }
0x2217   :  { %3874 = vmatpush3.bf16.msra.mxu1 %v3873_v53  ;;  %2712 = vst.msk [vmem:[#allocation2 + $0xe] sm:$0x3] %vm523_vm5, %v2710_v58  ;;  %v3863_v53 = vpack.c.bf16 %v2947_v12, %v2946_v40  ;;  %v3865_v58 = vpack.c.bf16 %v2931_v57, %v2930_v23  ;;  %v3897_v41 = vpack.c.bf16 %v2963_v36, %v2962_v17 }
0x2218   :  { %2841 = vst.msk [vmem:[#allocation2 + $0xe] sm:$0x3] %vm687_vm6, %v5543_v2  ;;  %3876 = vmatprep.subr.bf16.mxu1 %v3875_v31  ;;  %v2973_v2 = vld [vmem:[%s5824_s9 + $0x3b8] sm:$0xff]  ;;  %v3893_v31 = vpack.c.bf16 %v2961_v52, %v2960_v14 }
0x2219   :  { %3846 = vmatpush3.bf16.msra.mxu0 %v3845_v60  ;;  %v3883_v56 = vpack.c.bf16 %v2973_v2, %v2972_v62  ;;  %v3895_v60 = vpack.c.bf16 %v2979_v44, %v2978_v39  ;;  %v3901_v62 = vpack.c.bf16 %v2965_v50, %v2964_v19 }
0x221a   :  { %3848 = vmatprep.subr.bf16.mxu0 %v3847_v15  ;;  %v2980_v15 = vld [vmem:[%s5824_s9 + $0x3f0] sm:$0xff] }
0x221b   :  { %3878 = vmatpush3.bf16.msra.mxu1 %v3877_v48  ;;  %v2932_v48 = vld [vmem:[%s5824_s9 + $0x270] sm:$0xff] }
0x221c   :  { %3880 = vmatprep.subr.bf16.mxu1 %v3879_v18  ;;  %v3899_v18 = vpack.c.bf16 %v2981_v5, %v2980_v15 }
0x221d   :  { %3850 = vmatpush3.bf16.msra.mxu0 %v3849_v1  ;;  %v3869_v1 = vpack.c.bf16 %v2933_v42, %v2932_v48 }
0x221e   :  { %3852 = vmatprep.subr.bf16.mxu0 %v3851_v22 }
0x221f   :  { %3882 = vmatpush3.bf16.msra.mxu1 %v3881_v7  ;;  %v2984_v24 = vld [vmem:[#allocation2 + $0x8] sm:$0xff] }
0x2220   :  { %3884 = vmatprep.subr.bf16.mxu1 %v3883_v56  ;;  %v5710_v43 = vrot.slane %v2984_v24, %v5272_v9  ;;  %v3008_v47 = vcombine.high %v2984_v24, %v2984_v24 }
0x2221   :  { %3854 = vmatpush3.bf16.msra.mxu0 %v3853_v13 }
0x2222   :  { %3856 = vmatprep.subr.bf16.mxu0 %v3855_v8  ;;  %v3023_v4 = vcombine.high %v5710_v43, %v5710_v43  ;;  %v3022_v29 = vrot.slane %v3008_v47, %v5272_v9 }
0x2223   :  { %3886 = vmatpush3.bf16.msra.mxu1 %v3885_v16 }
0x2224   :  { %3237 = vmatprep.mubr.f32.mxu0 %v3023_v4  ;;  %3888 = vmatprep.subr.bf16.mxu1 %v3887_v59  ;;  %v3024_v9 = vcombine.high %v3022_v29, %v3022_v29 }
0x2225   :  { %3858 = vmatpush3.bf16.msra.mxu0 %v3857_v27 }
0x2226   :  { %3307 = vmatprep.mubr.f32.mxu1 %v3024_v9  ;;  %3860 = vmatprep.subr.bf16.mxu0 %v3859_v37 }
0x2227   :  { %3890 = vmatpush3.bf16.msra.mxu1 %v3889_v28 }
0x2228   :  { %3892 = vmatprep.subr.bf16.mxu1 %v3891_v51 }
0x2229   :  { %3862 = vmatpush3.bf16.msra.mxu0 %v3861_v10 }
0x222a   :  { %3864 = vmatprep.subr.bf16.mxu0 %v3863_v53 }
0x222b   :  { %3894 = vmatpush3.bf16.msra.mxu1 %v3893_v31 }
0x222c   :  { %3896 = vmatprep.subr.bf16.mxu1 %v3895_v60 }
0x222d   :  { %3866 = vmatpush3.bf16.msra.mxu0 %v3865_v58 }
0x222e   :  { %3868 = vmatprep.subr.bf16.mxu0 %v3867_v3 }
0x222f   :  { %3898 = vmatpush3.bf16.msra.mxu1 %v3897_v41 }
0x2230   :  { %3900 = vmatprep.subr.bf16.mxu1 %v3899_v18 }
0x2231   :  { %3870 = vmatpush3.bf16.msra.mxu0 %v3869_v1 }
0x2233   :  { %3902 = vmatpush3.bf16.msra.mxu1 %v3901_v62 }
0x2234   :  { %3238 = vmatmul.mubr.f32.vlgmr.msra.gmra.mrb[20].mxu0 %v5710_v43 }
0x2236   :  { %3308 = vmatmul.mubr.f32.vlgmr.msra.gmra.mrb[18].mxu1 %v3022_v29 }
0x2237   :  { %4140 = shalt.err (!%p4137_p4)
}
0x2238   :  { %s4141_s27 = scalar_lea.hbm %s5826_s11, 32 }
0x2239   :  { %p4142_p5 = scmp.ne.s32.totalorder %s5826_s11, %s4141_s27  ;;  %p4145_p6 = scmp.lt.u32.totalorder %s4141_s27, %s5826_s11 }
0x223b   :  { %p4147_p7 = pnand %p4145_p6, %p4142_p5 }
0x223d   :  { %4150 = shalt.err (!%p4147_p7)
}
0x223e   :  { %3334 = dma.vmem_to_hbm [thread:$0]  %s3332_s24, 32, %s5826_s11, [#allocation6]   ;;  %v3373_v22 = vld [vmem:[%s5824_s9 + $0x400] ss:$0 sm:$0xff]  ;;  %vm3313_vm8 = vcmask 123904  }
0x223f   :  { %s4203_s5 = smov [#allocation3]  }
0x2240   :  { %s3321_s2 = sshll.u32 %s4203_s5, 4  ;;  %s3322_s2 = int_to_ptr.vmem [resolvable:$true] %s3321_s2 }
0x2241   :  { %s4151_s9 = scalar_lea.vmem %s3322_s2, 32  ;;  %p4156_p9 = scmp.lt.s32.totalorder %s3322_s2, %s3322_s2 }
0x2242   :  { %p4152_p8 = scmp.ne.s32.totalorder %s3322_s2, %s4151_s9  ;;  %p4157_p10 = scmp.lt.s32.totalorder %s4151_s9, %s4151_s9 }
0x2244   :  { %p4158_p11 = por %p4157_p10, %p4156_p9 }
0x2246   :  { %p4159_p12 = pnand %p4158_p11, %p4152_p8 }
0x22e7   :  { %v3411_v2 = vpop.f32.mrb[18].mxu0 }
0x22e8   :  { %v3412_v25 = vpop.f32.mrb[19].mxu0 }
0x22e9   :  { %v3413_v32 = vadd.f32 %v3412_v25, %v3411_v2  ;;  %v3446_v7 = vpop.f32.mrb[16].mxu1 }
0x22ea   :  { %v3447_v30 = vpop.f32.mrb[17].mxu1 }
0x22eb   :  { %v3100_v34 = vadd.f32 %v3413_v32, %v3373_v22  ;;  %v3448_v56 = vadd.f32 %v3447_v30, %v3446_v7 }
0x22ed   :  { %v3170_v61 = vadd.f32 %v3448_v56, %v3100_v34 }
0x2307   :  { %v3481_v46 = vpop.f32.mrb[20].mxu0 }
0x2308   :  { %v3482_v13 = vpop.f32.mrb[21].mxu0 }
0x2309   :  { %v3483_v35 = vadd.f32 %v3482_v13, %v3481_v46  ;;  %v3516_v21 = vpop.f32.mrb[18].mxu1 }
0x230a   :  { %v3517_v8 = vpop.f32.mrb[19].mxu1 }
0x230b   :  { %v3240_v6 = vadd.f32 %v3483_v35, %v3170_v61  ;;  %v3518_v11 = vadd.f32 %v3517_v8, %v3516_v21 }
0x230d   :  { %v3310_v16 = vadd.f32 %v3518_v11, %v3240_v6 }
0x230f   :  { %3314 = vst.msk [vmem:[#allocation3] sm:$0x3] %vm3313_vm8, %v3310_v16 }
0x2310   :  { %4162 = shalt.err (!%p4159_p12)
}
0x2311   :  { %s4163_s4 = scalar_lea.hbm %s5825_s10, 32 }
0x2312   :  { %p4164_p13 = scmp.ne.s32.totalorder %s5825_s10, %s4163_s4  ;;  %p4167_p0 = scmp.lt.u32.totalorder %s4163_s4, %s5825_s10 }
0x2314   :  { %p4169_p1 = pnand %p4167_p0, %p4164_p13 }
0x2316   :  { %4172 = shalt.err (!%p4169_p1)
}
0x2317   :  { %3324 = dma.vmem_to_hbm [thread:$0]  %s3322_s2, 32, %s5825_s10, [#allocation4]  }
0x2318   :  { %4173 = dma.done.wait [#allocation4], 32  }
0x2319   :  { %4174 = vsyncadd [#allocation4], 4294967264 }
0x231a   :  { %4175 = dma.done.wait [#allocation6], 32  }
0x231b   :  { %4176 = vsyncadd [#allocation6], 4294967264 }
0x231c   :  { %3341 = vsyncpa [#allocation4], 1 }
0x231d   :  { %3342 = vsyncpa [#allocation6], 1 }

</bundles_post_ra>
